<compile_context>
chip_gen: v6e
topology: v6e:2x2x1
jax: 0.10.0
libtpu: 0.0.40
codegen_flags: <defaults>
</compile_context>

<pallas_src>
import jax
import jax.numpy as jnp
from jax import lax
from jax.experimental import pallas as pl
from jax.experimental.pallas import tpu as pltpu

# ---- small synthetic BERT config (BERT-base would be 12 layers / 768 hidden) ----
HIDDEN = 128
LAYERS = 2
HEADS = 4
HEAD_DIM = HIDDEN // HEADS
INTER = 256
VOCAB = 100
TYPE_VOCAB = 2
MAX_POS = 32
LN_EPS = 1e-12
BATCH = 2
SEQ = 8


# ----------------------------- fused Pallas kernel -----------------------------

def _bert_kernel(emb_ref, bias_ref, emb_ln_g_ref, emb_ln_b_ref,
                 wqkv_ref, bqkv_ref, wo_ref, bo_ref, ln1_g_ref, ln1_b_ref,
                 wi_ref, bi_ref, wf_ref, bf_ref, ln2_g_ref, ln2_b_ref,
                 pool_w_ref, pool_b_ref, out_w_ref, out_b_ref,
                 o_ref):
    scale = jnp.float32(1.0 / (HEAD_DIM ** 0.5))

    def layer_norm(x, g, b):
        mu = jnp.mean(x, axis=-1, keepdims=True)
        xc = x - mu
        var = jnp.mean(xc * xc, axis=-1, keepdims=True)
        return xc * lax.rsqrt(var + LN_EPS) * g + b

    def matmul_bf16(x, w, b):
        # bf16 MXU inputs (weights already stored bf16), f32 accumulation.
        return jnp.dot(x.astype(jnp.bfloat16), w,
                       preferred_element_type=jnp.float32) + b

    def gelu(y):
        # TODO(synk): HF BERT uses erf-GELU; tanh-approx GELU used here (numerically very close).
        c = jnp.float32(0.7978845608028654)  # sqrt(2/pi)
        return 0.5 * y * (1.0 + jnp.tanh(c * (y + 0.044715 * y * y * y)))

    # --- embeddings LayerNorm (f32) ---
    h = layer_norm(emb_ref[...], emb_ln_g_ref[...], emb_ln_b_ref[...])   # (B*S, H)
    bias = bias_ref[...]                                                 # (B*HEADS, 1, S)

    # --- encoder layers (fully unrolled; all activations live in vregs) ---
    for l in range(LAYERS):
        # fused Q/K/V projection: one (M,H) @ (H,3H) matmul, lane-dense N=384
        qkv = matmul_bf16(h, wqkv_ref[l], bqkv_ref[l])                   # (B*S, 3H) f32

        # head split as SSA values (static slices + stack; no scratch stores)
        def split_heads(off):
            return jnp.stack(
                [qkv[b * SEQ:(b + 1) * SEQ,
                     off + hd * HEAD_DIM: off + (hd + 1) * HEAD_DIM]
                 for b in range(BATCH) for hd in range(HEADS)],
                axis=0)                                                   # (B*HEADS, S, Dh)

        qh = split_heads(0).astype(jnp.bfloat16)
        kh = split_heads(HIDDEN).astype(jnp.bfloat16)
        vh = split_heads(2 * HIDDEN).astype(jnp.bfloat16)

        # batched attention over all batches and heads: 2 MXU einsums per layer
        s = jnp.einsum('bqd,bkd->bqk', qh, kh,
                       preferred_element_type=jnp.float32) * scale + bias  # (B*HEADS, S, S)
        m = jnp.max(s, axis=-1, keepdims=True)
        p = jnp.exp(s - m)
        p = p * pl.reciprocal(jnp.sum(p, axis=-1, keepdims=True), approx=True)
        ctx_h = jnp.einsum('bqk,bkd->bqd', p.astype(jnp.bfloat16), vh,
                           preferred_element_type=jnp.float32)             # (B*HEADS, S, Dh)

        # merge heads back into one lane-dense (B*S, H) value
        ctx = jnp.concatenate(
            [jnp.concatenate([ctx_h[b * HEADS + hd] for hd in range(HEADS)], axis=-1)
             for b in range(BATCH)],
            axis=0)                                                        # (B*S, H)

        attn_out = matmul_bf16(ctx, wo_ref[l], bo_ref[l])
        h = layer_norm(attn_out + h, ln1_g_ref[l], ln1_b_ref[l])
        inter = gelu(matmul_bf16(h, wi_ref[l], bi_ref[l]))
        ffn_out = matmul_bf16(inter, wf_ref[l], bf_ref[l])
        h = layer_norm(ffn_out + h, ln2_g_ref[l], ln2_b_ref[l])

    # --- fused pooler + classifier tail: one matmul for both CLS rows, one store ---
    cls = jnp.concatenate([h[b * SEQ:b * SEQ + 1, :] for b in range(BATCH)], axis=0)  # (B, H)
    pooled = jnp.tanh(matmul_bf16(cls, pool_w_ref[...], pool_b_ref[...]))             # (B, H)
    # Dropout(0.3) is identity in eval; N=1 classifier as a VPU/XLU row reduction.
    o_ref[...] = jnp.sum(pooled * out_w_ref[...], axis=-1, keepdims=True) + out_b_ref[...]


def bert_fused_call(args, batch):
    in_specs = [pl.BlockSpec(a.shape, lambda i, nd=a.ndim: (0,) * nd) for a in args]
    return pl.pallas_call(
        _bert_kernel,
        grid=(1,),
        out_shape=jax.ShapeDtypeStruct((batch, 1), jnp.float32),
        in_specs=in_specs,
        out_specs=pl.BlockSpec((batch, 1), lambda i: (0, 0)),
        compiler_params=pltpu.CompilerParams(
            dimension_semantics=("arbitrary",)),
    )(*args)


# ----------------------------- parameters -----------------------------

def init_params(key):
    keys = jax.random.split(key, 5 + LAYERS)

    def w(k, shape):
        return jax.random.normal(k, shape, jnp.float32) * 0.02

    params = {
        "word_emb": w(keys[0], (VOCAB, HIDDEN)),
        "pos_emb": w(keys[1], (MAX_POS, HIDDEN)),
        "type_emb": w(keys[2], (TYPE_VOCAB, HIDDEN)),
        "emb_ln_g": jnp.ones((1, HIDDEN), jnp.float32),
        "emb_ln_b": jnp.zeros((1, HIDDEN), jnp.float32),
        "pool_w": w(keys[3], (HIDDEN, HIDDEN)).astype(jnp.bfloat16),
        "pool_b": jnp.zeros((1, HIDDEN), jnp.float32),
        "out_w": w(keys[4], (1, HIDDEN)),            # nn.Linear(768, 1) analogue (row vector)
        "out_b": jnp.zeros((1, 1), jnp.float32),
    }

    wqkv, bqkv, wo, bo, ln1g, ln1b = [], [], [], [], [], []
    wi, bi, wf, bf, ln2g, ln2b = [], [], [], [], [], []
    for l in range(LAYERS):
        lk = jax.random.split(keys[5 + l], 6)
        wq, wk, wv = w(lk[0], (HIDDEN, HIDDEN)), w(lk[1], (HIDDEN, HIDDEN)), w(lk[2], (HIDDEN, HIDDEN))
        wqkv.append(jnp.concatenate([wq, wk, wv], axis=1))          # (H, 3H) fused QKV weight
        bqkv.append(jnp.zeros((1, 3 * HIDDEN), jnp.float32))
        wo.append(w(lk[3], (HIDDEN, HIDDEN)))
        bo.append(jnp.zeros((1, HIDDEN), jnp.float32))
        ln1g.append(jnp.ones((1, HIDDEN), jnp.float32))
        ln1b.append(jnp.zeros((1, HIDDEN), jnp.float32))
        wi.append(w(lk[4], (HIDDEN, INTER)))
        bi.append(jnp.zeros((1, INTER), jnp.float32))
        wf.append(w(lk[5], (INTER, HIDDEN)))
        bf.append(jnp.zeros((1, HIDDEN), jnp.float32))
        ln2g.append(jnp.ones((1, HIDDEN), jnp.float32))
        ln2b.append(jnp.zeros((1, HIDDEN), jnp.float32))

    params.update({
        "wqkv": jnp.stack(wqkv).astype(jnp.bfloat16),   # (L, H, 3H)
        "bqkv": jnp.stack(bqkv),                         # (L, 1, 3H)
        "wo": jnp.stack(wo).astype(jnp.bfloat16),        # (L, H, H)
        "bo": jnp.stack(bo),
        "ln1_g": jnp.stack(ln1g), "ln1_b": jnp.stack(ln1b),
        "wi": jnp.stack(wi).astype(jnp.bfloat16),        # (L, H, I)
        "bi": jnp.stack(bi),
        "wf": jnp.stack(wf).astype(jnp.bfloat16),        # (L, I, H)
        "bf": jnp.stack(bf),
        "ln2_g": jnp.stack(ln2g), "ln2_b": jnp.stack(ln2b),
    })
    return params


# ----------------------------- forward -----------------------------

def bert_base_uncased_forward(params, ids, mask, token_type_ids):
    B, S = ids.shape

    # embeddings (gathers are plain-JAX glue; LayerNorm happens inside the kernel)
    word = jnp.take(params["word_emb"], ids, axis=0)                       # (B,S,H)
    pos = jnp.take(params["pos_emb"], jnp.arange(S), axis=0)[None, :, :]   # (1,S,H)
    tok = jnp.take(params["type_emb"], token_type_ids, axis=0)             # (B,S,H)
    emb = (word + pos + tok).reshape(B * S, HIDDEN)

    # additive attention-mask bias, pre-broadcast per head: (B*HEADS, 1, S)
    bias = (1.0 - mask.astype(jnp.float32)) * -10000.0                     # (B, S)
    bias = jnp.broadcast_to(bias[:, None, None, :], (B, HEADS, 1, S))
    bias = bias.reshape(B * HEADS, 1, S)

    args = [emb, bias, params["emb_ln_g"], params["emb_ln_b"],
            params["wqkv"], params["bqkv"], params["wo"], params["bo"],
            params["ln1_g"], params["ln1_b"], params["wi"], params["bi"],
            params["wf"], params["bf"], params["ln2_g"], params["ln2_b"],
            params["pool_w"], params["pool_b"], params["out_w"], params["out_b"]]

    return bert_fused_call(args, B)                                        # (B, 1)


if __name__ == "__main__":
    key = jax.random.PRNGKey(0)
    pkey, ikey = jax.random.split(key)
    params = init_params(pkey)

    ids = jax.random.randint(ikey, (BATCH, SEQ), 0, VOCAB, dtype=jnp.int32)
    mask = jnp.ones((BATCH, SEQ), jnp.int32)
    token_type_ids = jnp.zeros((BATCH, SEQ), jnp.int32)

    out = jax.jit(bert_base_uncased_forward)(params, ids, mask, token_type_ids)
    out = jax.block_until_ready(out)
    assert out.shape == (BATCH, 1) and out.dtype == jnp.float32
    print("KERNEL_OK")
</pallas_src>

<mosaic_0001>
module attributes {stable_mosaic.version = 11 : i64} {
  func.func @_bert_kernel(%arg0: i32, %arg1: memref<16x128xf32, #tpu.memory_space<vmem>>, %arg2: memref<8x1x8xf32, #tpu.memory_space<vmem>>, %arg3: memref<1x128xf32, #tpu.memory_space<vmem>>, %arg4: memref<1x128xf32, #tpu.memory_space<vmem>>, %arg5: memref<2x128x384xbf16, #tpu.memory_space<vmem>>, %arg6: memref<2x1x384xf32, #tpu.memory_space<vmem>>, %arg7: memref<2x128x128xbf16, #tpu.memory_space<vmem>>, %arg8: memref<2x1x128xf32, #tpu.memory_space<vmem>>, %arg9: memref<2x1x128xf32, #tpu.memory_space<vmem>>, %arg10: memref<2x1x128xf32, #tpu.memory_space<vmem>>, %arg11: memref<2x128x256xbf16, #tpu.memory_space<vmem>>, %arg12: memref<2x1x256xf32, #tpu.memory_space<vmem>>, %arg13: memref<2x256x128xbf16, #tpu.memory_space<vmem>>, %arg14: memref<2x1x128xf32, #tpu.memory_space<vmem>>, %arg15: memref<2x1x128xf32, #tpu.memory_space<vmem>>, %arg16: memref<2x1x128xf32, #tpu.memory_space<vmem>>, %arg17: memref<128x128xbf16, #tpu.memory_space<vmem>>, %arg18: memref<1x128xf32, #tpu.memory_space<vmem>>, %arg19: memref<1x128xf32, #tpu.memory_space<vmem>>, %arg20: memref<1x1xf32, #tpu.memory_space<vmem>>, %arg21: memref<2x1xf32, #tpu.memory_space<vmem>>) attributes {dimension_semantics = [#tpu.dimension_semantics<arbitrary>], iteration_bounds = array<i64: 1>, scalar_prefetch = 0 : i64, scratch_operands = 0 : i64, tpu.core_type = #tpu.core_type<tc>, window_params = [{pipeline_mode = #tpu.pipeline_mode<synchronous>, transform_indices = @transform_0, window_bounds = array<i64: 16, 128>}, {pipeline_mode = #tpu.pipeline_mode<synchronous>, transform_indices = @transform_1, window_bounds = array<i64: 8, 1, 8>}, {pipeline_mode = #tpu.pipeline_mode<synchronous>, transform_indices = @transform_2, window_bounds = array<i64: 1, 128>}, {pipeline_mode = #tpu.pipeline_mode<synchronous>, transform_indices = @transform_3, window_bounds = array<i64: 1, 128>}, {pipeline_mode = #tpu.pipeline_mode<synchronous>, transform_indices = @transform_4, window_bounds = array<i64: 2, 128, 384>}, {pipeline_mode = #tpu.pipeline_mode<synchronous>, transform_indices = @transform_5, window_bounds = array<i64: 2, 1, 384>}, {pipeline_mode = #tpu.pipeline_mode<synchronous>, transform_indices = @transform_6, window_bounds = array<i64: 2, 128, 128>}, {pipeline_mode = #tpu.pipeline_mode<synchronous>, transform_indices = @transform_7, window_bounds = array<i64: 2, 1, 128>}, {pipeline_mode = #tpu.pipeline_mode<synchronous>, transform_indices = @transform_8, window_bounds = array<i64: 2, 1, 128>}, {pipeline_mode = #tpu.pipeline_mode<synchronous>, transform_indices = @transform_9, window_bounds = array<i64: 2, 1, 128>}, {pipeline_mode = #tpu.pipeline_mode<synchronous>, transform_indices = @transform_10, window_bounds = array<i64: 2, 128, 256>}, {pipeline_mode = #tpu.pipeline_mode<synchronous>, transform_indices = @transform_11, window_bounds = array<i64: 2, 1, 256>}, {pipeline_mode = #tpu.pipeline_mode<synchronous>, transform_indices = @transform_12, window_bounds = array<i64: 2, 256, 128>}, {pipeline_mode = #tpu.pipeline_mode<synchronous>, transform_indices = @transform_13, window_bounds = array<i64: 2, 1, 128>}, {pipeline_mode = #tpu.pipeline_mode<synchronous>, transform_indices = @transform_14, window_bounds = array<i64: 2, 1, 128>}, {pipeline_mode = #tpu.pipeline_mode<synchronous>, transform_indices = @transform_15, window_bounds = array<i64: 2, 1, 128>}, {pipeline_mode = #tpu.pipeline_mode<synchronous>, transform_indices = @transform_16, window_bounds = array<i64: 128, 128>}, {pipeline_mode = #tpu.pipeline_mode<synchronous>, transform_indices = @transform_17, window_bounds = array<i64: 1, 128>}, {pipeline_mode = #tpu.pipeline_mode<synchronous>, transform_indices = @transform_18, window_bounds = array<i64: 1, 128>}, {pipeline_mode = #tpu.pipeline_mode<synchronous>, transform_indices = @transform_19, window_bounds = array<i64: 1, 1>}, {pipeline_mode = #tpu.pipeline_mode<synchronous>, transform_indices = @transform_20, window_bounds = array<i64: 2, 1>}]} {
    %c0 = arith.constant 0 : index
    %c0_0 = arith.constant 0 : index
    %0 = vector.load %arg1[%c0, %c0_0] : memref<16x128xf32, #tpu.memory_space<vmem>>, vector<16x128xf32>
    %c0_1 = arith.constant 0 : index
    %c0_2 = arith.constant 0 : index
    %1 = vector.load %arg3[%c0_1, %c0_2] : memref<1x128xf32, #tpu.memory_space<vmem>>, vector<1x128xf32>
    %c0_3 = arith.constant 0 : index
    %c0_4 = arith.constant 0 : index
    %2 = vector.load %arg4[%c0_3, %c0_4] : memref<1x128xf32, #tpu.memory_space<vmem>>, vector<1x128xf32>
    %cst = arith.constant dense<0.000000e+00> : vector<16xf32>
    %3 = vector.multi_reduction <add>, %0, %cst [1] : vector<16x128xf32> to vector<16xf32>
    %4 = vector.shape_cast %3 : vector<16xf32> to vector<16x1xf32>
    %cst_5 = arith.constant 1.280000e+02 : f32
    %5 = vector.broadcast %cst_5 : f32 to vector<16x1xf32>
    %6 = arith.divf %4, %5 : vector<16x1xf32>
    %7 = vector.broadcast %6 : vector<16x1xf32> to vector<16x128xf32>
    %8 = arith.subf %0, %7 : vector<16x128xf32>
    %9 = arith.mulf %8, %8 : vector<16x128xf32>
    %cst_6 = arith.constant dense<0.000000e+00> : vector<16xf32>
    %10 = vector.multi_reduction <add>, %9, %cst_6 [1] : vector<16x128xf32> to vector<16xf32>
    %11 = vector.shape_cast %10 : vector<16xf32> to vector<16x1xf32>
    %cst_7 = arith.constant 1.280000e+02 : f32
    %12 = vector.broadcast %cst_7 : f32 to vector<16x1xf32>
    %13 = arith.divf %11, %12 : vector<16x1xf32>
    %cst_8 = arith.constant 9.99999996E-13 : f32
    %14 = vector.broadcast %cst_8 : f32 to vector<16x1xf32>
    %15 = arith.addf %13, %14 : vector<16x1xf32>
    %16 = math.rsqrt %15 : vector<16x1xf32>
    %17 = vector.broadcast %16 : vector<16x1xf32> to vector<16x128xf32>
    %18 = arith.mulf %8, %17 : vector<16x128xf32>
    %19 = vector.broadcast %1 : vector<1x128xf32> to vector<16x128xf32>
    %20 = arith.mulf %18, %19 : vector<16x128xf32>
    %21 = vector.broadcast %2 : vector<1x128xf32> to vector<16x128xf32>
    %22 = arith.addf %20, %21 : vector<16x128xf32>
    %c0_9 = arith.constant 0 : index
    %c0_10 = arith.constant 0 : index
    %c0_11 = arith.constant 0 : index
    %23 = vector.load %arg2[%c0_9, %c0_10, %c0_11] : memref<8x1x8xf32, #tpu.memory_space<vmem>>, vector<8x1x8xf32>
    %c0_12 = arith.constant 0 : index
    %c0_13 = arith.constant 0 : index
    %c0_14 = arith.constant 0 : index
    %24 = vector.load %arg5[%c0_12, %c0_13, %c0_14] : memref<2x128x384xbf16, #tpu.memory_space<vmem>>, vector<1x128x384xbf16>
    %25 = vector.shape_cast %24 : vector<1x128x384xbf16> to vector<128x384xbf16>
    %c0_15 = arith.constant 0 : index
    %c0_16 = arith.constant 0 : index
    %c0_17 = arith.constant 0 : index
    %26 = vector.load %arg6[%c0_15, %c0_16, %c0_17] : memref<2x1x384xf32, #tpu.memory_space<vmem>>, vector<1x1x384xf32>
    %27 = vector.shape_cast %26 : vector<1x1x384xf32> to vector<1x384xf32>
    %28 = arith.truncf %22 : vector<16x128xf32> to vector<16x128xbf16>
    %cst_18 = arith.constant dense<0.000000e+00> : vector<16x384xf32>
    %29 = tpu.matmul %28, %25, %cst_18 {dimension_numbers = #tpu.dot_dimension_numbers<[1], [0], [0], [1], [0, 0, 1, 1], [], []>} : vector<16x128xbf16>, vector<128x384xbf16>, vector<16x384xf32> -> vector<16x384xf32>
    %30 = vector.broadcast %27 : vector<1x384xf32> to vector<16x384xf32>
    %31 = arith.addf %29, %30 : vector<16x384xf32>
    %32 = vector.extract_strided_slice %31 {offsets = [0, 0], sizes = [8, 32], strides = [1, 1]} : vector<16x384xf32> to vector<8x32xf32>
    %33 = vector.extract_strided_slice %31 {offsets = [0, 32], sizes = [8, 32], strides = [1, 1]} : vector<16x384xf32> to vector<8x32xf32>
    %34 = vector.extract_strided_slice %31 {offsets = [0, 64], sizes = [8, 32], strides = [1, 1]} : vector<16x384xf32> to vector<8x32xf32>
    %35 = vector.extract_strided_slice %31 {offsets = [0, 96], sizes = [8, 32], strides = [1, 1]} : vector<16x384xf32> to vector<8x32xf32>
    %36 = vector.extract_strided_slice %31 {offsets = [8, 0], sizes = [8, 32], strides = [1, 1]} : vector<16x384xf32> to vector<8x32xf32>
    %37 = vector.extract_strided_slice %31 {offsets = [8, 32], sizes = [8, 32], strides = [1, 1]} : vector<16x384xf32> to vector<8x32xf32>
    %38 = vector.extract_strided_slice %31 {offsets = [8, 64], sizes = [8, 32], strides = [1, 1]} : vector<16x384xf32> to vector<8x32xf32>
    %39 = vector.extract_strided_slice %31 {offsets = [8, 96], sizes = [8, 32], strides = [1, 1]} : vector<16x384xf32> to vector<8x32xf32>
    %40 = vector.shape_cast %32 : vector<8x32xf32> to vector<1x8x32xf32>
    %41 = vector.shape_cast %33 : vector<8x32xf32> to vector<1x8x32xf32>
    %42 = vector.shape_cast %34 : vector<8x32xf32> to vector<1x8x32xf32>
    %43 = vector.shape_cast %35 : vector<8x32xf32> to vector<1x8x32xf32>
    %44 = vector.shape_cast %36 : vector<8x32xf32> to vector<1x8x32xf32>
    %45 = vector.shape_cast %37 : vector<8x32xf32> to vector<1x8x32xf32>
    %46 = vector.shape_cast %38 : vector<8x32xf32> to vector<1x8x32xf32>
    %47 = vector.shape_cast %39 : vector<8x32xf32> to vector<1x8x32xf32>
    %48 = tpu.concatenate %40, %41, %42, %43, %44, %45, %46, %47 in 0 : vector<1x8x32xf32>, vector<1x8x32xf32>, vector<1x8x32xf32>, vector<1x8x32xf32>, vector<1x8x32xf32>, vector<1x8x32xf32>, vector<1x8x32xf32>, vector<1x8x32xf32> -> vector<8x8x32xf32>
    %49 = arith.truncf %48 : vector<8x8x32xf32> to vector<8x8x32xbf16>
    %50 = vector.extract_strided_slice %31 {offsets = [0, 128], sizes = [8, 32], strides = [1, 1]} : vector<16x384xf32> to vector<8x32xf32>
    %51 = vector.extract_strided_slice %31 {offsets = [0, 160], sizes = [8, 32], strides = [1, 1]} : vector<16x384xf32> to vector<8x32xf32>
    %52 = vector.extract_strided_slice %31 {offsets = [0, 192], sizes = [8, 32], strides = [1, 1]} : vector<16x384xf32> to vector<8x32xf32>
    %53 = vector.extract_strided_slice %31 {offsets = [0, 224], sizes = [8, 32], strides = [1, 1]} : vector<16x384xf32> to vector<8x32xf32>
    %54 = vector.extract_strided_slice %31 {offsets = [8, 128], sizes = [8, 32], strides = [1, 1]} : vector<16x384xf32> to vector<8x32xf32>
    %55 = vector.extract_strided_slice %31 {offsets = [8, 160], sizes = [8, 32], strides = [1, 1]} : vector<16x384xf32> to vector<8x32xf32>
    %56 = vector.extract_strided_slice %31 {offsets = [8, 192], sizes = [8, 32], strides = [1, 1]} : vector<16x384xf32> to vector<8x32xf32>
    %57 = vector.extract_strided_slice %31 {offsets = [8, 224], sizes = [8, 32], strides = [1, 1]} : vector<16x384xf32> to vector<8x32xf32>
    %58 = vector.shape_cast %50 : vector<8x32xf32> to vector<1x8x32xf32>
    %59 = vector.shape_cast %51 : vector<8x32xf32> to vector<1x8x32xf32>
    %60 = vector.shape_cast %52 : vector<8x32xf32> to vector<1x8x32xf32>
    %61 = vector.shape_cast %53 : vector<8x32xf32> to vector<1x8x32xf32>
    %62 = vector.shape_cast %54 : vector<8x32xf32> to vector<1x8x32xf32>
    %63 = vector.shape_cast %55 : vector<8x32xf32> to vector<1x8x32xf32>
    %64 = vector.shape_cast %56 : vector<8x32xf32> to vector<1x8x32xf32>
    %65 = vector.shape_cast %57 : vector<8x32xf32> to vector<1x8x32xf32>
    %66 = tpu.concatenate %58, %59, %60, %61, %62, %63, %64, %65 in 0 : vector<1x8x32xf32>, vector<1x8x32xf32>, vector<1x8x32xf32>, vector<1x8x32xf32>, vector<1x8x32xf32>, vector<1x8x32xf32>, vector<1x8x32xf32>, vector<1x8x32xf32> -> vector<8x8x32xf32>
    %67 = arith.truncf %66 : vector<8x8x32xf32> to vector<8x8x32xbf16>
    %68 = vector.extract_strided_slice %31 {offsets = [0, 256], sizes = [8, 32], strides = [1, 1]} : vector<16x384xf32> to vector<8x32xf32>
    %69 = vector.extract_strided_slice %31 {offsets = [0, 288], sizes = [8, 32], strides = [1, 1]} : vector<16x384xf32> to vector<8x32xf32>
    %70 = vector.extract_strided_slice %31 {offsets = [0, 320], sizes = [8, 32], strides = [1, 1]} : vector<16x384xf32> to vector<8x32xf32>
    %71 = vector.extract_strided_slice %31 {offsets = [0, 352], sizes = [8, 32], strides = [1, 1]} : vector<16x384xf32> to vector<8x32xf32>
    %72 = vector.extract_strided_slice %31 {offsets = [8, 256], sizes = [8, 32], strides = [1, 1]} : vector<16x384xf32> to vector<8x32xf32>
    %73 = vector.extract_strided_slice %31 {offsets = [8, 288], sizes = [8, 32], strides = [1, 1]} : vector<16x384xf32> to vector<8x32xf32>
    %74 = vector.extract_strided_slice %31 {offsets = [8, 320], sizes = [8, 32], strides = [1, 1]} : vector<16x384xf32> to vector<8x32xf32>
    %75 = vector.extract_strided_slice %31 {offsets = [8, 352], sizes = [8, 32], strides = [1, 1]} : vector<16x384xf32> to vector<8x32xf32>
    %76 = vector.shape_cast %68 : vector<8x32xf32> to vector<1x8x32xf32>
    %77 = vector.shape_cast %69 : vector<8x32xf32> to vector<1x8x32xf32>
    %78 = vector.shape_cast %70 : vector<8x32xf32> to vector<1x8x32xf32>
    %79 = vector.shape_cast %71 : vector<8x32xf32> to vector<1x8x32xf32>
    %80 = vector.shape_cast %72 : vector<8x32xf32> to vector<1x8x32xf32>
    %81 = vector.shape_cast %73 : vector<8x32xf32> to vector<1x8x32xf32>
    %82 = vector.shape_cast %74 : vector<8x32xf32> to vector<1x8x32xf32>
    %83 = vector.shape_cast %75 : vector<8x32xf32> to vector<1x8x32xf32>
    %84 = tpu.concatenate %76, %77, %78, %79, %80, %81, %82, %83 in 0 : vector<1x8x32xf32>, vector<1x8x32xf32>, vector<1x8x32xf32>, vector<1x8x32xf32>, vector<1x8x32xf32>, vector<1x8x32xf32>, vector<1x8x32xf32>, vector<1x8x32xf32> -> vector<8x8x32xf32>
    %85 = arith.truncf %84 : vector<8x8x32xf32> to vector<8x8x32xbf16>
    "tpu.trace_start"() <{level = 10 : i32, message = "bqd,bkd->bqk"}> : () -> ()
    %cst_19 = arith.constant dense<0.000000e+00> : vector<8x8x8xf32>
    %86 = tpu.matmul %49, %67, %cst_19 {dimension_numbers = #tpu.dot_dimension_numbers<[2], [2], [1], [1], [0, 0, 0, 1, 1, 1], [0], [0]>} : vector<8x8x32xbf16>, vector<8x8x32xbf16>, vector<8x8x8xf32> -> vector<8x8x8xf32>
    "tpu.trace_stop"() : () -> ()
    %cst_20 = arith.constant 0.176776692 : f32
    %87 = vector.broadcast %cst_20 : f32 to vector<8x8x8xf32>
    %88 = arith.mulf %86, %87 : vector<8x8x8xf32>
    %89 = vector.broadcast %23 : vector<8x1x8xf32> to vector<8x8x8xf32>
    %90 = arith.addf %88, %89 : vector<8x8x8xf32>
    %cst_21 = arith.constant dense<0xFF800000> : vector<8x8xf32>
    %91 = vector.multi_reduction <maximumf>, %90, %cst_21 [2] : vector<8x8x8xf32> to vector<8x8xf32>
    %92 = vector.shape_cast %91 : vector<8x8xf32> to vector<8x8x1xf32>
    %93 = vector.broadcast %92 : vector<8x8x1xf32> to vector<8x8x8xf32>
    %94 = arith.subf %90, %93 : vector<8x8x8xf32>
    %95 = math.exp %94 : vector<8x8x8xf32>
    %cst_22 = arith.constant dense<0.000000e+00> : vector<8x8xf32>
    %96 = vector.multi_reduction <add>, %95, %cst_22 [2] : vector<8x8x8xf32> to vector<8x8xf32>
    %97 = vector.shape_cast %96 : vector<8x8xf32> to vector<8x8x1xf32>
    %98 = tpu.reciprocal %97 {approx = true} : vector<8x8x1xf32> -> vector<8x8x1xf32>
    %99 = vector.broadcast %98 : vector<8x8x1xf32> to vector<8x8x8xf32>
    %100 = arith.mulf %95, %99 : vector<8x8x8xf32>
    %101 = arith.truncf %100 : vector<8x8x8xf32> to vector<8x8x8xbf16>
    "tpu.trace_start"() <{level = 10 : i32, message = "bqk,bkd->bqd"}> : () -> ()
    %cst_23 = arith.constant dense<0.000000e+00> : vector<8x8x32xf32>
    %102 = tpu.matmul %101, %85, %cst_23 {dimension_numbers = #tpu.dot_dimension_numbers<[2], [1], [1], [2], [0, 0, 0, 1, 1, 2], [0], [0]>} : vector<8x8x8xbf16>, vector<8x8x32xbf16>, vector<8x8x32xf32> -> vector<8x8x32xf32>
    "tpu.trace_stop"() : () -> ()
    %103 = vector.extract_strided_slice %102 {offsets = [0, 0, 0], sizes = [1, 8, 32], strides = [1, 1, 1]} : vector<8x8x32xf32> to vector<1x8x32xf32>
    %104 = vector.shape_cast %103 : vector<1x8x32xf32> to vector<8x32xf32>
    %105 = vector.extract_strided_slice %102 {offsets = [1, 0, 0], sizes = [1, 8, 32], strides = [1, 1, 1]} : vector<8x8x32xf32> to vector<1x8x32xf32>
    %106 = vector.shape_cast %105 : vector<1x8x32xf32> to vector<8x32xf32>
    %107 = vector.extract_strided_slice %102 {offsets = [2, 0, 0], sizes = [1, 8, 32], strides = [1, 1, 1]} : vector<8x8x32xf32> to vector<1x8x32xf32>
    %108 = vector.shape_cast %107 : vector<1x8x32xf32> to vector<8x32xf32>
    %109 = vector.extract_strided_slice %102 {offsets = [3, 0, 0], sizes = [1, 8, 32], strides = [1, 1, 1]} : vector<8x8x32xf32> to vector<1x8x32xf32>
    %110 = vector.shape_cast %109 : vector<1x8x32xf32> to vector<8x32xf32>
    %111 = tpu.concatenate %104, %106, %108, %110 in 1 : vector<8x32xf32>, vector<8x32xf32>, vector<8x32xf32>, vector<8x32xf32> -> vector<8x128xf32>
    %112 = vector.extract_strided_slice %102 {offsets = [4, 0, 0], sizes = [1, 8, 32], strides = [1, 1, 1]} : vector<8x8x32xf32> to vector<1x8x32xf32>
    %113 = vector.shape_cast %112 : vector<1x8x32xf32> to vector<8x32xf32>
    %114 = vector.extract_strided_slice %102 {offsets = [5, 0, 0], sizes = [1, 8, 32], strides = [1, 1, 1]} : vector<8x8x32xf32> to vector<1x8x32xf32>
    %115 = vector.shape_cast %114 : vector<1x8x32xf32> to vector<8x32xf32>
    %116 = vector.extract_strided_slice %102 {offsets = [6, 0, 0], sizes = [1, 8, 32], strides = [1, 1, 1]} : vector<8x8x32xf32> to vector<1x8x32xf32>
    %117 = vector.shape_cast %116 : vector<1x8x32xf32> to vector<8x32xf32>
    %118 = vector.extract_strided_slice %102 {offsets = [7, 0, 0], sizes = [1, 8, 32], strides = [1, 1, 1]} : vector<8x8x32xf32> to vector<1x8x32xf32>
    %119 = vector.shape_cast %118 : vector<1x8x32xf32> to vector<8x32xf32>
    %120 = tpu.concatenate %113, %115, %117, %119 in 1 : vector<8x32xf32>, vector<8x32xf32>, vector<8x32xf32>, vector<8x32xf32> -> vector<8x128xf32>
    %121 = tpu.concatenate %111, %120 in 0 : vector<8x128xf32>, vector<8x128xf32> -> vector<16x128xf32>
    %c0_24 = arith.constant 0 : index
    %c0_25 = arith.constant 0 : index
    %c0_26 = arith.constant 0 : index
    %122 = vector.load %arg7[%c0_24, %c0_25, %c0_26] : memref<2x128x128xbf16, #tpu.memory_space<vmem>>, vector<1x128x128xbf16>
    %123 = vector.shape_cast %122 : vector<1x128x128xbf16> to vector<128x128xbf16>
    %c0_27 = arith.constant 0 : index
    %c0_28 = arith.constant 0 : index
    %c0_29 = arith.constant 0 : index
    %124 = vector.load %arg8[%c0_27, %c0_28, %c0_29] : memref<2x1x128xf32, #tpu.memory_space<vmem>>, vector<1x1x128xf32>
    %125 = vector.shape_cast %124 : vector<1x1x128xf32> to vector<1x128xf32>
    %126 = arith.truncf %121 : vector<16x128xf32> to vector<16x128xbf16>
    %cst_30 = arith.constant dense<0.000000e+00> : vector<16x128xf32>
    %127 = tpu.matmul %126, %123, %cst_30 {dimension_numbers = #tpu.dot_dimension_numbers<[1], [0], [0], [1], [0, 0, 1, 1], [], []>} : vector<16x128xbf16>, vector<128x128xbf16>, vector<16x128xf32> -> vector<16x128xf32>
    %128 = vector.broadcast %125 : vector<1x128xf32> to vector<16x128xf32>
    %129 = arith.addf %127, %128 : vector<16x128xf32>
    %130 = arith.addf %129, %22 : vector<16x128xf32>
    %c0_31 = arith.constant 0 : index
    %c0_32 = arith.constant 0 : index
    %c0_33 = arith.constant 0 : index
    %131 = vector.load %arg9[%c0_31, %c0_32, %c0_33] : memref<2x1x128xf32, #tpu.memory_space<vmem>>, vector<1x1x128xf32>
    %132 = vector.shape_cast %131 : vector<1x1x128xf32> to vector<1x128xf32>
    %c0_34 = arith.constant 0 : index
    %c0_35 = arith.constant 0 : index
    %c0_36 = arith.constant 0 : index
    %133 = vector.load %arg10[%c0_34, %c0_35, %c0_36] : memref<2x1x128xf32, #tpu.memory_space<vmem>>, vector<1x1x128xf32>
    %134 = vector.shape_cast %133 : vector<1x1x128xf32> to vector<1x128xf32>
    %cst_37 = arith.constant dense<0.000000e+00> : vector<16xf32>
    %135 = vector.multi_reduction <add>, %130, %cst_37 [1] : vector<16x128xf32> to vector<16xf32>
    %136 = vector.shape_cast %135 : vector<16xf32> to vector<16x1xf32>
    %cst_38 = arith.constant 1.280000e+02 : f32
    %137 = vector.broadcast %cst_38 : f32 to vector<16x1xf32>
    %138 = arith.divf %136, %137 : vector<16x1xf32>
    %139 = vector.broadcast %138 : vector<16x1xf32> to vector<16x128xf32>
    %140 = arith.subf %130, %139 : vector<16x128xf32>
    %141 = arith.mulf %140, %140 : vector<16x128xf32>
    %cst_39 = arith.constant dense<0.000000e+00> : vector<16xf32>
    %142 = vector.multi_reduction <add>, %141, %cst_39 [1] : vector<16x128xf32> to vector<16xf32>
    %143 = vector.shape_cast %142 : vector<16xf32> to vector<16x1xf32>
    %cst_40 = arith.constant 1.280000e+02 : f32
    %144 = vector.broadcast %cst_40 : f32 to vector<16x1xf32>
    %145 = arith.divf %143, %144 : vector<16x1xf32>
    %cst_41 = arith.constant 9.99999996E-13 : f32
    %146 = vector.broadcast %cst_41 : f32 to vector<16x1xf32>
    %147 = arith.addf %145, %146 : vector<16x1xf32>
    %148 = math.rsqrt %147 : vector<16x1xf32>
    %149 = vector.broadcast %148 : vector<16x1xf32> to vector<16x128xf32>
    %150 = arith.mulf %140, %149 : vector<16x128xf32>
    %151 = vector.broadcast %132 : vector<1x128xf32> to vector<16x128xf32>
    %152 = arith.mulf %150, %151 : vector<16x128xf32>
    %153 = vector.broadcast %134 : vector<1x128xf32> to vector<16x128xf32>
    %154 = arith.addf %152, %153 : vector<16x128xf32>
    %c0_42 = arith.constant 0 : index
    %c0_43 = arith.constant 0 : index
    %c0_44 = arith.constant 0 : index
    %155 = vector.load %arg11[%c0_42, %c0_43, %c0_44] : memref<2x128x256xbf16, #tpu.memory_space<vmem>>, vector<1x128x256xbf16>
    %156 = vector.shape_cast %155 : vector<1x128x256xbf16> to vector<128x256xbf16>
    %c0_45 = arith.constant 0 : index
    %c0_46 = arith.constant 0 : index
    %c0_47 = arith.constant 0 : index
    %157 = vector.load %arg12[%c0_45, %c0_46, %c0_47] : memref<2x1x256xf32, #tpu.memory_space<vmem>>, vector<1x1x256xf32>
    %158 = vector.shape_cast %157 : vector<1x1x256xf32> to vector<1x256xf32>
    %159 = arith.truncf %154 : vector<16x128xf32> to vector<16x128xbf16>
    %cst_48 = arith.constant dense<0.000000e+00> : vector<16x256xf32>
    %160 = tpu.matmul %159, %156, %cst_48 {dimension_numbers = #tpu.dot_dimension_numbers<[1], [0], [0], [1], [0, 0, 1, 1], [], []>} : vector<16x128xbf16>, vector<128x256xbf16>, vector<16x256xf32> -> vector<16x256xf32>
    %161 = vector.broadcast %158 : vector<1x256xf32> to vector<16x256xf32>
    %162 = arith.addf %160, %161 : vector<16x256xf32>
    %cst_49 = arith.constant 5.000000e-01 : f32
    %163 = vector.broadcast %cst_49 : f32 to vector<16x256xf32>
    %164 = arith.mulf %163, %162 : vector<16x256xf32>
    %cst_50 = arith.constant 4.471500e-02 : f32
    %165 = vector.broadcast %cst_50 : f32 to vector<16x256xf32>
    %166 = arith.mulf %165, %162 : vector<16x256xf32>
    %167 = arith.mulf %166, %162 : vector<16x256xf32>
    %168 = arith.mulf %167, %162 : vector<16x256xf32>
    %169 = arith.addf %162, %168 : vector<16x256xf32>
    %cst_51 = arith.constant 0.797884583 : f32
    %170 = vector.broadcast %cst_51 : f32 to vector<16x256xf32>
    %171 = arith.mulf %170, %169 : vector<16x256xf32>
    %172 = math.tanh %171 : vector<16x256xf32>
    %cst_52 = arith.constant 1.000000e+00 : f32
    %173 = vector.broadcast %cst_52 : f32 to vector<16x256xf32>
    %174 = arith.addf %173, %172 : vector<16x256xf32>
    %175 = arith.mulf %164, %174 : vector<16x256xf32>
    %c0_53 = arith.constant 0 : index
    %c0_54 = arith.constant 0 : index
    %c0_55 = arith.constant 0 : index
    %176 = vector.load %arg13[%c0_53, %c0_54, %c0_55] : memref<2x256x128xbf16, #tpu.memory_space<vmem>>, vector<1x256x128xbf16>
    %177 = vector.shape_cast %176 : vector<1x256x128xbf16> to vector<256x128xbf16>
    %c0_56 = arith.constant 0 : index
    %c0_57 = arith.constant 0 : index
    %c0_58 = arith.constant 0 : index
    %178 = vector.load %arg14[%c0_56, %c0_57, %c0_58] : memref<2x1x128xf32, #tpu.memory_space<vmem>>, vector<1x1x128xf32>
    %179 = vector.shape_cast %178 : vector<1x1x128xf32> to vector<1x128xf32>
    %180 = arith.truncf %175 : vector<16x256xf32> to vector<16x256xbf16>
    %cst_59 = arith.constant dense<0.000000e+00> : vector<16x128xf32>
    %181 = tpu.matmul %180, %177, %cst_59 {dimension_numbers = #tpu.dot_dimension_numbers<[1], [0], [0], [1], [0, 0, 1, 1], [], []>} : vector<16x256xbf16>, vector<256x128xbf16>, vector<16x128xf32> -> vector<16x128xf32>
    %182 = vector.broadcast %179 : vector<1x128xf32> to vector<16x128xf32>
    %183 = arith.addf %181, %182 : vector<16x128xf32>
    %184 = arith.addf %183, %154 : vector<16x128xf32>
    %c0_60 = arith.constant 0 : index
    %c0_61 = arith.constant 0 : index
    %c0_62 = arith.constant 0 : index
    %185 = vector.load %arg15[%c0_60, %c0_61, %c0_62] : memref<2x1x128xf32, #tpu.memory_space<vmem>>, vector<1x1x128xf32>
    %186 = vector.shape_cast %185 : vector<1x1x128xf32> to vector<1x128xf32>
    %c0_63 = arith.constant 0 : index
    %c0_64 = arith.constant 0 : index
    %c0_65 = arith.constant 0 : index
    %187 = vector.load %arg16[%c0_63, %c0_64, %c0_65] : memref<2x1x128xf32, #tpu.memory_space<vmem>>, vector<1x1x128xf32>
    %188 = vector.shape_cast %187 : vector<1x1x128xf32> to vector<1x128xf32>
    %cst_66 = arith.constant dense<0.000000e+00> : vector<16xf32>
    %189 = vector.multi_reduction <add>, %184, %cst_66 [1] : vector<16x128xf32> to vector<16xf32>
    %190 = vector.shape_cast %189 : vector<16xf32> to vector<16x1xf32>
    %cst_67 = arith.constant 1.280000e+02 : f32
    %191 = vector.broadcast %cst_67 : f32 to vector<16x1xf32>
    %192 = arith.divf %190, %191 : vector<16x1xf32>
    %193 = vector.broadcast %192 : vector<16x1xf32> to vector<16x128xf32>
    %194 = arith.subf %184, %193 : vector<16x128xf32>
    %195 = arith.mulf %194, %194 : vector<16x128xf32>
    %cst_68 = arith.constant dense<0.000000e+00> : vector<16xf32>
    %196 = vector.multi_reduction <add>, %195, %cst_68 [1] : vector<16x128xf32> to vector<16xf32>
    %197 = vector.shape_cast %196 : vector<16xf32> to vector<16x1xf32>
    %cst_69 = arith.constant 1.280000e+02 : f32
    %198 = vector.broadcast %cst_69 : f32 to vector<16x1xf32>
    %199 = arith.divf %197, %198 : vector<16x1xf32>
    %cst_70 = arith.constant 9.99999996E-13 : f32
    %200 = vector.broadcast %cst_70 : f32 to vector<16x1xf32>
    %201 = arith.addf %199, %200 : vector<16x1xf32>
    %202 = math.rsqrt %201 : vector<16x1xf32>
    %203 = vector.broadcast %202 : vector<16x1xf32> to vector<16x128xf32>
    %204 = arith.mulf %194, %203 : vector<16x128xf32>
    %205 = vector.broadcast %186 : vector<1x128xf32> to vector<16x128xf32>
    %206 = arith.mulf %204, %205 : vector<16x128xf32>
    %207 = vector.broadcast %188 : vector<1x128xf32> to vector<16x128xf32>
    %208 = arith.addf %206, %207 : vector<16x128xf32>
    %c1 = arith.constant 1 : index
    %c0_71 = arith.constant 0 : index
    %c0_72 = arith.constant 0 : index
    %209 = vector.load %arg5[%c1, %c0_71, %c0_72] : memref<2x128x384xbf16, #tpu.memory_space<vmem>>, vector<1x128x384xbf16>
    %210 = vector.shape_cast %209 : vector<1x128x384xbf16> to vector<128x384xbf16>
    %c1_73 = arith.constant 1 : index
    %c0_74 = arith.constant 0 : index
    %c0_75 = arith.constant 0 : index
    %211 = vector.load %arg6[%c1_73, %c0_74, %c0_75] : memref<2x1x384xf32, #tpu.memory_space<vmem>>, vector<1x1x384xf32>
    %212 = vector.shape_cast %211 : vector<1x1x384xf32> to vector<1x384xf32>
    %213 = arith.truncf %208 : vector<16x128xf32> to vector<16x128xbf16>
    %cst_76 = arith.constant dense<0.000000e+00> : vector<16x384xf32>
    %214 = tpu.matmul %213, %210, %cst_76 {dimension_numbers = #tpu.dot_dimension_numbers<[1], [0], [0], [1], [0, 0, 1, 1], [], []>} : vector<16x128xbf16>, vector<128x384xbf16>, vector<16x384xf32> -> vector<16x384xf32>
    %215 = vector.broadcast %212 : vector<1x384xf32> to vector<16x384xf32>
    %216 = arith.addf %214, %215 : vector<16x384xf32>
    %217 = vector.extract_strided_slice %216 {offsets = [0, 0], sizes = [8, 32], strides = [1, 1]} : vector<16x384xf32> to vector<8x32xf32>
    %218 = vector.extract_strided_slice %216 {offsets = [0, 32], sizes = [8, 32], strides = [1, 1]} : vector<16x384xf32> to vector<8x32xf32>
    %219 = vector.extract_strided_slice %216 {offsets = [0, 64], sizes = [8, 32], strides = [1, 1]} : vector<16x384xf32> to vector<8x32xf32>
    %220 = vector.extract_strided_slice %216 {offsets = [0, 96], sizes = [8, 32], strides = [1, 1]} : vector<16x384xf32> to vector<8x32xf32>
    %221 = vector.extract_strided_slice %216 {offsets = [8, 0], sizes = [8, 32], strides = [1, 1]} : vector<16x384xf32> to vector<8x32xf32>
    %222 = vector.extract_strided_slice %216 {offsets = [8, 32], sizes = [8, 32], strides = [1, 1]} : vector<16x384xf32> to vector<8x32xf32>
    %223 = vector.extract_strided_slice %216 {offsets = [8, 64], sizes = [8, 32], strides = [1, 1]} : vector<16x384xf32> to vector<8x32xf32>
    %224 = vector.extract_strided_slice %216 {offsets = [8, 96], sizes = [8, 32], strides = [1, 1]} : vector<16x384xf32> to vector<8x32xf32>
    %225 = vector.shape_cast %217 : vector<8x32xf32> to vector<1x8x32xf32>
    %226 = vector.shape_cast %218 : vector<8x32xf32> to vector<1x8x32xf32>
    %227 = vector.shape_cast %219 : vector<8x32xf32> to vector<1x8x32xf32>
    %228 = vector.shape_cast %220 : vector<8x32xf32> to vector<1x8x32xf32>
    %229 = vector.shape_cast %221 : vector<8x32xf32> to vector<1x8x32xf32>
    %230 = vector.shape_cast %222 : vector<8x32xf32> to vector<1x8x32xf32>
    %231 = vector.shape_cast %223 : vector<8x32xf32> to vector<1x8x32xf32>
    %232 = vector.shape_cast %224 : vector<8x32xf32> to vector<1x8x32xf32>
    %233 = tpu.concatenate %225, %226, %227, %228, %229, %230, %231, %232 in 0 : vector<1x8x32xf32>, vector<1x8x32xf32>, vector<1x8x32xf32>, vector<1x8x32xf32>, vector<1x8x32xf32>, vector<1x8x32xf32>, vector<1x8x32xf32>, vector<1x8x32xf32> -> vector<8x8x32xf32>
    %234 = arith.truncf %233 : vector<8x8x32xf32> to vector<8x8x32xbf16>
    %235 = vector.extract_strided_slice %216 {offsets = [0, 128], sizes = [8, 32], strides = [1, 1]} : vector<16x384xf32> to vector<8x32xf32>
    %236 = vector.extract_strided_slice %216 {offsets = [0, 160], sizes = [8, 32], strides = [1, 1]} : vector<16x384xf32> to vector<8x32xf32>
    %237 = vector.extract_strided_slice %216 {offsets = [0, 192], sizes = [8, 32], strides = [1, 1]} : vector<16x384xf32> to vector<8x32xf32>
    %238 = vector.extract_strided_slice %216 {offsets = [0, 224], sizes = [8, 32], strides = [1, 1]} : vector<16x384xf32> to vector<8x32xf32>
    %239 = vector.extract_strided_slice %216 {offsets = [8, 128], sizes = [8, 32], strides = [1, 1]} : vector<16x384xf32> to vector<8x32xf32>
    %240 = vector.extract_strided_slice %216 {offsets = [8, 160], sizes = [8, 32], strides = [1, 1]} : vector<16x384xf32> to vector<8x32xf32>
    %241 = vector.extract_strided_slice %216 {offsets = [8, 192], sizes = [8, 32], strides = [1, 1]} : vector<16x384xf32> to vector<8x32xf32>
    %242 = vector.extract_strided_slice %216 {offsets = [8, 224], sizes = [8, 32], strides = [1, 1]} : vector<16x384xf32> to vector<8x32xf32>
    %243 = vector.shape_cast %235 : vector<8x32xf32> to vector<1x8x32xf32>
    %244 = vector.shape_cast %236 : vector<8x32xf32> to vector<1x8x32xf32>
    %245 = vector.shape_cast %237 : vector<8x32xf32> to vector<1x8x32xf32>
    %246 = vector.shape_cast %238 : vector<8x32xf32> to vector<1x8x32xf32>
    %247 = vector.shape_cast %239 : vector<8x32xf32> to vector<1x8x32xf32>
    %248 = vector.shape_cast %240 : vector<8x32xf32> to vector<1x8x32xf32>
    %249 = vector.shape_cast %241 : vector<8x32xf32> to vector<1x8x32xf32>
    %250 = vector.shape_cast %242 : vector<8x32xf32> to vector<1x8x32xf32>
    %251 = tpu.concatenate %243, %244, %245, %246, %247, %248, %249, %250 in 0 : vector<1x8x32xf32>, vector<1x8x32xf32>, vector<1x8x32xf32>, vector<1x8x32xf32>, vector<1x8x32xf32>, vector<1x8x32xf32>, vector<1x8x32xf32>, vector<1x8x32xf32> -> vector<8x8x32xf32>
    %252 = arith.truncf %251 : vector<8x8x32xf32> to vector<8x8x32xbf16>
    %253 = vector.extract_strided_slice %216 {offsets = [0, 256], sizes = [8, 32], strides = [1, 1]} : vector<16x384xf32> to vector<8x32xf32>
    %254 = vector.extract_strided_slice %216 {offsets = [0, 288], sizes = [8, 32], strides = [1, 1]} : vector<16x384xf32> to vector<8x32xf32>
    %255 = vector.extract_strided_slice %216 {offsets = [0, 320], sizes = [8, 32], strides = [1, 1]} : vector<16x384xf32> to vector<8x32xf32>
    %256 = vector.extract_strided_slice %216 {offsets = [0, 352], sizes = [8, 32], strides = [1, 1]} : vector<16x384xf32> to vector<8x32xf32>
    %257 = vector.extract_strided_slice %216 {offsets = [8, 256], sizes = [8, 32], strides = [1, 1]} : vector<16x384xf32> to vector<8x32xf32>
    %258 = vector.extract_strided_slice %216 {offsets = [8, 288], sizes = [8, 32], strides = [1, 1]} : vector<16x384xf32> to vector<8x32xf32>
    %259 = vector.extract_strided_slice %216 {offsets = [8, 320], sizes = [8, 32], strides = [1, 1]} : vector<16x384xf32> to vector<8x32xf32>
    %260 = vector.extract_strided_slice %216 {offsets = [8, 352], sizes = [8, 32], strides = [1, 1]} : vector<16x384xf32> to vector<8x32xf32>
    %261 = vector.shape_cast %253 : vector<8x32xf32> to vector<1x8x32xf32>
    %262 = vector.shape_cast %254 : vector<8x32xf32> to vector<1x8x32xf32>
    %263 = vector.shape_cast %255 : vector<8x32xf32> to vector<1x8x32xf32>
    %264 = vector.shape_cast %256 : vector<8x32xf32> to vector<1x8x32xf32>
    %265 = vector.shape_cast %257 : vector<8x32xf32> to vector<1x8x32xf32>
    %266 = vector.shape_cast %258 : vector<8x32xf32> to vector<1x8x32xf32>
    %267 = vector.shape_cast %259 : vector<8x32xf32> to vector<1x8x32xf32>
    %268 = vector.shape_cast %260 : vector<8x32xf32> to vector<1x8x32xf32>
    %269 = tpu.concatenate %261, %262, %263, %264, %265, %266, %267, %268 in 0 : vector<1x8x32xf32>, vector<1x8x32xf32>, vector<1x8x32xf32>, vector<1x8x32xf32>, vector<1x8x32xf32>, vector<1x8x32xf32>, vector<1x8x32xf32>, vector<1x8x32xf32> -> vector<8x8x32xf32>
    %270 = arith.truncf %269 : vector<8x8x32xf32> to vector<8x8x32xbf16>
    "tpu.trace_start"() <{level = 10 : i32, message = "bqd,bkd->bqk"}> : () -> ()
    %cst_77 = arith.constant dense<0.000000e+00> : vector<8x8x8xf32>
    %271 = tpu.matmul %234, %252, %cst_77 {dimension_numbers = #tpu.dot_dimension_numbers<[2], [2], [1], [1], [0, 0, 0, 1, 1, 1], [0], [0]>} : vector<8x8x32xbf16>, vector<8x8x32xbf16>, vector<8x8x8xf32> -> vector<8x8x8xf32>
    "tpu.trace_stop"() : () -> ()
    %cst_78 = arith.constant 0.176776692 : f32
    %272 = vector.broadcast %cst_78 : f32 to vector<8x8x8xf32>
    %273 = arith.mulf %271, %272 : vector<8x8x8xf32>
    %274 = vector.broadcast %23 : vector<8x1x8xf32> to vector<8x8x8xf32>
    %275 = arith.addf %273, %274 : vector<8x8x8xf32>
    %cst_79 = arith.constant dense<0xFF800000> : vector<8x8xf32>
    %276 = vector.multi_reduction <maximumf>, %275, %cst_79 [2] : vector<8x8x8xf32> to vector<8x8xf32>
    %277 = vector.shape_cast %276 : vector<8x8xf32> to vector<8x8x1xf32>
    %278 = vector.broadcast %277 : vector<8x8x1xf32> to vector<8x8x8xf32>
    %279 = arith.subf %275, %278 : vector<8x8x8xf32>
    %280 = math.exp %279 : vector<8x8x8xf32>
    %cst_80 = arith.constant dense<0.000000e+00> : vector<8x8xf32>
    %281 = vector.multi_reduction <add>, %280, %cst_80 [2] : vector<8x8x8xf32> to vector<8x8xf32>
    %282 = vector.shape_cast %281 : vector<8x8xf32> to vector<8x8x1xf32>
    %283 = tpu.reciprocal %282 {approx = true} : vector<8x8x1xf32> -> vector<8x8x1xf32>
    %284 = vector.broadcast %283 : vector<8x8x1xf32> to vector<8x8x8xf32>
    %285 = arith.mulf %280, %284 : vector<8x8x8xf32>
    %286 = arith.truncf %285 : vector<8x8x8xf32> to vector<8x8x8xbf16>
    "tpu.trace_start"() <{level = 10 : i32, message = "bqk,bkd->bqd"}> : () -> ()
    %cst_81 = arith.constant dense<0.000000e+00> : vector<8x8x32xf32>
    %287 = tpu.matmul %286, %270, %cst_81 {dimension_numbers = #tpu.dot_dimension_numbers<[2], [1], [1], [2], [0, 0, 0, 1, 1, 2], [0], [0]>} : vector<8x8x8xbf16>, vector<8x8x32xbf16>, vector<8x8x32xf32> -> vector<8x8x32xf32>
    "tpu.trace_stop"() : () -> ()
    %288 = vector.extract_strided_slice %287 {offsets = [0, 0, 0], sizes = [1, 8, 32], strides = [1, 1, 1]} : vector<8x8x32xf32> to vector<1x8x32xf32>
    %289 = vector.shape_cast %288 : vector<1x8x32xf32> to vector<8x32xf32>
    %290 = vector.extract_strided_slice %287 {offsets = [1, 0, 0], sizes = [1, 8, 32], strides = [1, 1, 1]} : vector<8x8x32xf32> to vector<1x8x32xf32>
    %291 = vector.shape_cast %290 : vector<1x8x32xf32> to vector<8x32xf32>
    %292 = vector.extract_strided_slice %287 {offsets = [2, 0, 0], sizes = [1, 8, 32], strides = [1, 1, 1]} : vector<8x8x32xf32> to vector<1x8x32xf32>
    %293 = vector.shape_cast %292 : vector<1x8x32xf32> to vector<8x32xf32>
    %294 = vector.extract_strided_slice %287 {offsets = [3, 0, 0], sizes = [1, 8, 32], strides = [1, 1, 1]} : vector<8x8x32xf32> to vector<1x8x32xf32>
    %295 = vector.shape_cast %294 : vector<1x8x32xf32> to vector<8x32xf32>
    %296 = tpu.concatenate %289, %291, %293, %295 in 1 : vector<8x32xf32>, vector<8x32xf32>, vector<8x32xf32>, vector<8x32xf32> -> vector<8x128xf32>
    %297 = vector.extract_strided_slice %287 {offsets = [4, 0, 0], sizes = [1, 8, 32], strides = [1, 1, 1]} : vector<8x8x32xf32> to vector<1x8x32xf32>
    %298 = vector.shape_cast %297 : vector<1x8x32xf32> to vector<8x32xf32>
    %299 = vector.extract_strided_slice %287 {offsets = [5, 0, 0], sizes = [1, 8, 32], strides = [1, 1, 1]} : vector<8x8x32xf32> to vector<1x8x32xf32>
    %300 = vector.shape_cast %299 : vector<1x8x32xf32> to vector<8x32xf32>
    %301 = vector.extract_strided_slice %287 {offsets = [6, 0, 0], sizes = [1, 8, 32], strides = [1, 1, 1]} : vector<8x8x32xf32> to vector<1x8x32xf32>
    %302 = vector.shape_cast %301 : vector<1x8x32xf32> to vector<8x32xf32>
    %303 = vector.extract_strided_slice %287 {offsets = [7, 0, 0], sizes = [1, 8, 32], strides = [1, 1, 1]} : vector<8x8x32xf32> to vector<1x8x32xf32>
    %304 = vector.shape_cast %303 : vector<1x8x32xf32> to vector<8x32xf32>
    %305 = tpu.concatenate %298, %300, %302, %304 in 1 : vector<8x32xf32>, vector<8x32xf32>, vector<8x32xf32>, vector<8x32xf32> -> vector<8x128xf32>
    %306 = tpu.concatenate %296, %305 in 0 : vector<8x128xf32>, vector<8x128xf32> -> vector<16x128xf32>
    %c1_82 = arith.constant 1 : index
    %c0_83 = arith.constant 0 : index
    %c0_84 = arith.constant 0 : index
    %307 = vector.load %arg7[%c1_82, %c0_83, %c0_84] : memref<2x128x128xbf16, #tpu.memory_space<vmem>>, vector<1x128x128xbf16>
    %308 = vector.shape_cast %307 : vector<1x128x128xbf16> to vector<128x128xbf16>
    %c1_85 = arith.constant 1 : index
    %c0_86 = arith.constant 0 : index
    %c0_87 = arith.constant 0 : index
    %309 = vector.load %arg8[%c1_85, %c0_86, %c0_87] : memref<2x1x128xf32, #tpu.memory_space<vmem>>, vector<1x1x128xf32>
    %310 = vector.shape_cast %309 : vector<1x1x128xf32> to vector<1x128xf32>
    %311 = arith.truncf %306 : vector<16x128xf32> to vector<16x128xbf16>
    %cst_88 = arith.constant dense<0.000000e+00> : vector<16x128xf32>
    %312 = tpu.matmul %311, %308, %cst_88 {dimension_numbers = #tpu.dot_dimension_numbers<[1], [0], [0], [1], [0, 0, 1, 1], [], []>} : vector<16x128xbf16>, vector<128x128xbf16>, vector<16x128xf32> -> vector<16x128xf32>
    %313 = vector.broadcast %310 : vector<1x128xf32> to vector<16x128xf32>
    %314 = arith.addf %312, %313 : vector<16x128xf32>
    %315 = arith.addf %314, %208 : vector<16x128xf32>
    %c1_89 = arith.constant 1 : index
    %c0_90 = arith.constant 0 : index
    %c0_91 = arith.constant 0 : index
    %316 = vector.load %arg9[%c1_89, %c0_90, %c0_91] : memref<2x1x128xf32, #tpu.memory_space<vmem>>, vector<1x1x128xf32>
    %317 = vector.shape_cast %316 : vector<1x1x128xf32> to vector<1x128xf32>
    %c1_92 = arith.constant 1 : index
    %c0_93 = arith.constant 0 : index
    %c0_94 = arith.constant 0 : index
    %318 = vector.load %arg10[%c1_92, %c0_93, %c0_94] : memref<2x1x128xf32, #tpu.memory_space<vmem>>, vector<1x1x128xf32>
    %319 = vector.shape_cast %318 : vector<1x1x128xf32> to vector<1x128xf32>
    %cst_95 = arith.constant dense<0.000000e+00> : vector<16xf32>
    %320 = vector.multi_reduction <add>, %315, %cst_95 [1] : vector<16x128xf32> to vector<16xf32>
    %321 = vector.shape_cast %320 : vector<16xf32> to vector<16x1xf32>
    %cst_96 = arith.constant 1.280000e+02 : f32
    %322 = vector.broadcast %cst_96 : f32 to vector<16x1xf32>
    %323 = arith.divf %321, %322 : vector<16x1xf32>
    %324 = vector.broadcast %323 : vector<16x1xf32> to vector<16x128xf32>
    %325 = arith.subf %315, %324 : vector<16x128xf32>
    %326 = arith.mulf %325, %325 : vector<16x128xf32>
    %cst_97 = arith.constant dense<0.000000e+00> : vector<16xf32>
    %327 = vector.multi_reduction <add>, %326, %cst_97 [1] : vector<16x128xf32> to vector<16xf32>
    %328 = vector.shape_cast %327 : vector<16xf32> to vector<16x1xf32>
    %cst_98 = arith.constant 1.280000e+02 : f32
    %329 = vector.broadcast %cst_98 : f32 to vector<16x1xf32>
    %330 = arith.divf %328, %329 : vector<16x1xf32>
    %cst_99 = arith.constant 9.99999996E-13 : f32
    %331 = vector.broadcast %cst_99 : f32 to vector<16x1xf32>
    %332 = arith.addf %330, %331 : vector<16x1xf32>
    %333 = math.rsqrt %332 : vector<16x1xf32>
    %334 = vector.broadcast %333 : vector<16x1xf32> to vector<16x128xf32>
    %335 = arith.mulf %325, %334 : vector<16x128xf32>
    %336 = vector.broadcast %317 : vector<1x128xf32> to vector<16x128xf32>
    %337 = arith.mulf %335, %336 : vector<16x128xf32>
    %338 = vector.broadcast %319 : vector<1x128xf32> to vector<16x128xf32>
    %339 = arith.addf %337, %338 : vector<16x128xf32>
    %c1_100 = arith.constant 1 : index
    %c0_101 = arith.constant 0 : index
    %c0_102 = arith.constant 0 : index
    %340 = vector.load %arg11[%c1_100, %c0_101, %c0_102] : memref<2x128x256xbf16, #tpu.memory_space<vmem>>, vector<1x128x256xbf16>
    %341 = vector.shape_cast %340 : vector<1x128x256xbf16> to vector<128x256xbf16>
    %c1_103 = arith.constant 1 : index
    %c0_104 = arith.constant 0 : index
    %c0_105 = arith.constant 0 : index
    %342 = vector.load %arg12[%c1_103, %c0_104, %c0_105] : memref<2x1x256xf32, #tpu.memory_space<vmem>>, vector<1x1x256xf32>
    %343 = vector.shape_cast %342 : vector<1x1x256xf32> to vector<1x256xf32>
    %344 = arith.truncf %339 : vector<16x128xf32> to vector<16x128xbf16>
    %cst_106 = arith.constant dense<0.000000e+00> : vector<16x256xf32>
    %345 = tpu.matmul %344, %341, %cst_106 {dimension_numbers = #tpu.dot_dimension_numbers<[1], [0], [0], [1], [0, 0, 1, 1], [], []>} : vector<16x128xbf16>, vector<128x256xbf16>, vector<16x256xf32> -> vector<16x256xf32>
    %346 = vector.broadcast %343 : vector<1x256xf32> to vector<16x256xf32>
    %347 = arith.addf %345, %346 : vector<16x256xf32>
    %cst_107 = arith.constant 5.000000e-01 : f32
    %348 = vector.broadcast %cst_107 : f32 to vector<16x256xf32>
    %349 = arith.mulf %348, %347 : vector<16x256xf32>
    %cst_108 = arith.constant 4.471500e-02 : f32
    %350 = vector.broadcast %cst_108 : f32 to vector<16x256xf32>
    %351 = arith.mulf %350, %347 : vector<16x256xf32>
    %352 = arith.mulf %351, %347 : vector<16x256xf32>
    %353 = arith.mulf %352, %347 : vector<16x256xf32>
    %354 = arith.addf %347, %353 : vector<16x256xf32>
    %cst_109 = arith.constant 0.797884583 : f32
    %355 = vector.broadcast %cst_109 : f32 to vector<16x256xf32>
    %356 = arith.mulf %355, %354 : vector<16x256xf32>
    %357 = math.tanh %356 : vector<16x256xf32>
    %cst_110 = arith.constant 1.000000e+00 : f32
    %358 = vector.broadcast %cst_110 : f32 to vector<16x256xf32>
    %359 = arith.addf %358, %357 : vector<16x256xf32>
    %360 = arith.mulf %349, %359 : vector<16x256xf32>
    %c1_111 = arith.constant 1 : index
    %c0_112 = arith.constant 0 : index
    %c0_113 = arith.constant 0 : index
    %361 = vector.load %arg13[%c1_111, %c0_112, %c0_113] : memref<2x256x128xbf16, #tpu.memory_space<vmem>>, vector<1x256x128xbf16>
    %362 = vector.shape_cast %361 : vector<1x256x128xbf16> to vector<256x128xbf16>
    %c1_114 = arith.constant 1 : index
    %c0_115 = arith.constant 0 : index
    %c0_116 = arith.constant 0 : index
    %363 = vector.load %arg14[%c1_114, %c0_115, %c0_116] : memref<2x1x128xf32, #tpu.memory_space<vmem>>, vector<1x1x128xf32>
    %364 = vector.shape_cast %363 : vector<1x1x128xf32> to vector<1x128xf32>
    %365 = arith.truncf %360 : vector<16x256xf32> to vector<16x256xbf16>
    %cst_117 = arith.constant dense<0.000000e+00> : vector<16x128xf32>
    %366 = tpu.matmul %365, %362, %cst_117 {dimension_numbers = #tpu.dot_dimension_numbers<[1], [0], [0], [1], [0, 0, 1, 1], [], []>} : vector<16x256xbf16>, vector<256x128xbf16>, vector<16x128xf32> -> vector<16x128xf32>
    %367 = vector.broadcast %364 : vector<1x128xf32> to vector<16x128xf32>
    %368 = arith.addf %366, %367 : vector<16x128xf32>
    %369 = arith.addf %368, %339 : vector<16x128xf32>
    %c1_118 = arith.constant 1 : index
    %c0_119 = arith.constant 0 : index
    %c0_120 = arith.constant 0 : index
    %370 = vector.load %arg15[%c1_118, %c0_119, %c0_120] : memref<2x1x128xf32, #tpu.memory_space<vmem>>, vector<1x1x128xf32>
    %371 = vector.shape_cast %370 : vector<1x1x128xf32> to vector<1x128xf32>
    %c1_121 = arith.constant 1 : index
    %c0_122 = arith.constant 0 : index
    %c0_123 = arith.constant 0 : index
    %372 = vector.load %arg16[%c1_121, %c0_122, %c0_123] : memref<2x1x128xf32, #tpu.memory_space<vmem>>, vector<1x1x128xf32>
    %373 = vector.shape_cast %372 : vector<1x1x128xf32> to vector<1x128xf32>
    %cst_124 = arith.constant dense<0.000000e+00> : vector<16xf32>
    %374 = vector.multi_reduction <add>, %369, %cst_124 [1] : vector<16x128xf32> to vector<16xf32>
    %375 = vector.shape_cast %374 : vector<16xf32> to vector<16x1xf32>
    %cst_125 = arith.constant 1.280000e+02 : f32
    %376 = vector.broadcast %cst_125 : f32 to vector<16x1xf32>
    %377 = arith.divf %375, %376 : vector<16x1xf32>
    %378 = vector.broadcast %377 : vector<16x1xf32> to vector<16x128xf32>
    %379 = arith.subf %369, %378 : vector<16x128xf32>
    %380 = arith.mulf %379, %379 : vector<16x128xf32>
    %cst_126 = arith.constant dense<0.000000e+00> : vector<16xf32>
    %381 = vector.multi_reduction <add>, %380, %cst_126 [1] : vector<16x128xf32> to vector<16xf32>
    %382 = vector.shape_cast %381 : vector<16xf32> to vector<16x1xf32>
    %cst_127 = arith.constant 1.280000e+02 : f32
    %383 = vector.broadcast %cst_127 : f32 to vector<16x1xf32>
    %384 = arith.divf %382, %383 : vector<16x1xf32>
    %cst_128 = arith.constant 9.99999996E-13 : f32
    %385 = vector.broadcast %cst_128 : f32 to vector<16x1xf32>
    %386 = arith.addf %384, %385 : vector<16x1xf32>
    %387 = math.rsqrt %386 : vector<16x1xf32>
    %388 = vector.broadcast %387 : vector<16x1xf32> to vector<16x128xf32>
    %389 = arith.mulf %379, %388 : vector<16x128xf32>
    %390 = vector.broadcast %371 : vector<1x128xf32> to vector<16x128xf32>
    %391 = arith.mulf %389, %390 : vector<16x128xf32>
    %392 = vector.broadcast %373 : vector<1x128xf32> to vector<16x128xf32>
    %393 = arith.addf %391, %392 : vector<16x128xf32>
    %394 = vector.extract_strided_slice %393 {offsets = [0, 0], sizes = [1, 128], strides = [1, 1]} : vector<16x128xf32> to vector<1x128xf32>
    %395 = vector.extract_strided_slice %393 {offsets = [8, 0], sizes = [1, 128], strides = [1, 1]} : vector<16x128xf32> to vector<1x128xf32>
    %396 = tpu.concatenate %394, %395 in 0 : vector<1x128xf32>, vector<1x128xf32> -> vector<2x128xf32>
    %c0_129 = arith.constant 0 : index
    %c0_130 = arith.constant 0 : index
    %397 = vector.load %arg17[%c0_129, %c0_130] : memref<128x128xbf16, #tpu.memory_space<vmem>>, vector<128x128xbf16>
    %c0_131 = arith.constant 0 : index
    %c0_132 = arith.constant 0 : index
    %398 = vector.load %arg18[%c0_131, %c0_132] : memref<1x128xf32, #tpu.memory_space<vmem>>, vector<1x128xf32>
    %399 = arith.truncf %396 : vector<2x128xf32> to vector<2x128xbf16>
    %cst_133 = arith.constant dense<0.000000e+00> : vector<2x128xf32>
    %400 = tpu.matmul %399, %397, %cst_133 {dimension_numbers = #tpu.dot_dimension_numbers<[1], [0], [0], [1], [0, 0, 1, 1], [], []>} : vector<2x128xbf16>, vector<128x128xbf16>, vector<2x128xf32> -> vector<2x128xf32>
    %401 = vector.broadcast %398 : vector<1x128xf32> to vector<2x128xf32>
    %402 = arith.addf %400, %401 : vector<2x128xf32>
    %403 = math.tanh %402 : vector<2x128xf32>
    %c0_134 = arith.constant 0 : index
    %c0_135 = arith.constant 0 : index
    %404 = vector.load %arg19[%c0_134, %c0_135] : memref<1x128xf32, #tpu.memory_space<vmem>>, vector<1x128xf32>
    %405 = vector.broadcast %404 : vector<1x128xf32> to vector<2x128xf32>
    %406 = arith.mulf %403, %405 : vector<2x128xf32>
    %cst_136 = arith.constant dense<0.000000e+00> : vector<2xf32>
    %407 = vector.multi_reduction <add>, %406, %cst_136 [1] : vector<2x128xf32> to vector<2xf32>
    %408 = vector.shape_cast %407 : vector<2xf32> to vector<2x1xf32>
    %c0_137 = arith.constant 0 : index
    %c0_138 = arith.constant 0 : index
    %409 = vector.load %arg20[%c0_137, %c0_138] : memref<1x1xf32, #tpu.memory_space<vmem>>, vector<1x1xf32>
    %410 = vector.broadcast %409 : vector<1x1xf32> to vector<2x1xf32>
    %411 = arith.addf %408, %410 : vector<2x1xf32>
    %c0_139 = arith.constant 0 : index
    %c0_140 = arith.constant 0 : index
    %412 = vector.load %arg21[%c0_139, %c0_140] : memref<2x1xf32, #tpu.memory_space<vmem>>, vector<2x1xf32>
    tpu.vector_store %arg21[%c0_139, %c0_140], %411 {strides = array<i32>} : memref<2x1xf32, #tpu.memory_space<vmem>>, vector<2x1xf32>,
    return
  }
  func.func @transform_0(%arg0: i32) -> (i32, i32) {
    %c0_i32 = arith.constant 0 : i32
    %c0_i32_0 = arith.constant 0 : i32
    %c0_i32_1 = arith.constant 0 : i32
    return %c0_i32, %c0_i32_0 : i32, i32
  }
  func.func @transform_1(%arg0: i32) -> (i32, i32, i32) {
    %c0_i32 = arith.constant 0 : i32
    %c0_i32_0 = arith.constant 0 : i32
    %c0_i32_1 = arith.constant 0 : i32
    %c0_i32_2 = arith.constant 0 : i32
    return %c0_i32, %c0_i32_0, %c0_i32_1 : i32, i32, i32
  }
  func.func @transform_2(%arg0: i32) -> (i32, i32) {
    %c0_i32 = arith.constant 0 : i32
    %c0_i32_0 = arith.constant 0 : i32
    %c0_i32_1 = arith.constant 0 : i32
    return %c0_i32, %c0_i32_0 : i32, i32
  }
  func.func @transform_3(%arg0: i32) -> (i32, i32) {
    %c0_i32 = arith.constant 0 : i32
    %c0_i32_0 = arith.constant 0 : i32
    %c0_i32_1 = arith.constant 0 : i32
    return %c0_i32, %c0_i32_0 : i32, i32
  }
  func.func @transform_4(%arg0: i32) -> (i32, i32, i32) {
    %c0_i32 = arith.constant 0 : i32
    %c0_i32_0 = arith.constant 0 : i32
    %c0_i32_1 = arith.constant 0 : i32
    %c0_i32_2 = arith.constant 0 : i32
    return %c0_i32, %c0_i32_0, %c0_i32_1 : i32, i32, i32
  }
  func.func @transform_5(%arg0: i32) -> (i32, i32, i32) {
    %c0_i32 = arith.constant 0 : i32
    %c0_i32_0 = arith.constant 0 : i32
    %c0_i32_1 = arith.constant 0 : i32
    %c0_i32_2 = arith.constant 0 : i32
    return %c0_i32, %c0_i32_0, %c0_i32_1 : i32, i32, i32
  }
  func.func @transform_6(%arg0: i32) -> (i32, i32, i32) {
    %c0_i32 = arith.constant 0 : i32
    %c0_i32_0 = arith.constant 0 : i32
    %c0_i32_1 = arith.constant 0 : i32
    %c0_i32_2 = arith.constant 0 : i32
    return %c0_i32, %c0_i32_0, %c0_i32_1 : i32, i32, i32
  }
  func.func @transform_7(%arg0: i32) -> (i32, i32, i32) {
    %c0_i32 = arith.constant 0 : i32
    %c0_i32_0 = arith.constant 0 : i32
    %c0_i32_1 = arith.constant 0 : i32
    %c0_i32_2 = arith.constant 0 : i32
    return %c0_i32, %c0_i32_0, %c0_i32_1 : i32, i32, i32
  }
  func.func @transform_8(%arg0: i32) -> (i32, i32, i32) {
    %c0_i32 = arith.constant 0 : i32
    %c0_i32_0 = arith.constant 0 : i32
    %c0_i32_1 = arith.constant 0 : i32
    %c0_i32_2 = arith.constant 0 : i32
    return %c0_i32, %c0_i32_0, %c0_i32_1 : i32, i32, i32
  }
  func.func @transform_9(%arg0: i32) -> (i32, i32, i32) {
    %c0_i32 = arith.constant 0 : i32
    %c0_i32_0 = arith.constant 0 : i32
    %c0_i32_1 = arith.constant 0 : i32
    %c0_i32_2 = arith.constant 0 : i32
    return %c0_i32, %c0_i32_0, %c0_i32_1 : i32, i32, i32
  }
  func.func @transform_10(%arg0: i32) -> (i32, i32, i32) {
    %c0_i32 = arith.constant 0 : i32
    %c0_i32_0 = arith.constant 0 : i32
    %c0_i32_1 = arith.constant 0 : i32
    %c0_i32_2 = arith.constant 0 : i32
    return %c0_i32, %c0_i32_0, %c0_i32_1 : i32, i32, i32
  }
  func.func @transform_11(%arg0: i32) -> (i32, i32, i32) {
    %c0_i32 = arith.constant 0 : i32
    %c0_i32_0 = arith.constant 0 : i32
    %c0_i32_1 = arith.constant 0 : i32
    %c0_i32_2 = arith.constant 0 : i32
    return %c0_i32, %c0_i32_0, %c0_i32_1 : i32, i32, i32
  }
  func.func @transform_12(%arg0: i32) -> (i32, i32, i32) {
    %c0_i32 = arith.constant 0 : i32
    %c0_i32_0 = arith.constant 0 : i32
    %c0_i32_1 = arith.constant 0 : i32
    %c0_i32_2 = arith.constant 0 : i32
    return %c0_i32, %c0_i32_0, %c0_i32_1 : i32, i32, i32
  }
  func.func @transform_13(%arg0: i32) -> (i32, i32, i32) {
    %c0_i32 = arith.constant 0 : i32
    %c0_i32_0 = arith.constant 0 : i32
    %c0_i32_1 = arith.constant 0 : i32
    %c0_i32_2 = arith.constant 0 : i32
    return %c0_i32, %c0_i32_0, %c0_i32_1 : i32, i32, i32
  }
  func.func @transform_14(%arg0: i32) -> (i32, i32, i32) {
    %c0_i32 = arith.constant 0 : i32
    %c0_i32_0 = arith.constant 0 : i32
    %c0_i32_1 = arith.constant 0 : i32
    %c0_i32_2 = arith.constant 0 : i32
    return %c0_i32, %c0_i32_0, %c0_i32_1 : i32, i32, i32
  }
  func.func @transform_15(%arg0: i32) -> (i32, i32, i32) {
    %c0_i32 = arith.constant 0 : i32
    %c0_i32_0 = arith.constant 0 : i32
    %c0_i32_1 = arith.constant 0 : i32
    %c0_i32_2 = arith.constant 0 : i32
    return %c0_i32, %c0_i32_0, %c0_i32_1 : i32, i32, i32
  }
  func.func @transform_16(%arg0: i32) -> (i32, i32) {
    %c0_i32 = arith.constant 0 : i32
    %c0_i32_0 = arith.constant 0 : i32
    %c0_i32_1 = arith.constant 0 : i32
    return %c0_i32, %c0_i32_0 : i32, i32
  }
  func.func @transform_17(%arg0: i32) -> (i32, i32) {
    %c0_i32 = arith.constant 0 : i32
    %c0_i32_0 = arith.constant 0 : i32
    %c0_i32_1 = arith.constant 0 : i32
    return %c0_i32, %c0_i32_0 : i32, i32
  }
  func.func @transform_18(%arg0: i32) -> (i32, i32) {
    %c0_i32 = arith.constant 0 : i32
    %c0_i32_0 = arith.constant 0 : i32
    %c0_i32_1 = arith.constant 0 : i32
    return %c0_i32, %c0_i32_0 : i32, i32
  }
  func.func @transform_19(%arg0: i32) -> (i32, i32) {
    %c0_i32 = arith.constant 0 : i32
    %c0_i32_0 = arith.constant 0 : i32
    %c0_i32_1 = arith.constant 0 : i32
    return %c0_i32, %c0_i32_0 : i32, i32
  }
  func.func @transform_20(%arg0: i32) -> (i32, i32) {
    %c0_i32 = arith.constant 0 : i32
    %c0_i32_0 = arith.constant 0 : i32
    %c0_i32_1 = arith.constant 0 : i32
    return %c0_i32, %c0_i32_0 : i32, i32
  }
}

</mosaic_0001>

<bundles_post_ra>
// kernel: bert_base_uncased_forward.1
= control target key start
LH: loop header
LB: loop body
LE: loop exit
PB: predicated region body
PF: predicated region fallthrough
CT: control target
= control target key end

     0   :  { %s5870_s0 = inlined_call_operand.vmem [shape: f32[16,128], index: 0, kind: input, shape index: {}]   ;;  %s5871_s1 = inlined_call_operand.vmem [shape: f32[8,1,8], index: 1, kind: input, shape index: {}]   ;;  %s5872_s2 = inlined_call_operand.vmem [shape: f32[1,128], index: 2, kind: input, shape index: {}]   ;;  %s5873_s3 = inlined_call_operand.vmem [shape: f32[1,128], index: 3, kind: input, shape index: {}]   ;;  %s5874_s4 = inlined_call_operand.hbm [shape: bf16[2,128,384], index: 4, kind: input, shape index: {}]   ;;  %s5875_s5 = inlined_call_operand.vmem [shape: f32[2,1,384], index: 5, kind: input, shape index: {}]   ;;  %s5876_s6 = inlined_call_operand.vmem [shape: bf16[2,128,128], index: 6, kind: input, shape index: {}]   ;;  %s5877_s7 = inlined_call_operand.vmem [shape: f32[2,1,128], index: 7, kind: input, shape index: {}]   ;;  %s5878_s8 = inlined_call_operand.vmem [shape: f32[2,1,128], index: 8, kind: input, shape index: {}]   ;;  %s5879_s9 = inlined_call_operand.vmem [shape: f32[2,1,128], index: 9, kind: input, shape index: {}]   ;;  %s5880_s10 = inlined_call_operand.vmem [shape: bf16[2,128,256], index: 10, kind: input, shape index: {}]   ;;  %s5881_s11 = inlined_call_operand.vmem [shape: f32[2,1,256], index: 11, kind: input, shape index: {}]   ;;  %s5882_s12 = inlined_call_operand.hbm [shape: bf16[2,256,128], index: 12, kind: input, shape index: {}]   ;;  %s5883_s13 = inlined_call_operand.vmem [shape: f32[2,1,128], index: 13, kind: input, shape index: {}]   ;;  %s5884_s14 = inlined_call_operand.vmem [shape: f32[2,1,128], index: 14, kind: input, shape index: {}]   ;;  %s5885_s15 = inlined_call_operand.vmem [shape: f32[2,1,128], index: 15, kind: input, shape index: {}]   ;;  %s5886_s16 = inlined_call_operand.vmem [shape: bf16[128,128], index: 16, kind: input, shape index: {}]   ;;  %s5887_s17 = inlined_call_operand.vmem [shape: f32[1,128], index: 17, kind: input, shape index: {}]   ;;  %s5888_s18 = inlined_call_operand.vmem [shape: f32[1,128], index: 18, kind: input, shape index: {}]   ;;  %s5889_s19 = inlined_call_operand.<no memory space> [shape: f32[1,1], index: 19, kind: input, shape index: {}]   ;;  %s5890_s20 = inlined_call_operand.vmem [shape: f32[2,1], index: 20, kind: output, shape index: {}]  }
   0x1   :  { %5893 = sst [smem:[#allocation9_spill]] %s5870_s0  ;;  %v25_v0 = vstv %s5889_s19 }
   0x2   :  { %5894 = sst [smem:[#allocation10_spill]] %s5871_s1  ;;  %26 = vst [vmem:[#allocation2] sm:$0x1] %v25_v0 }
   0x3   :  { %5895 = sst [smem:[#allocation11_spill]] %s5872_s2 }
   0x4   :  { %5896 = sst [smem:[#allocation12_spill]] %s5873_s3 }
   0x5   :  { %5897 = sst [smem:[#allocation13_spill]] %s5874_s4 }
   0x6   :  { %27 = vsyncpa [#allocation4], 0 }
   0x7   :  { %28 = vsyncpa [#allocation6], 0  ;;  %s4973_s23 = smov [#allocation3]  }
   0x8   :  { %s42_s24 = sshll.u32 %s4973_s23, 4  ;;  %s43_s24 = int_to_ptr.vmem [resolvable:$true] %s42_s24 }
   0x9   :  { %s4937_s2 = scalar_lea.vmem %s43_s24, 6144  ;;  %p4942_p1 = scmp.lt.s32.totalorder %s43_s24, %s43_s24 }
   0xa   :  { %p4938_p0 = scmp.ne.s32.totalorder %s43_s24, %s4937_s2  ;;  %p4943_p2 = scmp.lt.s32.totalorder %s4937_s2, %s4937_s2 }
   0xc   :  { %p4944_p3 = por %p4943_p2, %p4942_p1 }
   0xe   :  { %p4945_p4 = pnand %p4944_p3, %p4938_p0 }
  0x10   :  { %4948 = shalt.err (!%p4945_p4)
}
  0x11   :  { %s4974_s25 = smov 192   ;;  %s4975_s3 = smov 12  }
  0x12   :  { %s5898_s28 = sld [smem:[#allocation13_spill]]  ;;  %s4976_s19 = smov [#allocation5]  }
  0x13   :  { %s68_s4 = sshll.u32 %s4976_s19, 4  ;;  %s69_s4 = int_to_ptr.vmem [resolvable:$true] %s68_s4 }
  0x14   :  { %s4957_s29 = scalar_lea.vmem %s69_s4, 4096  ;;  %p4962_p6 = scmp.lt.s32.totalorder %s69_s4, %s69_s4 }
  0x15   :  { %p4958_p5 = scmp.ne.s32.totalorder %s69_s4, %s4957_s29  ;;  %p4963_p7 = scmp.lt.s32.totalorder %s4957_s29, %s4957_s29 }
  0x17   :  { %p4964_p8 = por %p4963_p7, %p4962_p6 }
  0x18   :  { %48 = dma.hbm_to_vmem [thread:$0]  %s5898_s28, 6144, %s43_s24, [#allocation4], %s4974_s25, %s4974_s25, %s4975_s3  }
  0x19   :  { %p4965_p9 = pnand %p4964_p8, %p4958_p5 }
  0x1b   :  { %4968 = shalt.err (!%p4965_p9)
}
  0x1c   :  { %s4977_s30 = smov 64   ;;  %s4978_s0 = smov 4  }
  0x1d   :  { %74 = dma.hbm_to_vmem [thread:$0]  %s5882_s12, 4096, %s69_s4, [#allocation6], %s4977_s30, %s4977_s30, %s4978_s0  }
  0x1e   :  { %4969 = dma.done.wait [#allocation4], 6144  }
  0x1f   :  { %4970 = vsyncadd [#allocation4], 4294961152 }
  0x20   :  { %4971 = dma.done.wait [#allocation6], 4096  }
  0x21   :  { %4972 = vsyncadd [#allocation6], 4294963200  ;;  %s5899_s24 = sld [smem:[#allocation9_spill]]  ;;  %v4651_v3 = vld [vmem:[#allocation3 + $0xac] ss:$12 sps:$4 sm:$0xff]   ;;  %v4979_v5 = vmov 0.0   ;;  %v182_v54 = vlaneseq }
  0x22   :  { %v4653_v4 = vld [vmem:[#allocation3 + $0xa8] ss:$12 sps:$4 sm:$0xff]   ;;  %4318 = vmatprep.subr.bf16.mxu1 %v4979_v5  ;;  %v4654_v6 = vld [vmem:[#allocation3 + $0xb0] ss:$12 sps:$4 sm:$0xff]   ;;  %325 = vmatprep.subr.bf16.mxu0 %v4651_v3  ;;  %v4658_v17 = vld [vmem:[#allocation3 + $0x98] ss:$12 sps:$4 sm:$0xff]  }
  0x23   :  { %326 = vmatpush1.bf16.msra.mxu0 %v4653_v4  ;;  %4319 = vmatpush3.bf16.msra.mxu1 %v4654_v6  ;;  %v4655_v15 = vld [vmem:[#allocation3 + $0x94] ss:$12 sps:$4 sm:$0xff]   ;;  %v4657_v16 = vld [vmem:[#allocation3 + $0x90] ss:$12 sps:$4 sm:$0xff]   ;;  %v4661_v19 = vld [vmem:[#allocation3 + $0x78] ss:$12 sps:$4 sm:$0xff]  }
  0x24   :  { %4320 = vmatprep.subr.bf16.mxu1 %v4979_v5  ;;  %327 = vmatprep.subr.bf16.mxu0 %v4655_v15  ;;  %v4659_v18 = vld [vmem:[#allocation3 + $0x7c] ss:$12 sps:$4 sm:$0xff]   ;;  %v4662_v20 = vld [vmem:[#allocation3 + $0x80] ss:$12 sps:$4 sm:$0xff]   ;;  %v4663_v21 = vld [vmem:[#allocation3 + $0x64] ss:$12 sps:$4 sm:$0xff]  }
  0x25   :  { %v4665_v22 = vld [vmem:[#allocation3 + $0x60] ss:$12 sps:$4 sm:$0xff]   ;;  %v4666_v23 = vld [vmem:[#allocation3 + $0x68] ss:$12 sps:$4 sm:$0xff]   ;;  %v4670_v26 = vld [vmem:[#allocation3 + $0x50] ss:$12 sps:$4 sm:$0xff]  }
  0x26   :  { %v4667_v24 = vld [vmem:[#allocation3 + $0x4c] ss:$12 sps:$4 sm:$0xff]   ;;  %v4669_v25 = vld [vmem:[#allocation3 + $0x48] ss:$12 sps:$4 sm:$0xff]   ;;  %v4980_v28 = vmov 0   ;;  %vm4981_vm0 = vmmov 0  }
  0x27   :  { %v96_v1 = vld [vmem:[%s5899_s24] sm:$0xff]  ;;  %v97_v2 = vld [vmem:[%s5899_s24 + $0x8] sm:$0xff]  ;;  %328 = vmatpush1.bf16.msra.mxu0 %v4657_v16  ;;  %4321 = vmatpush3.bf16.msra.mxu1 %v4658_v17  ;;  %s5900_s26 = sld [smem:[#allocation11_spill]]  ;;  %v5145_v55 = vshrl.u32 %v182_v54, 7  ;;  %s4982_s0 = smov 96   ;;  %vm493_vm1 = vcmask 261120  }
  0x28   :  { %100 = vadd.xlane.f32.xlu0 %v96_v1  ;;  %4322 = vmatprep.subr.bf16.mxu1 %v4979_v5  ;;  %v4671_v27 = vld [vmem:[#allocation3 + $0x34] ss:$12 sps:$4 sm:$0xff]   ;;  %v4673_v29 = vld [vmem:[#allocation3 + $0x30] ss:$12 sps:$4 sm:$0xff]   ;;  %v4674_v30 = vld [vmem:[#allocation3 + $0x38] ss:$12 sps:$4 sm:$0xff]  }
  0x29   :  { %329 = vmatprep.subr.bf16.mxu0 %v4659_v18  ;;  %357 = vmatprep.mubr.bf16.mxu0 %v4980_v28  ;;  %v4675_v31 = vld [vmem:[#allocation3 + $0x1c] ss:$12 sps:$4 sm:$0xff]   ;;  %v4677_v32 = vld [vmem:[#allocation3 + $0x18] ss:$12 sps:$4 sm:$0xff]   ;;  %v4678_v33 = vld [vmem:[#allocation3 + $0x20] ss:$12 sps:$4 sm:$0xff]  }
  0x2a   :  { %4334 = vmatprep.mubr.msk.bf16.mxu1 %vm4981_vm0, %v4979_v5  ;;  %v4679_v34 = vld [vmem:[#allocation3 + $0x4] ss:$12 sps:$4 sm:$0xff]   ;;  %v4681_v35 = vld [vmem:[#allocation3] ss:$12 sps:$4 sm:$0xff]   ;;  %v4682_v36 = vld [vmem:[#allocation3 + $0x8] ss:$12 sps:$4 sm:$0xff]  }
  0x2b   :  { %330 = vmatpush1.bf16.msra.mxu0 %v4661_v19  ;;  %4323 = vmatpush3.bf16.msra.mxu1 %v4662_v20  ;;  %s5901_s19 = sld [smem:[#allocation12_spill]]  ;;  %v5148_v56 = vsub.s32 0, %v5145_v55  ;;  %v179_v57 = vld [vmem:[%s5875_s5] sm:$0x7]  ;;  %v5154_v58 = vsub.s32 1, %v5145_v55  ;;  %v192_v60 = vsub.s32 2, %v5145_v55 }
  0x2c   :  { %102 = vadd.xlane.f32.xlu0 %v97_v2  ;;  %4324 = vmatprep.subr.bf16.mxu1 %v4979_v5  ;;  %s4983_s21 = smov 32   ;;  %vm1026_vm2 = vcmask 1043456   ;;  %s5902_s23 = sld [smem:[#allocation10_spill]]  ;;  %vm926_vm3 = vcmask 64512   ;;  %vm1405_vm4 = vcmask 523264   ;;  %vm1407_vm5 = vcmask 785408  }
  0x2d   :  { %331 = vmatprep.subr.bf16.mxu0 %v4663_v21  ;;  %v3932_v45 = vld [vmem:[%s5900_s26] ss:$0 sm:$0xff]  ;;  %v185_v59 = vrot.slane %v179_v57, %v5148_v56  ;;  %v189_v61 = vrot.slane %v179_v57, %v5154_v58  ;;  %v5163_v3 = vrot.slane %v179_v57, %v192_v60  ;;  %vm3789_vm6 = vcmask 1040384  }
  0x2e   :  { %vm3912_vm7 = vcmask 1041408   ;;  %vm3924_vm8 = vcmask 1024  }
  0x2f   :  { %332 = vmatpush1.bf16.msra.mxu0 %v4665_v22  ;;  %4325 = vmatpush3.bf16.msra.mxu1 %v4666_v23 }
  0x30   :  { %333 = vmatprep.subr.bf16.mxu0 %v4667_v24  ;;  %4326 = vmatprep.subr.bf16.mxu1 %v4979_v5 }
  0x31   :  { %v3933_v49 = vld [vmem:[%s5901_s19] ss:$0 sm:$0xff] }
  0x33   :  { %334 = vmatpush1.bf16.msra.mxu0 %v4669_v25  ;;  %4327 = vmatpush3.bf16.msra.mxu1 %v4670_v26 }
  0x34   :  { %335 = vmatprep.subr.bf16.mxu0 %v4671_v27  ;;  %4328 = vmatprep.subr.bf16.mxu1 %v4979_v5 }
  0x37   :  { %336 = vmatpush1.bf16.msra.mxu0 %v4673_v29  ;;  %4329 = vmatpush3.bf16.msra.mxu1 %v4674_v30 }
  0x38   :  { %337 = vmatprep.subr.bf16.mxu0 %v4675_v31  ;;  %4330 = vmatprep.subr.bf16.mxu1 %v4979_v5 }
  0x3b   :  { %338 = vmatpush1.bf16.msra.mxu0 %v4677_v32  ;;  %4331 = vmatpush3.bf16.msra.mxu1 %v4678_v33 }
  0x3c   :  { %339 = vmatprep.subr.bf16.mxu0 %v4679_v34  ;;  %4332 = vmatprep.subr.bf16.mxu1 %v4979_v5 }
  0x3f   :  { %340 = vmatpush1.bf16.msra.mxu0 %v4681_v35  ;;  %4333 = vmatpush3.bf16.msra.mxu1 %v4682_v36 }
  0x40   :  { %4338 = vmatprep.subr.bf16.mxu0 %v4979_v5  ;;  %4344 = vmatprep.subr.bf16.mxu1 %v4979_v5 }
  0xb1   :  { %v101_v7 = vpop.xlane.xlu0 %100 }
  0xb2   :  { %v105_v8 = vmul.f32 0.0078125, %v101_v7 }
  0xb4   :  { %v5108_v9 = vsub.f32 %v96_v1, %v105_v8 }
  0xb5   :  { %v103_v10 = vpop.xlane.xlu0 %102 }
  0xb6   :  { %v106_v11 = vmul.f32 0.0078125, %v103_v10  ;;  %v109_v12 = vmul.f32 %v5108_v9, %v5108_v9 }
  0xb8   :  { %v5112_v13 = vsub.f32 %v97_v2, %v106_v11  ;;  %111 = vadd.xlane.f32.xlu1 %v109_v12 }
  0xba   :  { %v110_v14 = vmul.f32 %v5112_v13, %v5112_v13 }
  0xbc   :  { %113 = vadd.xlane.f32.xlu1 %v110_v14 }
 0x141   :  { %v112_v37 = vpop.xlane.xlu1 %111 }
 0x142   :  { %v115_v38 = vmul.f32 0.0078125, %v112_v37 }
 0x144   :  { %v117_v39 = vadd.f32 1e-12, %v115_v38 }
 0x145   :  { %v114_v40 = vpop.xlane.xlu1 %113 }
 0x146   :  { %4819 = vrsqrt.f32 %v117_v39  ;;  %v116_v41 = vmul.f32 0.0078125, %v114_v40 }
 0x148   :  { %v118_v42 = vadd.f32 1e-12, %v116_v41 }
 0x14a   :  { %4821 = vrsqrt.f32 %v118_v42 }
 0x153   :  { %v4820_v43 = vpop.eup %4819 }
 0x154   :  { %v121_v44 = vmul.f32 %v4820_v43, %v5108_v9 }
 0x156   :  { %v129_v48 = vmul.f32 %v3932_v45, %v121_v44 }
 0x157   :  { %v4822_v46 = vpop.eup %4821 }
 0x158   :  { %v122_v47 = vmul.f32 %v4822_v46, %v5112_v13  ;;  %v5135_v51 = vadd.f32 %v3933_v49, %v129_v48 }
 0x15a   :  { %v130_v50 = vmul.f32 %v3932_v45, %v122_v47 }
 0x15c   :  { %v5137_v52 = vadd.f32 %v3933_v49, %v130_v50 }
 0x15e   :  { %v180_v53 = vpack.c.bf16 %v5137_v52, %v5135_v51 }
 0x160   :  { %358 = vmatmul.mubr.bf16.vlgmr.msra.gmra.mxu0 %v180_v53  ;;  %4335 = vmatmul.mubr.bf16.vlgmr.msra.gmra.mxu1 %v180_v53 }
 0x161   :  { %4340 = vmatprep.mubr.msk.bf16.mxu0 %vm4981_vm0, %v4979_v5  ;;  %4346 = vmatprep.mubr.msk.bf16.mxu1 %vm4981_vm0, %v4979_v5 }
 0x220   :  { %v359_v62 = vpop.f32.mrf.mxu0  ;;  %v5159_v63 = vpop.f32.mrf.mxu1 }
 0x221   :  { %v360_v0 = vadd.f32 %v359_v62, %v185_v59  ;;  %v5205_v42 = vadd.f32 %v5159_v63, %v5163_v3 }
 0x222   :  { %v361_v1 = vpop.f32.mrf.mxu0  ;;  %v4336_v2 = vpop.f32.mrf.mxu1 }
 0x223   :  { %v362_v4 = vadd.f32 %v361_v1, %v189_v61  ;;  %410 = vrot.lane.b32.xlu1 %v360_v0, %s4982_s0  ;;  %v429_v14 = vpack.c.bf16 %v360_v0, %v360_v0  ;;  %v485_v47 = vpack.c.bf16 %v5205_v42, %v5205_v42 }
 0x224   :  { %v363_v6 = vpop.f32.mrf.mxu0  ;;  %v405_v7 = vpop.f32.mrf.mxu1 }
 0x225   :  { %v5167_v8 = vadd.f32 %v405_v7, %v5163_v3  ;;  %438 = vrot.lane.b32.xlu0 %v362_v4, %s4982_s0  ;;  %v457_v9 = vpack.c.bf16 %v362_v4, %v362_v4  ;;  %v364_v15 = vadd.f32 %v363_v6, %v185_v59  ;;  %v1028_v50 = vsel %vm1026_vm2, %v485_v47, 0  ;;  %v3966_v59 = vld [vmem:[%s5902_s23] ss:$0 sm:$0xff] }
 0x226   :  { %v4337_v10 = vpop.f32.mrf.mxu1  ;;  %v365_v12 = vpop.f32.mrf.mxu0 }
 0x227   :  { %441 = vrot.lane.b32.xlu1 %v362_v4, %s4977_s30  ;;  %v498_v11 = vsel %vm493_vm1, %v457_v9, 0  ;;  %v366_v13 = vadd.f32 %v365_v12, %v189_v61  ;;  %v433_v39 = vpack.c.bf16 %v364_v15, %v364_v15  ;;  %v3968_v10 = vld [vmem:[%s5902_s23 + $0x2] ss:$0 sm:$0xff] }
 0x228   :  { %4339 = vmatpush3.bf16.xpose.msra.mxu0 %v498_v11 }
 0x229   :  { %413 = vrot.lane.b32.xlu0 %v360_v0, %s4977_s30  ;;  %4350 = vmatprep.subr.bf16.mxu0 %v4979_v5  ;;  %v461_v27 = vpack.c.bf16 %v366_v13, %v366_v13 }
 0x22b   :  { %444 = vrot.lane.b32.xlu1 %v362_v4, %s4983_s21  ;;  %v682_v33 = vsel %vm493_vm1, %v461_v27, 0  ;;  %v3967_v4 = vld [vmem:[%s5902_s23 + $0x1] ss:$0 sm:$0xff] }
 0x22d   :  { %448 = vrot.lane.b32.xlu0 %v366_v13, %s4982_s0 }
 0x22f   :  { %416 = vrot.lane.b32.xlu1 %v360_v0, %s4983_s21  ;;  %4341 = vmatmul.mubr.msk.bf16.vlgmr.msra.gmra.mxu0 %vm493_vm1, %v429_v14 }
 0x230   :  { %4352 = vmatprep.mubr.msk.bf16.mxu0 %vm4981_vm0, %v4979_v5 }
 0x231   :  { %420 = vrot.lane.b32.xlu0 %v364_v15, %s4982_s0 }
 0x233   :  { %451 = vrot.lane.b32.xlu1 %v366_v13, %s4977_s30 }
 0x235   :  { %423 = vrot.lane.b32.xlu0 %v364_v15, %s4977_s30 }
 0x237   :  { %454 = vrot.lane.b32.xlu1 %v366_v13, %s4983_s21 }
 0x23b   :  { %426 = vrot.lane.b32.xlu1 %v364_v15, %s4983_s21 }
 0x295   :  { %v411_v16 = vpop.permute.xlu1 %410 }
 0x296   :  { %v430_v26 = vpack.c.bf16 %v411_v16, %v411_v16 }
 0x297   :  { %v439_v17 = vpop.permute.xlu0 %438 }
 0x298   :  { %v458_v18 = vpack.c.bf16 %v439_v17, %v439_v17 }
 0x299   :  { %v442_v19 = vpop.permute.xlu1 %441 }
 0x29a   :  { %v544_v20 = vsel %vm493_vm1, %v458_v18, 0  ;;  %v459_v21 = vpack.c.bf16 %v442_v19, %v442_v19 }
 0x29b   :  { %4345 = vmatpush3.bf16.xpose.msra.mxu1 %v544_v20  ;;  %v414_v23 = vpop.permute.xlu0 %413 }
 0x29c   :  { %v590_v22 = vsel %vm493_vm1, %v459_v21, 0  ;;  %4356 = vmatprep.subr.bf16.mxu1 %v4979_v5  ;;  %v431_v30 = vpack.c.bf16 %v414_v23, %v414_v23 }
 0x29d   :  { %v445_v24 = vpop.permute.xlu1 %444  ;;  %4351 = vmatpush3.bf16.xpose.msra.mxu0 %v590_v22  ;;  %v3969_v22 = vld [vmem:[%s5902_s23 + $0x3] ss:$0 sm:$0xff] }
 0x29e   :  { %v460_v25 = vpack.c.bf16 %v445_v24, %v445_v24  ;;  %4362 = vmatprep.subr.bf16.mxu0 %v4979_v5 }
 0x29f   :  { %v449_v32 = vpop.permute.xlu0 %448 }
 0x2a0   :  { %v636_v31 = vsel %vm493_vm1, %v460_v25, 0  ;;  %v462_v35 = vpack.c.bf16 %v449_v32, %v449_v32 }
 0x2a1   :  { %v417_v29 = vpop.permute.xlu1 %416 }
 0x2a2   :  { %4347 = vmatmul.mubr.msk.bf16.vlgmr.msra.gmra.mxu1 %vm493_vm1, %v430_v26  ;;  %v432_v36 = vpack.c.bf16 %v417_v29, %v417_v29  ;;  %v728_v40 = vsel %vm493_vm1, %v462_v35, 0  ;;  %v3970_v26 = vld [vmem:[%s5902_s23 + $0x4] ss:$0 sm:$0xff] }
 0x2a3   :  { %4357 = vmatpush3.bf16.xpose.msra.mxu1 %v636_v31  ;;  %4358 = vmatprep.mubr.msk.bf16.mxu1 %vm4981_vm0, %v4979_v5  ;;  %v421_v38 = vpop.permute.xlu0 %420 }
 0x2a4   :  { %4353 = vmatmul.mubr.msk.bf16.vlgmr.msra.gmra.mxu0 %vm493_vm1, %v431_v30  ;;  %4368 = vmatprep.subr.bf16.mxu1 %v4979_v5  ;;  %v434_v46 = vpack.c.bf16 %v421_v38, %v421_v38  ;;  %v3971_v38 = vld [vmem:[%s5902_s23 + $0x5] ss:$0 sm:$0xff] }
 0x2a5   :  { %v452_v34 = vpop.permute.xlu1 %451  ;;  %4363 = vmatpush3.bf16.xpose.msra.mxu0 %v682_v33  ;;  %4364 = vmatprep.mubr.msk.bf16.mxu0 %vm4981_vm0, %v4979_v5 }
 0x2a6   :  { %4374 = vmatprep.subr.bf16.mxu0 %v4979_v5  ;;  %v463_v37 = vpack.c.bf16 %v452_v34, %v452_v34 }
 0x2a7   :  { %v424_v45 = vpop.permute.xlu0 %423 }
 0x2a8   :  { %v774_v43 = vsel %vm493_vm1, %v463_v37, 0  ;;  %v435_v48 = vpack.c.bf16 %v424_v45, %v424_v45 }
 0x2a9   :  { %v455_v41 = vpop.permute.xlu1 %454 }
 0x2aa   :  { %4359 = vmatmul.mubr.msk.bf16.vlgmr.msra.gmra.mxu1 %vm493_vm1, %v432_v36  ;;  %v464_v44 = vpack.c.bf16 %v455_v41, %v455_v41 }
 0x2ab   :  { %4369 = vmatpush3.bf16.xpose.msra.mxu1 %v728_v40  ;;  %4370 = vmatprep.mubr.msk.bf16.mxu1 %vm4981_vm0, %v4979_v5 }
 0x2ac   :  { %4365 = vmatmul.mubr.msk.bf16.vlgmr.msra.gmra.mxu0 %vm493_vm1, %v433_v39  ;;  %4380 = vmatprep.subr.bf16.mxu1 %v4979_v5  ;;  %v820_v49 = vsel %vm493_vm1, %v464_v44, 0  ;;  %v3972_v44 = vld [vmem:[%s5902_s23 + $0x6] ss:$0 sm:$0xff] }
 0x2ad   :  { %4375 = vmatpush3.bf16.xpose.msra.mxu0 %v774_v43  ;;  %4376 = vmatprep.mubr.msk.bf16.mxu0 %vm4981_vm0, %v4979_v5  ;;  %v427_v53 = vpop.permute.xlu1 %426 }
 0x2ae   :  { %4386 = vmatprep.subr.bf16.mxu0 %v4979_v5  ;;  %v436_v54 = vpack.c.bf16 %v427_v53, %v427_v53 }
 0x2b2   :  { %4371 = vmatmul.mubr.msk.bf16.vlgmr.msra.gmra.mxu1 %vm493_vm1, %v434_v46 }
 0x2b3   :  { %4381 = vmatpush3.bf16.xpose.msra.mxu1 %v820_v49  ;;  %4382 = vmatprep.mubr.msk.bf16.mxu1 %vm4981_vm0, %v4979_v5 }
 0x2b4   :  { %4377 = vmatmul.mubr.msk.bf16.vlgmr.msra.gmra.mxu0 %vm493_vm1, %v435_v48  ;;  %4392 = vmatprep.subr.bf16.mxu1 %v4979_v5 }
 0x2b5   :  { %4387 = vmatpush3.bf16.msra.mxu0 %v1028_v50  ;;  %4388 = vmatprep.mubr.msk.bf16.mxu0 %vm4981_vm0, %v4979_v5 }
 0x2b6   :  { %4398 = vmatprep.subr.bf16.mxu0 %v4979_v5 }
 0x2ba   :  { %4383 = vmatmul.mubr.msk.bf16.vlgmr.msra.gmra.mxu1 %vm493_vm1, %v436_v54 }
 0x2bb   :  { %4394 = vmatprep.mubr.msk.bf16.mxu1 %vm4981_vm0, %v4979_v5 }
 0x2ef   :  { %v534_v57 = vpop.f32.mrf.mxu0 }
 0x2f0   :  { %v862_v61 = vmul.f32 0.17677669, %v534_v57 }
 0x2f1   :  { %v4342_v62 = vpop.f32.mrf.mxu0 }
 0x2f2   :  { %v5231_v63 = vadd.f32 %v3966_v59, %v862_v61  ;;  %v3973_v62 = vld [vmem:[%s5902_s23 + $0x7] ss:$0 sm:$0xff] }
 0x2f3   :  { %v537_v0 = vpop.f32.mrf.mxu0 }
 0x2f4   :  { %v927_v1 = vsel %vm926_vm3, %v5231_v63, -inf }
 0x2f5   :  { %928 = vmax.xlane.f32.xlu0 %v927_v1  ;;  %v4343_v2 = vpop.f32.mrf.mxu0 }
 0x362   :  { %v580_v3 = vpop.f32.mrf.mxu1 }
 0x363   :  { %v863_v6 = vmul.f32 0.17677669, %v580_v3 }
 0x364   :  { %v4348_v7 = vpop.f32.mrf.mxu1  ;;  %v626_v9 = vpop.f32.mrf.mxu0 }
 0x365   :  { %v864_v11 = vmul.f32 0.17677669, %v626_v9  ;;  %v5241_v12 = vadd.f32 %v3967_v4, %v863_v6 }
 0x366   :  { %v583_v13 = vpop.f32.mrf.mxu1  ;;  %v4354_v14 = vpop.f32.mrf.mxu0 }
 0x367   :  { %v930_v15 = vsel %vm926_vm3, %v5241_v12, -inf  ;;  %v5245_v16 = vadd.f32 %v3968_v10, %v864_v11 }
 0x368   :  { %931 = vmax.xlane.f32.xlu1 %v930_v15  ;;  %v4349_v17 = vpop.f32.mrf.mxu1  ;;  %v629_v18 = vpop.f32.mrf.mxu0 }
 0x369   :  { %v933_v19 = vsel %vm926_vm3, %v5245_v16, -inf }
 0x36a   :  { %v672_v20 = vpop.f32.mrf.mxu1  ;;  %934 = vmax.xlane.f32.xlu0 %v933_v19  ;;  %v4355_v21 = vpop.f32.mrf.mxu0 }
 0x36b   :  { %v865_v23 = vmul.f32 0.17677669, %v672_v20 }
 0x36c   :  { %v4360_v24 = vpop.f32.mrf.mxu1  ;;  %v718_v25 = vpop.f32.mrf.mxu0 }
 0x36d   :  { %v866_v27 = vmul.f32 0.17677669, %v718_v25  ;;  %v921_v29 = vadd.f32 %v3969_v22, %v865_v23 }
 0x36e   :  { %v675_v30 = vpop.f32.mrf.mxu1  ;;  %v4366_v31 = vpop.f32.mrf.mxu0 }
 0x36f   :  { %v936_v32 = vsel %vm926_vm3, %v921_v29, -inf  ;;  %v922_v33 = vadd.f32 %v3970_v26, %v866_v27 }
 0x370   :  { %v4361_v34 = vpop.f32.mrf.mxu1  ;;  %937 = vmax.xlane.f32.xlu0 %v936_v32  ;;  %v721_v35 = vpop.f32.mrf.mxu0 }
 0x371   :  { %v939_v40 = vsel %vm926_vm3, %v922_v33, -inf }
 0x372   :  { %v4367_v36 = vpop.f32.mrf.mxu0  ;;  %v764_v37 = vpop.f32.mrf.mxu1 }
 0x373   :  { %v867_v39 = vmul.f32 0.17677669, %v764_v37 }
 0x374   :  { %v4372_v41 = vpop.f32.mrf.mxu1  ;;  %940 = vmax.xlane.f32.xlu0 %v939_v40  ;;  %v810_v43 = vpop.f32.mrf.mxu0 }
 0x375   :  { %v868_v45 = vmul.f32 0.17677669, %v810_v43  ;;  %v923_v46 = vadd.f32 %v3971_v38, %v867_v39 }
 0x376   :  { %v767_v47 = vpop.f32.mrf.mxu1  ;;  %v4378_v48 = vpop.f32.mrf.mxu0 }
 0x377   :  { %v942_v49 = vsel %vm926_vm3, %v923_v46, -inf  ;;  %v924_v50 = vadd.f32 %v3972_v44, %v868_v45 }
 0x378   :  { %943 = vmax.xlane.f32.xlu1 %v942_v49  ;;  %v4373_v53 = vpop.f32.mrf.mxu1  ;;  %v813_v54 = vpop.f32.mrf.mxu0 }
 0x379   :  { %v945_v57 = vsel %vm926_vm3, %v924_v50, -inf }
 0x37a   :  { %v856_v59 = vpop.f32.mrf.mxu1  ;;  %946 = vmax.xlane.f32.xlu0 %v945_v57  ;;  %v4379_v61 = vpop.f32.mrf.mxu0 }
 0x37b   :  { %v869_v0 = vmul.f32 0.17677669, %v856_v59 }
 0x37c   :  { %v4384_v1 = vpop.f32.mrf.mxu1 }
 0x37d   :  { %v925_v2 = vadd.f32 %v3973_v62, %v869_v0 }
 0x37e   :  { %v859_v3 = vpop.f32.mrf.mxu1  ;;  %v929_v4 = vpop.xlane.xlu0 %928 }
 0x37f   :  { %v951_v6 = vsub.f32 %v5231_v63, %v929_v4  ;;  %v948_v7 = vsel %vm926_vm3, %v925_v2, -inf }
 0x380   :  { %949 = vmax.xlane.f32.xlu1 %v948_v7  ;;  %v4385_v9 = vpop.f32.mrf.mxu1 }
 0x381   :  { %v959_v10 = vmul.f32 1.442695, %v951_v6 }
 0x383   :  { %4823 = vpow2.f32 %v959_v10 }
 0x390   :  { %v5270_v11 = vpop.eup %4823 }
 0x391   :  { %466 = vrot.lane.b32.xlu1 %v5205_v42, %s4982_s0  ;;  %v975_v13 = vsel %vm926_vm3, %v5270_v11, 0.0 }
 0x392   :  { %976 = vadd.xlane.f32.xlu0 %v975_v13 }
 0x3f1   :  { %v932_v14 = vpop.xlane.xlu1 %931 }
 0x3f2   :  { %v952_v15 = vsub.f32 %v5241_v12, %v932_v14 }
 0x3f3   :  { %v935_v17 = vpop.xlane.xlu0 %934 }
 0x3f4   :  { %v961_v63 = vmul.f32 1.442695, %v952_v15  ;;  %v953_v18 = vsub.f32 %v5245_v16, %v935_v17 }
 0x3f6   :  { %4825 = vpow2.f32 %v961_v63  ;;  %v963_v19 = vmul.f32 1.442695, %v953_v18 }
 0x3f8   :  { %4827 = vpow2.f32 %v963_v19 }
 0x3f9   :  { %v938_v20 = vpop.xlane.xlu0 %937 }
 0x3fa   :  { %v954_v21 = vsub.f32 %v921_v29, %v938_v20 }
 0x3fc   :  { %v965_v22 = vmul.f32 1.442695, %v954_v21 }
 0x3fd   :  { %v941_v23 = vpop.xlane.xlu0 %940 }
 0x3fe   :  { %4829 = vpow2.f32 %v965_v22  ;;  %v955_v24 = vsub.f32 %v922_v33, %v941_v23 }
 0x400   :  { %v967_v25 = vmul.f32 1.442695, %v955_v24 }
 0x401   :  { %v944_v26 = vpop.xlane.xlu1 %943 }
 0x402   :  { %4831 = vpow2.f32 %v967_v25  ;;  %v956_v27 = vsub.f32 %v923_v46, %v944_v26 }
 0x403   :  { %v4826_v30 = vpop.eup %4825  ;;  %v947_v31 = vpop.xlane.xlu0 %946 }
 0x404   :  { %v969_v12 = vmul.f32 1.442695, %v956_v27  ;;  %v957_v32 = vsub.f32 %v924_v50, %v947_v31  ;;  %v978_v34 = vsel %vm926_vm3, %v4826_v30, 0.0 }
 0x405   :  { %v5279_v16 = vpop.eup %4827  ;;  %979 = vadd.xlane.f32.xlu1 %v978_v34 }
 0x406   :  { %4833 = vpow2.f32 %v969_v12  ;;  %v971_v35 = vmul.f32 1.442695, %v957_v32  ;;  %v981_v29 = vsel %vm926_vm3, %v5279_v16, 0.0 }
 0x407   :  { %982 = vadd.xlane.f32.xlu0 %v981_v29 }
 0x408   :  { %4835 = vpow2.f32 %v971_v35 }
 0x409   :  { %v950_v33 = vpop.xlane.xlu1 %949 }
 0x40a   :  { %v958_v36 = vsub.f32 %v925_v2, %v950_v33 }
 0x40b   :  { %v4830_v37 = vpop.eup %4829 }
 0x40c   :  { %v973_v38 = vmul.f32 1.442695, %v958_v36  ;;  %v984_v39 = vsel %vm926_vm3, %v4830_v37, 0.0 }
 0x40d   :  { %v467_v40 = vpop.permute.xlu1 %466  ;;  %985 = vadd.xlane.f32.xlu1 %v984_v39 }
 0x40e   :  { %4837 = vpow2.f32 %v973_v38  ;;  %v486_v41 = vpack.c.bf16 %v467_v40, %v467_v40 }
 0x40f   :  { %v5284_v43 = vpop.eup %4831 }
 0x410   :  { %v1074_v44 = vsel %vm1026_vm2, %v486_v41, 0  ;;  %v987_v45 = vsel %vm926_vm3, %v5284_v43, 0.0 }
 0x411   :  { %4393 = vmatpush3.bf16.msra.mxu1 %v1074_v44  ;;  %988 = vadd.xlane.f32.xlu0 %v987_v45 }
 0x412   :  { %4404 = vmatprep.subr.bf16.mxu1 %v4979_v5 }
 0x413   :  { %v4834_v46 = vpop.eup %4833 }
 0x414   :  { %v990_v47 = vsel %vm926_vm3, %v4834_v46, 0.0 }
 0x415   :  { %v5291_v48 = vpop.eup %4835  ;;  %991 = vadd.xlane.f32.xlu1 %v990_v47 }
 0x416   :  { %v993_v49 = vsel %vm926_vm3, %v5291_v48, 0.0 }
 0x417   :  { %994 = vadd.xlane.f32.xlu0 %v993_v49 }
 0x41b   :  { %v5295_v50 = vpop.eup %4837  ;;  %v977_v53 = vpop.xlane.xlu0 %976 }
 0x41c   :  { %4839 = vrcp.f32 %v977_v53  ;;  %v996_v54 = vsel %vm926_vm3, %v5295_v50, 0.0  ;;  %v4685_v53 = vld [vmem:[%s5876_s6 + $0x28] sm:$0xff]  }
 0x41d   :  { %997 = vadd.xlane.f32.xlu0 %v996_v54 }
 0x426   :  { %472 = vrot.lane.b32.xlu1 %v5205_v42, %s4983_s21 }
 0x429   :  { %v4840_v57 = vpop.eup %4839 }
 0x42a   :  { %476 = vrot.lane.b32.xlu1 %v5167_v8, %s4982_s0  ;;  %v1007_v59 = vmul.f32 %v4840_v57, %v5270_v11 }
 0x42c   :  { %v1015_v61 = vpack.c.bf16 %v1007_v59, %v1007_v59 }
 0x42e   :  { %479 = vrot.lane.b32.xlu1 %v5167_v8, %s4977_s30  ;;  %4389 = vmatmul.mubr.msk.bf16.vlgmr.msra.gmra.mxu0 %vm926_vm3, %v1015_v61 }
 0x42f   :  { %4400 = vmatprep.mubr.msk.bf16.mxu0 %vm4981_vm0, %v4979_v5 }
 0x432   :  { %482 = vrot.lane.b32.xlu1 %v5167_v8, %s4983_s21 }
 0x433   :  { %469 = vrot.lane.b32.xlu0 %v5205_v42, %s4977_s30 }
 0x48e   :  { %v980_v62 = vpop.xlane.xlu1 %979 }
 0x48f   :  { %4841 = vrcp.f32 %v980_v62 }
 0x490   :  { %v983_v1 = vpop.xlane.xlu0 %982 }
 0x496   :  { %v986_v0 = vpop.xlane.xlu1 %985 }
 0x497   :  { %4843 = vrcp.f32 %v986_v0  ;;  %v4686_v0 = vld [vmem:[%s5876_s6 + $0x20] sm:$0xff]  }
 0x498   :  { %4845 = vrcp.f32 %v983_v1 }
 0x49a   :  { %v989_v4 = vpop.xlane.xlu0 %988 }
 0x49c   :  { %v4842_v2 = vpop.eup %4841 }
 0x49d   :  { %v1008_v3 = vmul.f32 %v4842_v2, %v4826_v30  ;;  %v489_v30 = vpack.c.bf16 %v5167_v8, %v5167_v8  ;;  %v4687_v2 = vld [vmem:[%s5876_s6 + $0x18] sm:$0xff]  }
 0x49e   :  { %v992_v6 = vpop.xlane.xlu1 %991 }
 0x49f   :  { %4847 = vrcp.f32 %v992_v6  ;;  %v1016_v7 = vpack.c.bf16 %v1008_v3, %v1008_v3  ;;  %v4688_v6 = vld [vmem:[%s5876_s6 + $0x10] sm:$0xff]  }
 0x4a0   :  { %v995_v9 = vpop.xlane.xlu0 %994  ;;  %4849 = vrcp.f32 %v989_v4 }
 0x4a1   :  { %4395 = vmatmul.mubr.msk.bf16.vlgmr.msra.gmra.mxu1 %vm926_vm3, %v1016_v7 }
 0x4a2   :  { %v473_v10 = vpop.permute.xlu1 %472  ;;  %4406 = vmatprep.mubr.msk.bf16.mxu1 %vm4981_vm0, %v4979_v5 }
 0x4a3   :  { %v488_v42 = vpack.c.bf16 %v473_v10, %v473_v10 }
 0x4a4   :  { %v4844_v11 = vpop.eup %4843 }
 0x4a5   :  { %v1166_v13 = vsel %vm1026_vm2, %v488_v42, 0  ;;  %v1010_v14 = vmul.f32 %v4844_v11, %v4830_v37  ;;  %v4846_v19 = vpop.eup %4845 }
 0x4a6   :  { %4405 = vmatpush3.bf16.msra.mxu1 %v1166_v13  ;;  %v477_v15 = vpop.permute.xlu1 %476  ;;  %v998_v17 = vpop.xlane.xlu0 %997  ;;  %v1009_v24 = vmul.f32 %v4846_v19, %v5279_v16  ;;  %v1212_v16 = vsel %vm1026_vm2, %v489_v30, 0  ;;  %v4689_v13 = vld [vmem:[%s5876_s6 + $0x8] sm:$0xff]  }
 0x4a7   :  { %v490_v63 = vpack.c.bf16 %v477_v15, %v477_v15  ;;  %4851 = vrcp.f32 %v998_v17  ;;  %v1018_v18 = vpack.c.bf16 %v1010_v14, %v1010_v14  ;;  %4416 = vmatprep.subr.bf16.mxu1 %v4979_v5 }
 0x4a8   :  { %4853 = vrcp.f32 %v995_v9  ;;  %v1017_v32 = vpack.c.bf16 %v1009_v24, %v1009_v24 }
 0x4a9   :  { %v1258_v20 = vsel %vm1026_vm2, %v490_v63, 0  ;;  %4407 = vmatmul.mubr.msk.bf16.vlgmr.msra.gmra.mxu1 %vm926_vm3, %v1018_v18 }
 0x4aa   :  { %4417 = vmatpush3.bf16.msra.mxu1 %v1258_v20  ;;  %v480_v21 = vpop.permute.xlu1 %479  ;;  %v470_v22 = vpop.permute.xlu0 %469  ;;  %4418 = vmatprep.mubr.msk.bf16.mxu1 %vm4981_vm0, %v4979_v5  ;;  %v4690_v20 = vld [vmem:[%s5876_s6] sm:$0xff]  }
 0x4ab   :  { %v487_v23 = vpack.c.bf16 %v470_v22, %v470_v22  ;;  %4428 = vmatprep.subr.bf16.mxu1 %v4979_v5  ;;  %v491_v36 = vpack.c.bf16 %v480_v21, %v480_v21 }
 0x4ac   :  { %v4848_v25 = vpop.eup %4847 }
 0x4ad   :  { %v1120_v26 = vsel %vm1026_vm2, %v487_v23, 0  ;;  %v1012_v27 = vmul.f32 %v4848_v25, %v4834_v46  ;;  %v4850_v35 = vpop.eup %4849  ;;  %v1304_v41 = vsel %vm1026_vm2, %v491_v36, 0 }
 0x4ae   :  { %v483_v31 = vpop.permute.xlu1 %482  ;;  %4399 = vmatpush3.bf16.msra.mxu0 %v1120_v26  ;;  %v1011_v8 = vmul.f32 %v4850_v35, %v5284_v43 }
 0x4af   :  { %v492_v12 = vpack.c.bf16 %v483_v31, %v483_v31  ;;  %4410 = vmatprep.subr.bf16.mxu0 %v4979_v5  ;;  %v1020_v34 = vpack.c.bf16 %v1012_v27, %v1012_v27 }
 0x4b0   :  { %v1019_v38 = vpack.c.bf16 %v1011_v8, %v1011_v8 }
 0x4b1   :  { %v1350_v29 = vsel %vm1026_vm2, %v492_v12, 0  ;;  %4401 = vmatmul.mubr.msk.bf16.vlgmr.msra.gmra.mxu0 %vm926_vm3, %v1017_v32  ;;  %4419 = vmatmul.mubr.msk.bf16.vlgmr.msra.gmra.mxu1 %vm926_vm3, %v1020_v34 }
 0x4b2   :  { %4411 = vmatpush3.bf16.msra.mxu0 %v1212_v16  ;;  %4429 = vmatpush3.bf16.msra.mxu1 %v1350_v29 }
 0x4b3   :  { %4412 = vmatprep.mubr.msk.bf16.mxu0 %vm4981_vm0, %v4979_v5  ;;  %4422 = vmatprep.subr.bf16.mxu0 %v4979_v5 }
 0x4b4   :  { %v4852_v33 = vpop.eup %4851  ;;  %4430 = vmatprep.mubr.msk.bf16.mxu1 %vm4981_vm0, %v4979_v5 }
 0x4b5   :  { %v1014_v37 = vmul.f32 %v4852_v33, %v5295_v50  ;;  %v4854_v40 = vpop.eup %4853  ;;  %v4683_v50 = vld [vmem:[%s5876_s6 + $0x38] sm:$0xff]  }
 0x4b6   :  { %v1013_v43 = vmul.f32 %v4854_v40, %v5291_v48  ;;  %v4684_v48 = vld [vmem:[%s5876_s6 + $0x30] sm:$0xff]  }
 0x4b7   :  { %v1022_v39 = vpack.c.bf16 %v1014_v37, %v1014_v37 }
 0x4b8   :  { %v1021_v44 = vpack.c.bf16 %v1013_v43, %v1013_v43 }
 0x4b9   :  { %4413 = vmatmul.mubr.msk.bf16.vlgmr.msra.gmra.mxu0 %vm926_vm3, %v1019_v38  ;;  %4431 = vmatmul.mubr.msk.bf16.vlgmr.msra.gmra.mxu1 %vm926_vm3, %v1022_v39 }
 0x4ba   :  { %4423 = vmatpush3.bf16.msra.mxu0 %v1304_v41  ;;  %4424 = vmatprep.mubr.msk.bf16.mxu0 %vm4981_vm0, %v4979_v5 }
 0x4bb   :  { %4434 = vmatprep.subr.bf16.mxu0 %v4979_v5  ;;  %1720 = vmatprep.mubr.bf16.mxu1 %v4980_v28 }
 0x4c1   :  { %4425 = vmatmul.mubr.msk.bf16.vlgmr.msra.gmra.mxu0 %vm926_vm3, %v1021_v44 }
 0x4c2   :  { %4450 = vmatprep.mubr.msk.bf16.mxu0 %vm4981_vm0, %v4979_v5  ;;  %4435 = vmatpush3.bf16.msra.mxu0 %v4683_v50  ;;  %v3982_v50 = vld [vmem:[%s5877_s7] ss:$0 sm:$0xff] }
 0x4c3   :  { %4436 = vmatprep.subr.bf16.mxu0 %v4979_v5 }
 0x4c6   :  { %4437 = vmatpush3.bf16.msra.mxu0 %v4684_v48 }
 0x4c7   :  { %4438 = vmatprep.subr.bf16.mxu0 %v4979_v5 }
 0x4ca   :  { %4439 = vmatpush3.bf16.msra.mxu0 %v4685_v53 }
 0x4cb   :  { %4440 = vmatprep.subr.bf16.mxu0 %v4979_v5 }
 0x4ce   :  { %4441 = vmatpush3.bf16.msra.mxu0 %v4686_v0  ;;  %v4691_v0 = vld [vmem:[%s5880_s10 + $0x70] ss:$8 sps:$4 sm:$0xff]  }
 0x4cf   :  { %4442 = vmatprep.subr.bf16.mxu0 %v4979_v5 }
 0x4d2   :  { %4443 = vmatpush3.bf16.msra.mxu0 %v4687_v2 }
 0x4d3   :  { %4444 = vmatprep.subr.bf16.mxu0 %v4979_v5 }
 0x4d6   :  { %4445 = vmatpush3.bf16.msra.mxu0 %v4688_v6 }
 0x4d7   :  { %4446 = vmatprep.subr.bf16.mxu0 %v4979_v5 }
 0x4da   :  { %4447 = vmatpush3.bf16.msra.mxu0 %v4689_v13  ;;  %v4697_v13 = vld [vmem:[%s5880_s10 + $0x50] ss:$8 sps:$4 sm:$0xff]  }
 0x4db   :  { %4448 = vmatprep.subr.bf16.mxu0 %v4979_v5 }
 0x4de   :  { %4449 = vmatpush3.bf16.msra.mxu0 %v4690_v20  ;;  %v4711_v20 = vld [vmem:[%s5880_s10 + $0x14] ss:$8 sps:$4 sm:$0xff]  }
 0x4ee   :  { %v5350_v45 = vpop.f32.mrf.mxu0 }
 0x4f0   :  { %v4390_v46 = vpop.f32.mrf.mxu0 }
 0x4f2   :  { %v1067_v47 = vpop.f32.mrf.mxu0 }
 0x4f4   :  { %v4391_v49 = vpop.f32.mrf.mxu0 }
 0x561   :  { %v1110_v54 = vpop.f32.mrf.mxu1 }
 0x563   :  { %v4396_v57 = vpop.f32.mrf.mxu1 }
 0x565   :  { %v1113_v59 = vpop.f32.mrf.mxu1 }
 0x567   :  { %v4397_v61 = vpop.f32.mrf.mxu1 }
 0x569   :  { %v1202_v62 = vpop.f32.mrf.mxu1 }
 0x56b   :  { %v4408_v1 = vpop.f32.mrf.mxu1 }
 0x56c   :  { %v4693_v1 = vld [vmem:[%s5880_s10 + $0x74] ss:$8 sps:$4 sm:$0xff]  }
 0x56d   :  { %v1205_v3 = vpop.f32.mrf.mxu1  ;;  %1688 = vmatprep.subr.bf16.mxu1 %v4693_v1 }
 0x56e   :  { %1689 = vmatpush1.bf16.msra.mxu1 %v4691_v0 }
 0x56f   :  { %v4409_v4 = vpop.f32.mrf.mxu1 }
 0x571   :  { %v1156_v7 = vpop.f32.mrf.mxu0  ;;  %v1294_v9 = vpop.f32.mrf.mxu1 }
 0x572   :  { %v4621_v10 = vpack.i.bf16 %v1294_v9, %v1110_v54 }
 0x573   :  { %v4402_v42 = vpop.f32.mrf.mxu0  ;;  %v4420_v11 = vpop.f32.mrf.mxu1 }
 0x574   :  { %4622 = vrot.lane.b32.xlu0 %v4621_v10, %s4983_s21  ;;  %v4696_v10 = vld [vmem:[%s5880_s10 + $0x64] ss:$8 sps:$4 sm:$0xff]   ;;  %v4694_v42 = vld [vmem:[%s5880_s10 + $0x60] ss:$8 sps:$4 sm:$0xff]   ;;  %v4699_v11 = vld [vmem:[%s5880_s10 + $0x54] ss:$8 sps:$4 sm:$0xff]  }
 0x575   :  { %v1159_v14 = vpop.f32.mrf.mxu0  ;;  %v1297_v15 = vpop.f32.mrf.mxu1  ;;  %1690 = vmatprep.subr.bf16.mxu1 %v4696_v10 }
 0x576   :  { %1691 = vmatpush1.bf16.msra.mxu1 %v4694_v42  ;;  %v4700_v14 = vld [vmem:[%s5880_s10 + $0x40] ss:$8 sps:$4 sm:$0xff]   ;;  %v4702_v15 = vld [vmem:[%s5880_s10 + $0x44] ss:$8 sps:$4 sm:$0xff]  }
 0x577   :  { %v4403_v17 = vpop.f32.mrf.mxu0  ;;  %v4421_v63 = vpop.f32.mrf.mxu1  ;;  %1692 = vmatprep.subr.bf16.mxu1 %v4699_v11 }
 0x578   :  { %v4705_v17 = vld [vmem:[%s5880_s10 + $0x34] ss:$8 sps:$4 sm:$0xff]   ;;  %v4703_v63 = vld [vmem:[%s5880_s10 + $0x30] ss:$8 sps:$4 sm:$0xff]  }
 0x579   :  { %v1248_v18 = vpop.f32.mrf.mxu0  ;;  %v1386_v19 = vpop.f32.mrf.mxu1 }
 0x57a   :  { %v4631_v21 = vpack.i.bf16 %v1386_v19, %v1202_v62  ;;  %1693 = vmatpush1.bf16.msra.mxu1 %v4697_v13  ;;  %v4706_v19 = vld [vmem:[%s5880_s10 + $0x20] ss:$8 sps:$4 sm:$0xff]  }
 0x57b   :  { %v4414_v22 = vpop.f32.mrf.mxu0  ;;  %v4432_v23 = vpop.f32.mrf.mxu1  ;;  %1694 = vmatprep.subr.bf16.mxu1 %v4702_v15 }
 0x57c   :  { %4632 = vrot.lane.b32.xlu0 %v4631_v21, %s4982_s0  ;;  %v4709_v21 = vld [vmem:[%s5880_s10 + $0x10] ss:$8 sps:$4 sm:$0xff]   ;;  %v4714_v22 = vld [vmem:[%s5880_s10 + $0x4] ss:$8 sps:$4 sm:$0xff]   ;;  %v4712_v23 = vld [vmem:[%s5880_s10] ss:$8 sps:$4 sm:$0xff]  }
 0x57d   :  { %v1251_v24 = vpop.f32.mrf.mxu0  ;;  %v1389_v25 = vpop.f32.mrf.mxu1 }
 0x57e   :  { %1695 = vmatpush1.bf16.msra.mxu1 %v4700_v14 }
 0x57f   :  { %v4415_v26 = vpop.f32.mrf.mxu0  ;;  %v4433_v27 = vpop.f32.mrf.mxu1  ;;  %1696 = vmatprep.subr.bf16.mxu1 %v4705_v17 }
 0x581   :  { %v1340_v30 = vpop.f32.mrf.mxu0 }
 0x582   :  { %v4626_v31 = vpack.i.bf16 %v1340_v30, %v1156_v7  ;;  %1697 = vmatpush1.bf16.msra.mxu1 %v4703_v63 }
 0x583   :  { %v4426_v12 = vpop.f32.mrf.mxu0 }
 0x584   :  { %4627 = vrot.lane.b32.xlu1 %v4626_v31, %s4977_s30 }
 0x585   :  { %v1343_v32 = vpop.f32.mrf.mxu0 }
 0x587   :  { %v4427_v34 = vpop.f32.mrf.mxu0 }
 0x588   :  { %v3991_v34 = vld [vmem:[%s5878_s8] ss:$0 sm:$0xff] }
 0x5e6   :  { %v4623_v35 = vpop.permute.xlu0 %4622 }
 0x5e7   :  { %v4625_v29 = vunpack.i.h.bf16 %v4623_v35  ;;  %v4624_v16 = vunpack.i.l.bf16 %v4623_v35 }
 0x5e9   :  { %v1404_v38 = vsel %vm493_vm1, %v5350_v45, %v4624_v16  ;;  %v1421_v39 = vsel %vm493_vm1, %v1248_v18, %v4625_v29  ;;  %v4708_v18 = vld [vmem:[%s5880_s10 + $0x24] ss:$8 sps:$4 sm:$0xff]  }
 0x5ea   :  { %1698 = vmatprep.subr.bf16.mxu1 %v4708_v18 }
 0x5eb   :  { %1699 = vmatpush1.bf16.msra.mxu1 %v4706_v19 }
 0x5ec   :  { %1700 = vmatprep.subr.bf16.mxu1 %v4711_v20 }
 0x5ee   :  { %v4633_v8 = vpop.permute.xlu0 %4632 }
 0x5ef   :  { %v4635_v40 = vunpack.i.h.bf16 %v4633_v8  ;;  %v4634_v41 = vunpack.i.l.bf16 %v4633_v8  ;;  %1701 = vmatpush1.bf16.msra.mxu1 %v4709_v21  ;;  %v3992_v8 = vld [vmem:[%s5879_s9] ss:$0 sm:$0xff] }
 0x5f0   :  { %1702 = vmatprep.subr.bf16.mxu1 %v4714_v22 }
 0x5f3   :  { %1703 = vmatpush1.bf16.msra.mxu1 %v4712_v23 }
 0x5f6   :  { %v4628_v33 = vpop.permute.xlu1 %4627 }
 0x5f7   :  { %v4630_v36 = vunpack.i.h.bf16 %v4628_v33  ;;  %v4629_v37 = vunpack.i.l.bf16 %v4628_v33 }
 0x5f9   :  { %v1422_v43 = vsel %vm1405_vm4, %v1421_v39, %v4630_v36  ;;  %v1406_v44 = vsel %vm1405_vm4, %v1404_v38, %v4629_v37  ;;  %v4715_v39 = vld [vmem:[#allocation5 + $0x78] sm:$0xff]  }
 0x5fa   :  { %v1408_v46 = vsel %vm1407_vm5, %v1406_v44, %v4634_v41  ;;  %v1423_v47 = vsel %vm1407_vm5, %v1422_v43, %v4635_v40  ;;  %v4716_v40 = vld [vmem:[#allocation5 + $0x38] sm:$0xff]   ;;  %4215 = vmatprep.subr.bf16.mxu0 %v4715_v39  ;;  %v4717_v41 = vld [vmem:[#allocation5 + $0x70] sm:$0xff]   ;;  %v4719_v44 = vld [vmem:[#allocation5 + $0x68] sm:$0xff]  }
 0x5fb   :  { %v1441_v49 = vpack.c.bf16 %v1423_v47, %v1408_v46  ;;  %v4718_v43 = vld [vmem:[#allocation5 + $0x30] sm:$0xff]   ;;  %v4720_v46 = vld [vmem:[#allocation5 + $0x28] sm:$0xff]   ;;  %v4721_v47 = vld [vmem:[#allocation5 + $0x60] sm:$0xff]  }
 0x5fd   :  { %4451 = vmatmul.mubr.bf16.vlgmr.msra.gmra.mxu0 %v1441_v49  ;;  %v4722_v49 = vld [vmem:[#allocation5 + $0x20] sm:$0xff]  }
 0x5fe   :  { %4216 = vmatpush3.bf16.msra.mxu0 %v4716_v40 }
 0x5ff   :  { %4217 = vmatprep.subr.bf16.mxu0 %v4717_v41 }
 0x602   :  { %4218 = vmatpush3.bf16.msra.mxu0 %v4718_v43 }
 0x603   :  { %4219 = vmatprep.subr.bf16.mxu0 %v4719_v44 }
 0x606   :  { %4220 = vmatpush3.bf16.msra.mxu0 %v4720_v46 }
 0x607   :  { %4221 = vmatprep.subr.bf16.mxu0 %v4721_v47 }
 0x60a   :  { %4222 = vmatpush3.bf16.msra.mxu0 %v4722_v49 }
 0x6bd   :  { %v1530_v48 = vpop.f32.mrf.mxu0 }
 0x6be   :  { %v1531_v45 = vadd.f32 %v3982_v50, %v1530_v48  ;;  %v4724_v48 = vld [vmem:[#allocation5 + $0x18] sm:$0xff]  }
 0x6bf   :  { %v4452_v53 = vpop.f32.mrf.mxu0 }
 0x6c0   :  { %v1537_v54 = vadd.f32 %v1531_v45, %v5135_v51  ;;  %v4725_v45 = vld [vmem:[#allocation5 + $0x50] sm:$0xff]  }
 0x6c1   :  { %v1533_v57 = vpop.f32.mrf.mxu0  ;;  %v4726_v53 = vld [vmem:[#allocation5 + $0x10] sm:$0xff]  }
 0x6c2   :  { %v1534_v59 = vadd.f32 %v3982_v50, %v1533_v57  ;;  %1541 = vadd.xlane.f32.xlu1 %v1537_v54  ;;  %v4723_v50 = vld [vmem:[#allocation5 + $0x58] sm:$0xff]   ;;  %v4728_v57 = vld [vmem:[#allocation5 + $0x8] sm:$0xff]  }
 0x6c3   :  { %v4453_v61 = vpop.f32.mrf.mxu0  ;;  %4223 = vmatprep.subr.bf16.mxu0 %v4723_v50 }
 0x6c4   :  { %v1538_v62 = vadd.f32 %v1534_v59, %v5137_v52  ;;  %4224 = vmatpush3.bf16.msra.mxu0 %v4724_v48  ;;  %v4729_v59 = vld [vmem:[#allocation5 + $0x40] sm:$0xff]  }
 0x6c5   :  { %4225 = vmatprep.subr.bf16.mxu0 %v4725_v45  ;;  %v4730_v61 = vld [vmem:[#allocation5] sm:$0xff]   ;;  %v4009_v45 = vld [vmem:[%s5883_s13] ss:$0 sm:$0xff] }
 0x6c6   :  { %1543 = vadd.xlane.f32.xlu0 %v1538_v62 }
 0x6c8   :  { %4226 = vmatpush3.bf16.msra.mxu0 %v4726_v53 }
 0x74b   :  { %v1542_v2 = vpop.xlane.xlu1 %1541 }
 0x74c   :  { %v1545_v3 = vmul.f32 0.0078125, %v1542_v2 }
 0x74e   :  { %v1547_v51 = vsub.f32 %v1537_v54, %v1545_v3  ;;  %v4727_v54 = vld [vmem:[#allocation5 + $0x48] sm:$0xff]  }
 0x74f   :  { %v1544_v4 = vpop.xlane.xlu0 %1543  ;;  %4227 = vmatprep.subr.bf16.mxu0 %v4727_v54 }
 0x750   :  { %v1546_v6 = vmul.f32 0.0078125, %v1544_v4  ;;  %v1549_v7 = vmul.f32 %v1547_v51, %v1547_v51  ;;  %4228 = vmatpush3.bf16.msra.mxu0 %v4728_v57 }
 0x751   :  { %4229 = vmatprep.subr.bf16.mxu0 %v4729_v59 }
 0x752   :  { %v1548_v9 = vsub.f32 %v1538_v62, %v1546_v6  ;;  %1551 = vadd.xlane.f32.xlu0 %v1549_v7  ;;  %v1595_v62 = vld [vmem:[%s5881_s11] sm:$0x3] }
 0x753   :  { %v1601_v0 = vrot.slane %v1595_v62, %v5148_v56  ;;  %v1605_v1 = vrot.slane %v1595_v62, %v5154_v58 }
 0x754   :  { %v1550_v52 = vmul.f32 %v1548_v9, %v1548_v9  ;;  %4230 = vmatpush3.bf16.msra.mxu0 %v4730_v61 }
 0x755   :  { %4454 = vmatprep.subr.bf16.mxu0 %v4979_v5 }
 0x756   :  { %1553 = vadd.xlane.f32.xlu0 %v1550_v52 }
 0x7db   :  { %v1552_v24 = vpop.xlane.xlu0 %1551 }
 0x7dc   :  { %v1555_v25 = vmul.f32 0.0078125, %v1552_v24 }
 0x7de   :  { %v1557_v26 = vadd.f32 1e-12, %v1555_v25 }
 0x7df   :  { %v1554_v27 = vpop.xlane.xlu0 %1553 }
 0x7e0   :  { %4855 = vrsqrt.f32 %v1557_v26  ;;  %v1556_v30 = vmul.f32 0.0078125, %v1554_v27 }
 0x7e2   :  { %v1558_v31 = vadd.f32 1e-12, %v1556_v30 }
 0x7e4   :  { %4857 = vrsqrt.f32 %v1558_v31 }
 0x7ed   :  { %v4856_v12 = vpop.eup %4855 }
 0x7ee   :  { %v1561_v32 = vmul.f32 %v4856_v12, %v1547_v51 }
 0x7f0   :  { %v1569_v16 = vmul.f32 %v3991_v34, %v1561_v32 }
 0x7f1   :  { %v4858_v35 = vpop.eup %4857 }
 0x7f2   :  { %v1562_v29 = vmul.f32 %v4858_v35, %v1548_v9  ;;  %v5452_v36 = vadd.f32 %v3992_v8, %v1569_v16 }
 0x7f4   :  { %v1570_v33 = vmul.f32 %v3991_v34, %v1562_v29 }
 0x7f6   :  { %v5454_v37 = vadd.f32 %v3992_v8, %v1570_v33 }
 0x7f8   :  { %v1596_v38 = vpack.c.bf16 %v5454_v37, %v5452_v36 }
 0x7fa   :  { %1721 = vmatmul.mubr.bf16.vlgmr.msra.gmra.mxu1 %v1596_v38 }
 0x7fb   :  { %2199 = vmatprep.mubr.bf16.mxu1 %v4980_v28 }
 0x8ba   :  { %v1722_v2 = vpop.f32.mrf.mxu1 }
 0x8bb   :  { %v1723_v3 = vadd.f32 %v1722_v2, %v1601_v0 }
 0x8bc   :  { %v1724_v51 = vpop.f32.mrf.mxu1 }
 0x8bd   :  { %v1735_v4 = vmul.f32 0.044715, %v1723_v3  ;;  %v1725_v6 = vadd.f32 %v1724_v51, %v1605_v1  ;;  %v1731_v41 = vmul.f32 0.5, %v1723_v3  ;;  %v4733_v51 = vld [vmem:[#allocation3 + $0x16c] ss:$12 sps:$4 sm:$0xff]  }
 0x8be   :  { %v1726_v7 = vpop.f32.mrf.mxu1  ;;  %2167 = vmatprep.subr.bf16.mxu1 %v4733_v51 }
 0x8bf   :  { %v1739_v9 = vmul.f32 %v1735_v4, %v1723_v3  ;;  %v1736_v52 = vmul.f32 0.044715, %v1725_v6  ;;  %v1727_v10 = vadd.f32 %v1726_v7, %v1601_v0  ;;  %v1732_v38 = vmul.f32 0.5, %v1725_v6  ;;  %v4734_v4 = vld [vmem:[#allocation3 + $0x170] ss:$12 sps:$4 sm:$0xff]  }
 0x8c0   :  { %v1728_v42 = vpop.f32.mrf.mxu1 }
 0x8c1   :  { %v1743_v11 = vmul.f32 %v1739_v9, %v1723_v3  ;;  %v1740_v13 = vmul.f32 %v1736_v52, %v1725_v6  ;;  %v1737_v14 = vmul.f32 0.044715, %v1727_v10  ;;  %v1729_v15 = vadd.f32 %v1728_v42, %v1605_v1 }
 0x8c2   :  { %v1733_v8 = vmul.f32 0.5, %v1727_v10 }
 0x8c3   :  { %v1747_v17 = vadd.f32 %v1743_v11, %v1723_v3  ;;  %v1744_v63 = vmul.f32 %v1740_v13, %v1725_v6  ;;  %v1741_v18 = vmul.f32 %v1737_v14, %v1727_v10  ;;  %v1738_v19 = vmul.f32 0.044715, %v1729_v15  ;;  %v4731_v3 = vld [vmem:[#allocation3 + $0x168] ss:$12 sps:$4 sm:$0xff]   ;;  %v4735_v13 = vld [vmem:[#allocation3 + $0x150] ss:$12 sps:$4 sm:$0xff]  }
 0x8c4   :  { %v1734_v39 = vmul.f32 0.5, %v1729_v15  ;;  %2168 = vmatpush1.bf16.msra.mxu1 %v4731_v3  ;;  %v4737_v11 = vld [vmem:[#allocation3 + $0x154] ss:$12 sps:$4 sm:$0xff]   ;;  %v4738_v14 = vld [vmem:[#allocation3 + $0x158] ss:$12 sps:$4 sm:$0xff]  }
 0x8c5   :  { %v1745_v20 = vmul.f32 %v1741_v18, %v1727_v10  ;;  %v1742_v21 = vmul.f32 %v1738_v19, %v1729_v15  ;;  %v1748_v22 = vadd.f32 %v1744_v63, %v1725_v6  ;;  %v1751_v23 = vmul.f32 0.7978846, %v1747_v17  ;;  %2169 = vmatprep.subr.bf16.mxu1 %v4737_v11  ;;  %v4739_v17 = vld [vmem:[#allocation3 + $0x138] ss:$12 sps:$4 sm:$0xff]   ;;  %v4742_v63 = vld [vmem:[#allocation3 + $0x140] ss:$12 sps:$4 sm:$0xff]  }
 0x8c6   :  { %v4743_v18 = vld [vmem:[#allocation3 + $0x120] ss:$12 sps:$4 sm:$0xff]   ;;  %v4745_v19 = vld [vmem:[#allocation3 + $0x124] ss:$12 sps:$4 sm:$0xff]  }
 0x8c7   :  { %v1749_v24 = vadd.f32 %v1745_v20, %v1727_v10  ;;  %v1746_v25 = vmul.f32 %v1742_v21, %v1729_v15  ;;  %v1752_v26 = vmul.f32 0.7978846, %v1748_v22  ;;  %v4746_v20 = vld [vmem:[#allocation3 + $0x128] ss:$12 sps:$4 sm:$0xff]   ;;  %v4749_v21 = vld [vmem:[#allocation3 + $0x10c] ss:$12 sps:$4 sm:$0xff]  }
 0x8c8   :  { %2170 = vmatpush1.bf16.msra.mxu1 %v4735_v13  ;;  %v4747_v22 = vld [vmem:[#allocation3 + $0x108] ss:$12 sps:$4 sm:$0xff]  }
 0x8c9   :  { %v1753_v27 = vmul.f32 0.7978846, %v1749_v24  ;;  %v1750_v30 = vadd.f32 %v1746_v25, %v1729_v15  ;;  %4859 = vtanh.f32 %v1752_v26  ;;  %v4741_v15 = vld [vmem:[#allocation3 + $0x13c] ss:$12 sps:$4 sm:$0xff]   ;;  %v4753_v24 = vld [vmem:[#allocation3 + $0xf4] ss:$12 sps:$4 sm:$0xff]  }
 0x8ca   :  { %4861 = vtanh.f32 %v1751_v23  ;;  %2171 = vmatprep.subr.bf16.mxu1 %v4741_v15  ;;  %v4750_v23 = vld [vmem:[#allocation3 + $0x110] ss:$12 sps:$4 sm:$0xff]   ;;  %v4754_v26 = vld [vmem:[#allocation3 + $0xf8] ss:$12 sps:$4 sm:$0xff]  }
 0x8cb   :  { %4863 = vtanh.f32 %v1753_v27  ;;  %v1754_v31 = vmul.f32 0.7978846, %v1750_v30  ;;  %v4751_v25 = vld [vmem:[#allocation3 + $0xf0] ss:$12 sps:$4 sm:$0xff]   ;;  %v4755_v30 = vld [vmem:[#allocation3 + $0xd8] ss:$12 sps:$4 sm:$0xff]  }
 0x8cc   :  { %2172 = vmatpush1.bf16.msra.mxu1 %v4739_v17  ;;  %v4757_v27 = vld [vmem:[#allocation3 + $0xdc] ss:$12 sps:$4 sm:$0xff]  }
 0x8cd   :  { %4865 = vtanh.f32 %v1754_v31  ;;  %2173 = vmatprep.subr.bf16.mxu1 %v4745_v19  ;;  %v4758_v31 = vld [vmem:[#allocation3 + $0xe0] ss:$12 sps:$4 sm:$0xff]  }
 0x8d0   :  { %2174 = vmatpush1.bf16.msra.mxu1 %v4743_v18 }
 0x8d1   :  { %2175 = vmatprep.subr.bf16.mxu1 %v4749_v21 }
 0x8d4   :  { %2176 = vmatpush1.bf16.msra.mxu1 %v4747_v22 }
 0x8d5   :  { %2177 = vmatprep.subr.bf16.mxu1 %v4753_v24 }
 0x8d6   :  { %v4860_v12 = vpop.eup %4859 }
 0x8d7   :  { %v4862_v32 = vpop.eup %4861  ;;  %v1760_v35 = vadd.f32 1.0, %v4860_v12  ;;  %v4761_v12 = vld [vmem:[#allocation3 + $0xc4] ss:$12 sps:$4 sm:$0xff]  }
 0x8d8   :  { %v4864_v34 = vpop.eup %4863  ;;  %v1759_v33 = vadd.f32 1.0, %v4862_v32  ;;  %2178 = vmatpush1.bf16.msra.mxu1 %v4751_v25  ;;  %v4759_v32 = vld [vmem:[#allocation3 + $0xc0] ss:$12 sps:$4 sm:$0xff]  }
 0x8d9   :  { %v1761_v29 = vadd.f32 1.0, %v4864_v34  ;;  %v1764_v44 = vmul.f32 %v1760_v35, %v1732_v38  ;;  %2179 = vmatprep.subr.bf16.mxu1 %v4757_v27  ;;  %v4762_v34 = vld [vmem:[#allocation3 + $0xc8] ss:$12 sps:$4 sm:$0xff]  }
 0x8da   :  { %v4866_v16 = vpop.eup %4865  ;;  %v1763_v47 = vmul.f32 %v1759_v33, %v1731_v41  ;;  %v4026_v41 = vld [vmem:[%s5884_s14] ss:$0 sm:$0xff] }
 0x8db   :  { %v1762_v40 = vadd.f32 1.0, %v4866_v16  ;;  %v1765_v43 = vmul.f32 %v1761_v29, %v1733_v8 }
 0x8dc   :  { %2180 = vmatpush1.bf16.msra.mxu1 %v4755_v30 }
 0x8dd   :  { %v1766_v46 = vmul.f32 %v1762_v40, %v1734_v39  ;;  %v1800_v50 = vpack.c.bf16 %v1765_v43, %v1763_v47  ;;  %2181 = vmatprep.subr.bf16.mxu1 %v4761_v12  ;;  %v4027_v47 = vld [vmem:[%s5885_s15] ss:$0 sm:$0xff] }
 0x8df   :  { %v1801_v49 = vpack.c.bf16 %v1766_v46, %v1764_v44 }
 0x8e0   :  { %2182 = vmatpush1.bf16.msra.mxu1 %v4759_v32 }
 0x8e1   :  { %1936 = vmatprep.mubr.bf16.mxu0 %v1801_v49  ;;  %4474 = vmatprep.subr.bf16.mxu1 %v4979_v5 }
 0x8e2   :  { %1937 = vmatmul.mubr.bf16.vlgmr.msra.gmra.mxu0 %v1800_v50 }
 0x8e3   :  { %4470 = vmatprep.mubr.msk.bf16.mxu0 %vm4981_vm0, %v4979_v5  ;;  %4455 = vmatpush3.bf16.msra.mxu0 %v4734_v4 }
 0x8e4   :  { %4456 = vmatprep.subr.bf16.mxu0 %v4979_v5 }
 0x8e7   :  { %4457 = vmatpush3.bf16.msra.mxu0 %v4738_v14 }
 0x8e8   :  { %4458 = vmatprep.subr.bf16.mxu0 %v4979_v5 }
 0x8eb   :  { %4459 = vmatpush3.bf16.msra.mxu0 %v4742_v63 }
 0x8ec   :  { %4460 = vmatprep.subr.bf16.mxu0 %v4979_v5 }
 0x8ef   :  { %4461 = vmatpush3.bf16.msra.mxu0 %v4746_v20 }
 0x8f0   :  { %4462 = vmatprep.subr.bf16.mxu0 %v4979_v5 }
 0x8f3   :  { %4463 = vmatpush3.bf16.msra.mxu0 %v4750_v23 }
 0x8f4   :  { %4464 = vmatprep.subr.bf16.mxu0 %v4979_v5 }
 0x8f7   :  { %4465 = vmatpush3.bf16.msra.mxu0 %v4754_v26 }
 0x8f8   :  { %4466 = vmatprep.subr.bf16.mxu0 %v4979_v5 }
 0x8fb   :  { %4467 = vmatpush3.bf16.msra.mxu0 %v4758_v31 }
 0x8fc   :  { %4468 = vmatprep.subr.bf16.mxu0 %v4979_v5 }
 0x8ff   :  { %4469 = vmatpush3.bf16.msra.mxu0 %v4762_v34 }
 0x900   :  { %4498 = vmatprep.subr.bf16.mxu0 %v4979_v5 }
 0x9a2   :  { %v4231_v48 = vpop.f32.mrf.mxu0 }
 0x9a4   :  { %v4232_v53 = vpop.f32.mrf.mxu0 }
 0x9a5   :  { %v4233_v54 = vadd.f32 %v4232_v53, %v4231_v48  ;;  %v4028_v53 = vld [vmem:[%s5875_s5 + $0x3] sm:$0x7] }
 0x9a6   :  { %v4234_v57 = vpop.f32.mrf.mxu0 }
 0x9a7   :  { %v1939_v59 = vadd.f32 %v4233_v54, %v4009_v45  ;;  %v2027_v54 = vrot.slane %v4028_v53, %v5148_v56 }
 0x9a8   :  { %v4235_v61 = vpop.f32.mrf.mxu0 }
 0x9a9   :  { %v4236_v62 = vadd.f32 %v4235_v61, %v4234_v57  ;;  %v1945_v0 = vadd.f32 %v1939_v59, %v5452_v36  ;;  %v2031_v57 = vrot.slane %v4028_v53, %v5154_v58 }
 0x9ab   :  { %v1942_v1 = vadd.f32 %v4236_v62, %v4009_v45  ;;  %1949 = vadd.xlane.f32.xlu1 %v1945_v0 }
 0x9ad   :  { %v1946_v2 = vadd.f32 %v1942_v1, %v5454_v37 }
 0x9af   :  { %1951 = vadd.xlane.f32.xlu0 %v1946_v2 }
 0xa34   :  { %v1950_v6 = vpop.xlane.xlu1 %1949 }
 0xa35   :  { %v1953_v7 = vmul.f32 0.0078125, %v1950_v6 }
 0xa37   :  { %v5473_v9 = vsub.f32 %v1945_v0, %v1953_v7 }
 0xa38   :  { %v1952_v52 = vpop.xlane.xlu0 %1951 }
 0xa39   :  { %v1954_v10 = vmul.f32 0.0078125, %v1952_v52  ;;  %v1957_v36 = vmul.f32 %v5473_v9, %v5473_v9 }
 0xa3b   :  { %v5477_v42 = vsub.f32 %v1946_v2, %v1954_v10  ;;  %1959 = vadd.xlane.f32.xlu1 %v1957_v36  ;;  %v2035_v2 = vrot.slane %v4028_v53, %v192_v60 }
 0xa3d   :  { %v1958_v37 = vmul.f32 %v5477_v42, %v5477_v42 }
 0xa3f   :  { %1961 = vadd.xlane.f32.xlu0 %v1958_v37 }
 0xac4   :  { %v1960_v35 = vpop.xlane.xlu1 %1959 }
 0xac5   :  { %v1963_v29 = vmul.f32 0.0078125, %v1960_v35 }
 0xac7   :  { %v1965_v16 = vadd.f32 1e-12, %v1963_v29 }
 0xac8   :  { %v1962_v8 = vpop.xlane.xlu0 %1961 }
 0xac9   :  { %4867 = vrsqrt.f32 %v1965_v16  ;;  %v1964_v33 = vmul.f32 0.0078125, %v1962_v8 }
 0xacb   :  { %v1966_v38 = vadd.f32 1e-12, %v1964_v33 }
 0xacd   :  { %4869 = vrsqrt.f32 %v1966_v38 }
 0xad6   :  { %v4868_v39 = vpop.eup %4867 }
 0xad7   :  { %v1969_v40 = vmul.f32 %v4868_v39, %v5473_v9 }
 0xad9   :  { %v1977_v46 = vmul.f32 %v4026_v41, %v1969_v40 }
 0xada   :  { %v4870_v43 = vpop.eup %4869 }
 0xadb   :  { %v1970_v44 = vmul.f32 %v4870_v43, %v5477_v42  ;;  %v5497_v50 = vadd.f32 %v4027_v47, %v1977_v46 }
 0xadd   :  { %v1978_v49 = vmul.f32 %v4026_v41, %v1970_v44 }
 0xadf   :  { %v5499_v48 = vadd.f32 %v4027_v47, %v1978_v49 }
 0xae1   :  { %v2022_v45 = vpack.c.bf16 %v5499_v48, %v5497_v50 }
 0xae3   :  { %2200 = vmatmul.mubr.bf16.vlgmr.msra.gmra.mxu1 %v2022_v45  ;;  %4471 = vmatmul.mubr.bf16.vlgmr.msra.gmra.mxu0 %v2022_v45 }
 0xae4   :  { %4476 = vmatprep.mubr.msk.bf16.mxu1 %vm4981_vm0, %v4979_v5  ;;  %4500 = vmatprep.mubr.msk.bf16.mxu0 %vm4981_vm0, %v4979_v5 }
 0xba3   :  { %v2201_v59 = vpop.f32.mrf.mxu1  ;;  %v5512_v61 = vpop.f32.mrf.mxu0 }
 0xba4   :  { %v2202_v62 = vadd.f32 %v2201_v59, %v2027_v54  ;;  %v5550_v12 = vadd.f32 %v5512_v61, %v2035_v2 }
 0xba5   :  { %v2203_v0 = vpop.f32.mrf.mxu1  ;;  %v4472_v1 = vpop.f32.mrf.mxu0 }
 0xba6   :  { %v2204_v3 = vadd.f32 %v2203_v0, %v2031_v57  ;;  %2252 = vrot.lane.b32.xlu0 %v2202_v62, %s4982_s0  ;;  %v2271_v42 = vpack.c.bf16 %v2202_v62, %v2202_v62  ;;  %v2327_v29 = vpack.c.bf16 %v5550_v12, %v5550_v12 }
 0xba7   :  { %v2205_v51 = vpop.f32.mrf.mxu1  ;;  %v2247_v4 = vpop.f32.mrf.mxu0 }
 0xba8   :  { %v5517_v6 = vadd.f32 %v2247_v4, %v2035_v2  ;;  %2280 = vrot.lane.b32.xlu1 %v2204_v3, %s4982_s0  ;;  %v2299_v7 = vpack.c.bf16 %v2204_v3, %v2204_v3  ;;  %v2206_v37 = vadd.f32 %v2205_v51, %v2027_v54  ;;  %v2819_v39 = vsel %vm1026_vm2, %v2327_v29, 0  ;;  %v4921_v54 = vld [vmem:[%s5902_s23] ss:$0 sm:$0xff] }
 0xba9   :  { %v2207_v9 = vpop.f32.mrf.mxu1  ;;  %v4473_v52 = vpop.f32.mrf.mxu0 }
 0xbaa   :  { %v2208_v10 = vadd.f32 %v2207_v9, %v2031_v57  ;;  %2258 = vrot.lane.b32.xlu0 %v2202_v62, %s4983_s21  ;;  %v2339_v36 = vsel %vm493_vm1, %v2299_v7, 0  ;;  %v2275_v11 = vpack.c.bf16 %v2206_v37, %v2206_v37 }
 0xbab   :  { %4475 = vmatpush3.bf16.xpose.msra.mxu1 %v2339_v36 }
 0xbac   :  { %2283 = vrot.lane.b32.xlu1 %v2204_v3, %s4977_s30  ;;  %v2303_v55 = vpack.c.bf16 %v2208_v10, %v2208_v10  ;;  %4480 = vmatprep.subr.bf16.mxu1 %v4979_v5 }
 0xbae   :  { %2293 = vrot.lane.b32.xlu0 %v2208_v10, %s4977_s30  ;;  %v2523_v60 = vsel %vm493_vm1, %v2303_v55, 0  ;;  %v4923_v55 = vld [vmem:[%s5902_s23 + $0x1] ss:$0 sm:$0xff] }
 0xbaf   :  { %4499 = vmatpush3.bf16.xpose.msra.mxu0 %v2523_v60 }
 0xbb0   :  { %2255 = vrot.lane.b32.xlu1 %v2202_v62, %s4977_s30  ;;  %4510 = vmatprep.subr.bf16.mxu0 %v4979_v5 }
 0xbb2   :  { %2296 = vrot.lane.b32.xlu0 %v2208_v10, %s4983_s21  ;;  %4477 = vmatmul.mubr.msk.bf16.vlgmr.msra.gmra.mxu1 %vm493_vm1, %v2271_v42 }
 0xbb3   :  { %4482 = vmatprep.mubr.msk.bf16.mxu1 %vm4981_vm0, %v4979_v5 }
 0xbb4   :  { %2286 = vrot.lane.b32.xlu1 %v2204_v3, %s4983_s21  ;;  %v4922_v3 = vld [vmem:[%s5902_s23 + $0x4] ss:$0 sm:$0xff] }
 0xbb6   :  { %4501 = vmatmul.mubr.msk.bf16.vlgmr.msra.gmra.mxu0 %vm493_vm1, %v2275_v11  ;;  %2268 = vrot.lane.b32.xlu0 %v2206_v37, %s4983_s21 }
 0xbb7   :  { %4512 = vmatprep.mubr.msk.bf16.mxu0 %vm4981_vm0, %v4979_v5 }
 0xbb8   :  { %2290 = vrot.lane.b32.xlu1 %v2208_v10, %s4982_s0 }
 0xbbc   :  { %2262 = vrot.lane.b32.xlu1 %v2206_v37, %s4982_s0 }
 0xbc0   :  { %2265 = vrot.lane.b32.xlu1 %v2206_v37, %s4977_s30 }
 0xc18   :  { %v2253_v13 = vpop.permute.xlu0 %2252 }
 0xc19   :  { %v2272_v23 = vpack.c.bf16 %v2253_v13, %v2253_v13 }
 0xc1a   :  { %v2281_v14 = vpop.permute.xlu1 %2280 }
 0xc1b   :  { %v2300_v15 = vpack.c.bf16 %v2281_v14, %v2281_v14 }
 0xc1c   :  { %v2259_v17 = vpop.permute.xlu0 %2258 }
 0xc1d   :  { %v2385_v63 = vsel %vm493_vm1, %v2300_v15, 0  ;;  %v2274_v8 = vpack.c.bf16 %v2259_v17, %v2259_v17  ;;  %v4924_v17 = vld [vmem:[%s5902_s23 + $0x2] ss:$0 sm:$0xff] }
 0xc1e   :  { %v2284_v18 = vpop.permute.xlu1 %2283  ;;  %4481 = vmatpush3.bf16.xpose.msra.mxu1 %v2385_v63 }
 0xc1f   :  { %4486 = vmatprep.subr.bf16.mxu1 %v4979_v5  ;;  %v2301_v20 = vpack.c.bf16 %v2284_v18, %v2284_v18 }
 0xc20   :  { %v2294_v19 = vpop.permute.xlu0 %2293 }
 0xc21   :  { %v2305_v21 = vpack.c.bf16 %v2294_v19, %v2294_v19  ;;  %v2431_v25 = vsel %vm493_vm1, %v2301_v20, 0 }
 0xc22   :  { %v2256_v22 = vpop.permute.xlu1 %2255 }
 0xc23   :  { %v2615_v24 = vsel %vm493_vm1, %v2305_v21, 0  ;;  %v2273_v31 = vpack.c.bf16 %v2256_v22, %v2256_v22 }
 0xc24   :  { %4511 = vmatpush3.bf16.xpose.msra.mxu0 %v2615_v24  ;;  %v2297_v40 = vpop.permute.xlu0 %2296 }
 0xc25   :  { %4483 = vmatmul.mubr.msk.bf16.vlgmr.msra.gmra.mxu1 %vm493_vm1, %v2272_v23  ;;  %4522 = vmatprep.subr.bf16.mxu0 %v4979_v5  ;;  %v2306_v41 = vpack.c.bf16 %v2297_v40, %v2297_v40 }
 0xc26   :  { %v2287_v26 = vpop.permute.xlu1 %2286  ;;  %4487 = vmatpush3.bf16.xpose.msra.mxu1 %v2431_v25  ;;  %4488 = vmatprep.mubr.msk.bf16.mxu1 %vm4981_vm0, %v4979_v5 }
 0xc27   :  { %4492 = vmatprep.subr.bf16.mxu1 %v4979_v5  ;;  %v2302_v27 = vpack.c.bf16 %v2287_v26, %v2287_v26  ;;  %v2661_v44 = vsel %vm493_vm1, %v2306_v41, 0  ;;  %v4927_v41 = vld [vmem:[%s5902_s23 + $0x5] ss:$0 sm:$0xff] }
 0xc28   :  { %v2269_v46 = vpop.permute.xlu0 %2268 }
 0xc29   :  { %v2477_v32 = vsel %vm493_vm1, %v2302_v27, 0  ;;  %v2278_v47 = vpack.c.bf16 %v2269_v46, %v2269_v46  ;;  %v4925_v27 = vld [vmem:[%s5902_s23 + $0x6] ss:$0 sm:$0xff] }
 0xc2a   :  { %v2291_v30 = vpop.permute.xlu1 %2290 }
 0xc2b   :  { %v2304_v35 = vpack.c.bf16 %v2291_v30, %v2291_v30 }
 0xc2d   :  { %4489 = vmatmul.mubr.msk.bf16.vlgmr.msra.gmra.mxu1 %vm493_vm1, %v2273_v31  ;;  %v2569_v38 = vsel %vm493_vm1, %v2304_v35, 0  ;;  %v4926_v31 = vld [vmem:[%s5902_s23 + $0x3] ss:$0 sm:$0xff] }
 0xc2e   :  { %v2263_v34 = vpop.permute.xlu1 %2262  ;;  %4493 = vmatpush3.bf16.xpose.msra.mxu1 %v2477_v32  ;;  %4494 = vmatprep.mubr.msk.bf16.mxu1 %vm4981_vm0, %v4979_v5 }
 0xc2f   :  { %4504 = vmatprep.subr.bf16.mxu1 %v4979_v5  ;;  %v2276_v43 = vpack.c.bf16 %v2263_v34, %v2263_v34 }
 0xc32   :  { %v2266_v16 = vpop.permute.xlu1 %2265 }
 0xc33   :  { %v2277_v33 = vpack.c.bf16 %v2266_v16, %v2266_v16 }
 0xc35   :  { %4495 = vmatmul.mubr.msk.bf16.vlgmr.msra.gmra.mxu1 %vm493_vm1, %v2274_v8  ;;  %4513 = vmatmul.mubr.msk.bf16.vlgmr.msra.gmra.mxu0 %vm493_vm1, %v2277_v33 }
 0xc36   :  { %4523 = vmatpush3.bf16.msra.mxu0 %v2819_v39  ;;  %4505 = vmatpush3.bf16.xpose.msra.mxu1 %v2569_v38 }
 0xc37   :  { %4506 = vmatprep.mubr.msk.bf16.mxu1 %vm4981_vm0, %v4979_v5  ;;  %4516 = vmatprep.subr.bf16.mxu1 %v4979_v5 }
 0xc38   :  { %4524 = vmatprep.mubr.msk.bf16.mxu0 %vm4981_vm0, %v4979_v5  ;;  %4534 = vmatprep.subr.bf16.mxu0 %v4979_v5 }
 0xc3d   :  { %4507 = vmatmul.mubr.msk.bf16.vlgmr.msra.gmra.mxu1 %vm493_vm1, %v2276_v43 }
 0xc3e   :  { %4517 = vmatpush3.bf16.xpose.msra.mxu1 %v2661_v44  ;;  %4518 = vmatprep.mubr.msk.bf16.mxu1 %vm4981_vm0, %v4979_v5 }
 0xc3f   :  { %4528 = vmatprep.subr.bf16.mxu1 %v4979_v5 }
 0xc45   :  { %4519 = vmatmul.mubr.msk.bf16.vlgmr.msra.gmra.mxu1 %vm493_vm1, %v2278_v47 }
 0xc46   :  { %4530 = vmatprep.mubr.msk.bf16.mxu1 %vm4981_vm0, %v4979_v5 }
 0xc72   :  { %v2375_v49 = vpop.f32.mrf.mxu1 }
 0xc73   :  { %v2703_v45 = vmul.f32 0.17677669, %v2375_v49 }
 0xc74   :  { %v4478_v53 = vpop.f32.mrf.mxu1 }
 0xc75   :  { %v2711_v57 = vadd.f32 %v4921_v54, %v2703_v45 }
 0xc76   :  { %v2378_v59 = vpop.f32.mrf.mxu1  ;;  %v2559_v61 = vpop.f32.mrf.mxu0 }
 0xc77   :  { %v2707_v62 = vmul.f32 0.17677669, %v2559_v61  ;;  %v2719_v0 = vsel %vm926_vm3, %v2711_v57, -inf }
 0xc78   :  { %v4502_v1 = vpop.f32.mrf.mxu0  ;;  %2720 = vmax.xlane.f32.xlu1 %v2719_v0  ;;  %v4479_v2 = vpop.f32.mrf.mxu1 }
 0xc79   :  { %v2715_v51 = vadd.f32 %v4922_v3, %v2707_v62  ;;  %v4928_v2 = vld [vmem:[%s5902_s23 + $0x7] ss:$0 sm:$0xff] }
 0xc7a   :  { %v2562_v4 = vpop.f32.mrf.mxu0 }
 0xc7b   :  { %v2731_v7 = vsel %vm926_vm3, %v2715_v51, -inf }
 0xc7c   :  { %v4503_v9 = vpop.f32.mrf.mxu0  ;;  %2732 = vmax.xlane.f32.xlu1 %v2731_v7 }
 0xce5   :  { %v2421_v52 = vpop.f32.mrf.mxu1 }
 0xce6   :  { %v2704_v10 = vmul.f32 0.17677669, %v2421_v52 }
 0xce7   :  { %v4484_v36 = vpop.f32.mrf.mxu1 }
 0xce8   :  { %v5588_v60 = vadd.f32 %v4923_v55, %v2704_v10 }
 0xce9   :  { %v2424_v42 = vpop.f32.mrf.mxu1 }
 0xcea   :  { %v2722_v37 = vsel %vm926_vm3, %v5588_v60, -inf }
 0xceb   :  { %2723 = vmax.xlane.f32.xlu0 %v2722_v37  ;;  %v4485_v11 = vpop.f32.mrf.mxu1 }
 0xced   :  { %v2467_v13 = vpop.f32.mrf.mxu1 }
 0xcee   :  { %v2705_v14 = vmul.f32 0.17677669, %v2467_v13 }
 0xcef   :  { %v4490_v15 = vpop.f32.mrf.mxu1 }
 0xcf0   :  { %v5595_v63 = vadd.f32 %v4924_v17, %v2705_v14 }
 0xcf1   :  { %v2470_v18 = vpop.f32.mrf.mxu1 }
 0xcf2   :  { %v2725_v19 = vsel %vm926_vm3, %v5595_v63, -inf }
 0xcf3   :  { %2726 = vmax.xlane.f32.xlu0 %v2725_v19  ;;  %v4491_v20 = vpop.f32.mrf.mxu1 }
 0xcf5   :  { %v2513_v21 = vpop.f32.mrf.mxu1  ;;  %v2651_v22 = vpop.f32.mrf.mxu0 }
 0xcf6   :  { %v2706_v23 = vmul.f32 0.17677669, %v2513_v21  ;;  %v2709_v24 = vmul.f32 0.17677669, %v2651_v22 }
 0xcf7   :  { %v4496_v25 = vpop.f32.mrf.mxu1  ;;  %v4514_v26 = vpop.f32.mrf.mxu0 }
 0xcf8   :  { %v2717_v30 = vadd.f32 %v4925_v27, %v2709_v24  ;;  %v5605_v32 = vadd.f32 %v4926_v31, %v2706_v23 }
 0xcf9   :  { %v2516_v34 = vpop.f32.mrf.mxu1  ;;  %v2654_v35 = vpop.f32.mrf.mxu0 }
 0xcfa   :  { %v2737_v29 = vsel %vm926_vm3, %v2717_v30, -inf  ;;  %v2728_v16 = vsel %vm926_vm3, %v5605_v32, -inf }
 0xcfb   :  { %v4515_v8 = vpop.f32.mrf.mxu0  ;;  %2738 = vmax.xlane.f32.xlu1 %v2737_v29  ;;  %2729 = vmax.xlane.f32.xlu0 %v2728_v16  ;;  %v4497_v33 = vpop.f32.mrf.mxu1 }
 0xcfd   :  { %v2605_v38 = vpop.f32.mrf.mxu1 }
 0xcfe   :  { %v2708_v39 = vmul.f32 0.17677669, %v2605_v38 }
 0xcff   :  { %v4508_v40 = vpop.f32.mrf.mxu1 }
 0xd00   :  { %v5613_v43 = vadd.f32 %v4927_v41, %v2708_v39 }
 0xd01   :  { %v2721_v44 = vpop.xlane.xlu1 %2720  ;;  %v2608_v46 = vpop.f32.mrf.mxu1 }
 0xd02   :  { %v2743_v47 = vsub.f32 %v2711_v57, %v2721_v44  ;;  %v2734_v49 = vsel %vm926_vm3, %v5613_v43, -inf }
 0xd03   :  { %2735 = vmax.xlane.f32.xlu0 %v2734_v49  ;;  %v4509_v45 = vpop.f32.mrf.mxu1 }
 0xd04   :  { %v2751_v53 = vmul.f32 1.442695, %v2743_v47 }
 0xd05   :  { %v2733_v54 = vpop.xlane.xlu1 %2732  ;;  %v2697_v59 = vpop.f32.mrf.mxu1 }
 0xd06   :  { %4871 = vpow2.f32 %v2751_v53  ;;  %v2747_v61 = vsub.f32 %v2715_v51, %v2733_v54  ;;  %v2710_v62 = vmul.f32 0.17677669, %v2697_v59 }
 0xd07   :  { %v4520_v0 = vpop.f32.mrf.mxu1 }
 0xd08   :  { %v2759_v1 = vmul.f32 1.442695, %v2747_v61  ;;  %v2718_v3 = vadd.f32 %v4928_v2, %v2710_v62 }
 0xd09   :  { %v2700_v4 = vpop.f32.mrf.mxu1 }
 0xd0a   :  { %4873 = vpow2.f32 %v2759_v1  ;;  %v2740_v57 = vsel %vm926_vm3, %v2718_v3, -inf }
 0xd0b   :  { %2741 = vmax.xlane.f32.xlu0 %v2740_v57  ;;  %v4521_v7 = vpop.f32.mrf.mxu1 }
 0xd13   :  { %v4872_v9 = vpop.eup %4871 }
 0xd14   :  { %v2767_v52 = vsel %vm926_vm3, %v4872_v9, 0.0 }
 0xd15   :  { %2768 = vadd.xlane.f32.xlu1 %v2767_v52 }
 0xd17   :  { %v5622_v10 = vpop.eup %4873 }
 0xd18   :  { %v2779_v51 = vsel %vm926_vm3, %v5622_v10, 0.0 }
 0xd19   :  { %2780 = vadd.xlane.f32.xlu1 %v2779_v51 }
 0xd2a   :  { %2311 = vrot.lane.b32.xlu1 %v5550_v12, %s4977_s30 }
 0xd2e   :  { %2314 = vrot.lane.b32.xlu1 %v5550_v12, %s4983_s21 }
 0xd74   :  { %v2724_v36 = vpop.xlane.xlu0 %2723 }
 0xd75   :  { %v2744_v55 = vsub.f32 %v5588_v60, %v2724_v36 }
 0xd77   :  { %v2753_v42 = vmul.f32 1.442695, %v2744_v55 }
 0xd79   :  { %4875 = vpow2.f32 %v2753_v42 }
 0xd7c   :  { %v2727_v37 = vpop.xlane.xlu0 %2726 }
 0xd7d   :  { %v2745_v11 = vsub.f32 %v5595_v63, %v2727_v37 }
 0xd7f   :  { %v2755_v17 = vmul.f32 1.442695, %v2745_v11 }
 0xd84   :  { %v2739_v13 = vpop.xlane.xlu1 %2738  ;;  %v2730_v20 = vpop.xlane.xlu0 %2729 }
 0xd85   :  { %v2749_v14 = vsub.f32 %v2717_v30, %v2739_v13  ;;  %v2746_v30 = vsub.f32 %v5605_v32, %v2730_v20 }
 0xd86   :  { %v4876_v15 = vpop.eup %4875 }
 0xd87   :  { %v2763_v18 = vmul.f32 1.442695, %v2749_v14  ;;  %v2770_v19 = vsel %vm926_vm3, %v4876_v15, 0.0  ;;  %v2757_v29 = vmul.f32 1.442695, %v2746_v30 }
 0xd88   :  { %2771 = vadd.xlane.f32.xlu0 %v2770_v19 }
 0xd89   :  { %4877 = vpow2.f32 %v2763_v18 }
 0xd8a   :  { %4879 = vpow2.f32 %v2755_v17 }
 0xd8c   :  { %v2736_v21 = vpop.xlane.xlu0 %2735 }
 0xd8d   :  { %v2748_v16 = vsub.f32 %v5613_v43, %v2736_v21 }
 0xd8f   :  { %v2761_v38 = vmul.f32 1.442695, %v2748_v16 }
 0xd94   :  { %v2742_v22 = vpop.xlane.xlu0 %2741 }
 0xd95   :  { %v2750_v23 = vsub.f32 %v2718_v3, %v2742_v22 }
 0xd96   :  { %v5633_v60 = vpop.eup %4877 }
 0xd97   :  { %v2765_v24 = vmul.f32 1.442695, %v2750_v23  ;;  %v2785_v63 = vsel %vm926_vm3, %v5633_v60, 0.0  ;;  %v4880_v25 = vpop.eup %4879 }
 0xd98   :  { %2786 = vadd.xlane.f32.xlu1 %v2785_v63  ;;  %v2773_v26 = vsel %vm926_vm3, %v4880_v25, 0.0 }
 0xd99   :  { %4881 = vpow2.f32 %v2765_v24 }
 0xd9c   :  { %2774 = vadd.xlane.f32.xlu1 %v2773_v26 }
 0xd9e   :  { %v2769_v27 = vpop.xlane.xlu1 %2768  ;;  %2308 = vrot.lane.b32.xlu0 %v5550_v12, %s4982_s0 }
 0xd9f   :  { %4883 = vrcp.f32 %v2769_v27 }
 0xda0   :  { %4885 = vpow2.f32 %v2757_v29 }
 0xda1   :  { %4887 = vpow2.f32 %v2761_v38 }
 0xda2   :  { %v2781_v31 = vpop.xlane.xlu1 %2780 }
 0xda6   :  { %v5641_v34 = vpop.eup %4881  ;;  %v2312_v8 = vpop.permute.xlu1 %2311 }
 0xda7   :  { %v2788_v35 = vsel %vm926_vm3, %v5641_v34, 0.0  ;;  %v2329_v39 = vpack.c.bf16 %v2312_v8, %v2312_v8 }
 0xda8   :  { %2789 = vadd.xlane.f32.xlu1 %v2788_v35 }
 0xda9   :  { %v2911_v32 = vsel %vm1026_vm2, %v2329_v39, 0 }
 0xdaa   :  { %v2315_v54 = vpop.permute.xlu1 %2314 }
 0xdab   :  { %v2330_v61 = vpack.c.bf16 %v2315_v54, %v2315_v54 }
 0xdac   :  { %v4884_v33 = vpop.eup %4883 }
 0xdad   :  { %v2799_v40 = vmul.f32 %v4884_v33, %v4872_v9  ;;  %v5651_v41 = vpop.eup %4885  ;;  %v2957_v2 = vsel %vm1026_vm2, %v2330_v61, 0  ;;  %v2331_v9 = vpack.c.bf16 %v5517_v6, %v5517_v6 }
 0xdae   :  { %v2776_v43 = vsel %vm926_vm3, %v5651_v41, 0.0  ;;  %v5657_v44 = vpop.eup %4887 }
 0xdaf   :  { %v2807_v12 = vpack.c.bf16 %v2799_v40, %v2799_v40  ;;  %v2782_v46 = vsel %vm926_vm3, %v5657_v44, 0.0  ;;  %v3003_v36 = vsel %vm1026_vm2, %v2331_v9, 0 }
 0xdb1   :  { %4525 = vmatmul.mubr.msk.bf16.vlgmr.msra.gmra.mxu0 %vm926_vm3, %v2807_v12 }
 0xdb2   :  { %4535 = vmatpush3.bf16.msra.mxu0 %v2911_v32  ;;  %4536 = vmatprep.mubr.msk.bf16.mxu0 %vm4981_vm0, %v4979_v5 }
 0xdb3   :  { %4546 = vmatprep.subr.bf16.mxu0 %v4979_v5 }
 0xdb9   :  { %2321 = vrot.lane.b32.xlu1 %v5517_v6, %s4977_s30 }
 0xdbd   :  { %2777 = vadd.xlane.f32.xlu0 %v2776_v43 }
 0xdc1   :  { %2783 = vadd.xlane.f32.xlu0 %v2782_v46 }
 0xdd7   :  { %2318 = vrot.lane.b32.xlu0 %v5517_v6, %s4982_s0 }
 0xddb   :  { %2324 = vrot.lane.b32.xlu0 %v5517_v6, %s4983_s21 }
 0xe11   :  { %v2772_v47 = vpop.xlane.xlu0 %2771 }
 0xe12   :  { %4889 = vrcp.f32 %v2772_v47 }
 0xe15   :  { %v2309_v49 = vpop.permute.xlu0 %2308 }
 0xe16   :  { %v2328_v45 = vpack.c.bf16 %v2309_v49, %v2309_v49 }
 0xe18   :  { %v2865_v53 = vsel %vm1026_vm2, %v2328_v45, 0  ;;  %v4765_v45 = vld [vmem:[%s5876_s6 + $0x68] sm:$0xff]  }
 0xe19   :  { %4529 = vmatpush3.bf16.msra.mxu1 %v2865_v53 }
 0xe1a   :  { %4540 = vmatprep.subr.bf16.mxu1 %v4979_v5 }
 0xe1f   :  { %v4890_v59 = vpop.eup %4889 }
 0xe20   :  { %v2800_v62 = vmul.f32 %v4890_v59, %v4876_v15  ;;  %v4766_v59 = vld [vmem:[%s5876_s6 + $0x60] sm:$0xff]  }
 0xe21   :  { %v2787_v0 = vpop.xlane.xlu1 %2786 }
 0xe22   :  { %v2808_v1 = vpack.c.bf16 %v2800_v62, %v2800_v62 }
 0xe24   :  { %4531 = vmatmul.mubr.msk.bf16.vlgmr.msra.gmra.mxu1 %vm926_vm3, %v2808_v1  ;;  %v4767_v1 = vld [vmem:[%s5876_s6 + $0x58] sm:$0xff]  }
 0xe25   :  { %4541 = vmatpush3.bf16.msra.mxu1 %v2957_v2  ;;  %v2775_v3 = vpop.xlane.xlu1 %2774  ;;  %4542 = vmatprep.mubr.msk.bf16.mxu1 %vm4981_vm0, %v4979_v5 }
 0xe26   :  { %4891 = vrcp.f32 %v2775_v3  ;;  %4552 = vmatprep.subr.bf16.mxu1 %v4979_v5  ;;  %v4768_v3 = vld [vmem:[%s5876_s6 + $0x50] sm:$0xff]  }
 0xe27   :  { %4893 = vrcp.f32 %v2781_v31 }
 0xe28   :  { %4895 = vrcp.f32 %v2787_v0 }
 0xe31   :  { %v2790_v57 = vpop.xlane.xlu1 %2789 }
 0xe33   :  { %v4892_v4 = vpop.eup %4891 }
 0xe34   :  { %v2801_v7 = vmul.f32 %v4892_v4, %v4880_v25  ;;  %v4894_v51 = vpop.eup %4893 }
 0xe35   :  { %v2322_v55 = vpop.permute.xlu1 %2321  ;;  %v2803_v42 = vmul.f32 %v4894_v51, %v5622_v10  ;;  %v4896_v13 = vpop.eup %4895  ;;  %v4770_v51 = vld [vmem:[%s5876_s6 + $0x40] sm:$0xff]  }
 0xe36   :  { %v2809_v52 = vpack.c.bf16 %v2801_v7, %v2801_v7  ;;  %v2333_v37 = vpack.c.bf16 %v2322_v55, %v2322_v55  ;;  %v2805_v14 = vmul.f32 %v4896_v13, %v5633_v60 }
 0xe37   :  { %v2811_v11 = vpack.c.bf16 %v2803_v42, %v2803_v42 }
 0xe38   :  { %4537 = vmatmul.mubr.msk.bf16.vlgmr.msra.gmra.mxu0 %vm926_vm3, %v2809_v52  ;;  %v3095_v6 = vsel %vm1026_vm2, %v2333_v37, 0  ;;  %v2813_v17 = vpack.c.bf16 %v2805_v14, %v2805_v14 }
 0xe39   :  { %4547 = vmatpush3.bf16.msra.mxu0 %v3003_v36  ;;  %4548 = vmatprep.mubr.msk.bf16.mxu0 %vm4981_vm0, %v4979_v5 }
 0xe3a   :  { %4558 = vmatprep.subr.bf16.mxu0 %v4979_v5 }
 0xe40   :  { %4549 = vmatmul.mubr.msk.bf16.vlgmr.msra.gmra.mxu0 %vm926_vm3, %v2811_v11 }
 0xe41   :  { %4559 = vmatpush3.bf16.msra.mxu0 %v3095_v6  ;;  %4560 = vmatprep.mubr.msk.bf16.mxu0 %vm4981_vm0, %v4979_v5 }
 0xe42   :  { %4570 = vmatprep.subr.bf16.mxu0 %v4979_v5 }
 0xe46   :  { %v2778_v15 = vpop.xlane.xlu0 %2777 }
 0xe47   :  { %4897 = vrcp.f32 %v2778_v15 }
 0xe48   :  { %4561 = vmatmul.mubr.msk.bf16.vlgmr.msra.gmra.mxu0 %vm926_vm3, %v2813_v17 }
 0xe49   :  { %4586 = vmatprep.mubr.msk.bf16.mxu0 %vm4981_vm0, %v4979_v5 }
 0xe4a   :  { %v2784_v10 = vpop.xlane.xlu0 %2783 }
 0xe4b   :  { %4899 = vrcp.f32 %v2784_v10 }
 0xe4c   :  { %4901 = vrcp.f32 %v2790_v57  ;;  %v4769_v57 = vld [vmem:[%s5876_s6 + $0x48] sm:$0xff]  }
 0xe4e   :  { %v2319_v18 = vpop.permute.xlu0 %2318 }
 0xe4f   :  { %v2332_v20 = vpack.c.bf16 %v2319_v18, %v2319_v18 }
 0xe51   :  { %v3049_v60 = vsel %vm1026_vm2, %v2332_v20, 0 }
 0xe52   :  { %v2325_v24 = vpop.permute.xlu0 %2324 }
 0xe53   :  { %v2334_v25 = vpack.c.bf16 %v2325_v24, %v2325_v24 }
 0xe54   :  { %v4898_v19 = vpop.eup %4897 }
 0xe55   :  { %v2802_v21 = vmul.f32 %v4898_v19, %v5651_v41  ;;  %v3141_v30 = vsel %vm1026_vm2, %v2334_v25, 0 }
 0xe57   :  { %v2810_v22 = vpack.c.bf16 %v2802_v21, %v2802_v21 }
 0xe58   :  { %v4900_v23 = vpop.eup %4899 }
 0xe59   :  { %4543 = vmatmul.mubr.msk.bf16.vlgmr.msra.gmra.mxu1 %vm926_vm3, %v2810_v22  ;;  %v2804_v63 = vmul.f32 %v4900_v23, %v5657_v44  ;;  %v4902_v27 = vpop.eup %4901 }
 0xe5a   :  { %4553 = vmatpush3.bf16.msra.mxu1 %v3049_v60  ;;  %4554 = vmatprep.mubr.msk.bf16.mxu1 %vm4981_vm0, %v4979_v5  ;;  %v2806_v31 = vmul.f32 %v4902_v27, %v5641_v34  ;;  %v4763_v34 = vld [vmem:[%s5876_s6 + $0x78] sm:$0xff]  }
 0xe5b   :  { %4564 = vmatprep.subr.bf16.mxu1 %v4979_v5  ;;  %v2812_v26 = vpack.c.bf16 %v2804_v63, %v2804_v63  ;;  %4571 = vmatpush3.bf16.msra.mxu0 %v4763_v34 }
 0xe5c   :  { %v2814_v35 = vpack.c.bf16 %v2806_v31, %v2806_v31  ;;  %4572 = vmatprep.subr.bf16.mxu0 %v4979_v5 }
 0xe61   :  { %4555 = vmatmul.mubr.msk.bf16.vlgmr.msra.gmra.mxu1 %vm926_vm3, %v2812_v26 }
 0xe62   :  { %4565 = vmatpush3.bf16.msra.mxu1 %v3141_v30  ;;  %4566 = vmatprep.mubr.msk.bf16.mxu1 %vm4981_vm0, %v4979_v5 }
 0xe69   :  { %4567 = vmatmul.mubr.msk.bf16.vlgmr.msra.gmra.mxu1 %vm926_vm3, %v2814_v35 }
 0xe6a   :  { %3515 = vmatprep.mubr.bf16.mxu1 %v4980_v28  ;;  %v4764_v28 = vld [vmem:[%s5876_s6 + $0x70] sm:$0xff]  }
 0xe6b   :  { %4573 = vmatpush3.bf16.msra.mxu0 %v4764_v28 }
 0xe6c   :  { %4574 = vmatprep.subr.bf16.mxu0 %v4979_v5 }
 0xe6f   :  { %4575 = vmatpush3.bf16.msra.mxu0 %v4765_v45  ;;  %v4776_v45 = vld [vmem:[%s5880_s10 + $0xe4] ss:$8 sps:$4 sm:$0xff]  }
 0xe70   :  { %4576 = vmatprep.subr.bf16.mxu0 %v4979_v5 }
 0xe71   :  { %v5703_v29 = vpop.f32.mrf.mxu0 }
 0xe73   :  { %v4526_v16 = vpop.f32.mrf.mxu0  ;;  %4577 = vmatpush3.bf16.msra.mxu0 %v4766_v59  ;;  %v4777_v59 = vld [vmem:[%s5880_s10 + $0xd0] ss:$8 sps:$4 sm:$0xff]  }
 0xe74   :  { %4578 = vmatprep.subr.bf16.mxu0 %v4979_v5  ;;  %v4086_v16 = vld [vmem:[%s5877_s7 + $0x1] ss:$0 sm:$0xff] }
 0xe75   :  { %v2858_v8 = vpop.f32.mrf.mxu0 }
 0xe77   :  { %v4527_v33 = vpop.f32.mrf.mxu0  ;;  %4579 = vmatpush3.bf16.msra.mxu0 %v4767_v1  ;;  %v4783_v1 = vld [vmem:[%s5880_s10 + $0xb0] ss:$8 sps:$4 sm:$0xff]  }
 0xe78   :  { %4580 = vmatprep.subr.bf16.mxu0 %v4979_v5 }
 0xe7b   :  { %4581 = vmatpush3.bf16.msra.mxu0 %v4768_v3  ;;  %v4786_v3 = vld [vmem:[%s5880_s10 + $0xa0] ss:$8 sps:$4 sm:$0xff]  }
 0xe7c   :  { %4582 = vmatprep.subr.bf16.mxu0 %v4979_v5 }
 0xe7f   :  { %4583 = vmatpush3.bf16.msra.mxu0 %v4769_v57  ;;  %v4789_v57 = vld [vmem:[%s5880_s10 + $0x90] ss:$8 sps:$4 sm:$0xff]  }
 0xe80   :  { %4584 = vmatprep.subr.bf16.mxu0 %v4979_v5 }
 0xe83   :  { %4585 = vmatpush3.bf16.msra.mxu0 %v4770_v51 }
 0xee4   :  { %v2901_v38 = vpop.f32.mrf.mxu1 }
 0xee6   :  { %v4532_v39 = vpop.f32.mrf.mxu1 }
 0xee8   :  { %v2904_v40 = vpop.f32.mrf.mxu1 }
 0xeea   :  { %v4533_v12 = vpop.f32.mrf.mxu1 }
 0xef8   :  { %v2947_v32 = vpop.f32.mrf.mxu0 }
 0xefa   :  { %v4538_v41 = vpop.f32.mrf.mxu0 }
 0xefb   :  { %v4771_v41 = vld [vmem:[%s5880_s10 + $0xf0] ss:$8 sps:$4 sm:$0xff]  }
 0xefc   :  { %v2950_v43 = vpop.f32.mrf.mxu0 }
 0xefd   :  { %v4773_v43 = vld [vmem:[%s5880_s10 + $0xf4] ss:$8 sps:$4 sm:$0xff]  }
 0xefe   :  { %v4539_v44 = vpop.f32.mrf.mxu0  ;;  %3483 = vmatprep.subr.bf16.mxu1 %v4773_v43 }
 0xeff   :  { %3484 = vmatpush1.bf16.msra.mxu1 %v4771_v41 }
 0xf00   :  { %v3039_v46 = vpop.f32.mrf.mxu0  ;;  %3485 = vmatprep.subr.bf16.mxu1 %v4776_v45 }
 0xf02   :  { %v4550_v47 = vpop.f32.mrf.mxu0 }
 0xf04   :  { %v3042_v49 = vpop.f32.mrf.mxu0 }
 0xf06   :  { %v4551_v53 = vpop.f32.mrf.mxu0 }
 0xf07   :  { %v4774_v53 = vld [vmem:[%s5880_s10 + $0xe0] ss:$8 sps:$4 sm:$0xff]  }
 0xf08   :  { %v3131_v54 = vpop.f32.mrf.mxu0  ;;  %3486 = vmatpush1.bf16.msra.mxu1 %v4774_v53 }
 0xf09   :  { %v4641_v61 = vpack.i.bf16 %v3131_v54, %v2947_v32  ;;  %v4779_v54 = vld [vmem:[%s5880_s10 + $0xd4] ss:$8 sps:$4 sm:$0xff]  }
 0xf0a   :  { %v4562_v62 = vpop.f32.mrf.mxu0  ;;  %3487 = vmatprep.subr.bf16.mxu1 %v4779_v54 }
 0xf0b   :  { %4642 = vrot.lane.b32.xlu0 %v4641_v61, %s4977_s30  ;;  %v4780_v61 = vld [vmem:[%s5880_s10 + $0xc0] ss:$8 sps:$4 sm:$0xff]   ;;  %v4782_v62 = vld [vmem:[%s5880_s10 + $0xc4] ss:$8 sps:$4 sm:$0xff]  }
 0xf0c   :  { %v3134_v0 = vpop.f32.mrf.mxu0  ;;  %3488 = vmatpush1.bf16.msra.mxu1 %v4777_v59 }
 0xf0d   :  { %v4785_v0 = vld [vmem:[%s5880_s10 + $0xb4] ss:$8 sps:$4 sm:$0xff]   ;;  %3489 = vmatprep.subr.bf16.mxu1 %v4782_v62 }
 0xf0e   :  { %v4563_v2 = vpop.f32.mrf.mxu0 }
 0xf0f   :  { %v4788_v2 = vld [vmem:[%s5880_s10 + $0xa4] ss:$8 sps:$4 sm:$0xff]  }
 0xf10   :  { %3490 = vmatpush1.bf16.msra.mxu1 %v4780_v61 }
 0xf11   :  { %3491 = vmatprep.subr.bf16.mxu1 %v4785_v0 }
 0xf14   :  { %3492 = vmatpush1.bf16.msra.mxu1 %v4783_v1 }
 0xf15   :  { %3493 = vmatprep.subr.bf16.mxu1 %v4788_v2 }
 0xf18   :  { %3494 = vmatpush1.bf16.msra.mxu1 %v4786_v3 }
 0xf19   :  { %v2993_v4 = vpop.f32.mrf.mxu1 }
 0xf1b   :  { %v4544_v7 = vpop.f32.mrf.mxu1 }
 0xf1c   :  { %v4794_v7 = vld [vmem:[%s5880_s10 + $0x84] ss:$8 sps:$4 sm:$0xff]  }
 0xf1d   :  { %v2996_v9 = vpop.f32.mrf.mxu1 }
 0xf1e   :  { %v4792_v9 = vld [vmem:[%s5880_s10 + $0x80] ss:$8 sps:$4 sm:$0xff]  }
 0xf1f   :  { %v4545_v52 = vpop.f32.mrf.mxu1 }
 0xf21   :  { %v3085_v36 = vpop.f32.mrf.mxu1 }
 0xf22   :  { %v4636_v55 = vpack.i.bf16 %v3085_v36, %v2901_v38 }
 0xf23   :  { %v4556_v42 = vpop.f32.mrf.mxu1 }
 0xf24   :  { %4637 = vrot.lane.b32.xlu1 %v4636_v55, %s4983_s21 }
 0xf25   :  { %v3088_v37 = vpop.f32.mrf.mxu1 }
 0xf27   :  { %v4557_v11 = vpop.f32.mrf.mxu1 }
 0xf29   :  { %v3177_v13 = vpop.f32.mrf.mxu1 }
 0xf2a   :  { %v4646_v6 = vpack.i.bf16 %v3177_v13, %v2993_v4  ;;  %v4791_v4 = vld [vmem:[%s5880_s10 + $0x94] ss:$8 sps:$4 sm:$0xff]  }
 0xf2b   :  { %v4568_v14 = vpop.f32.mrf.mxu1  ;;  %3495 = vmatprep.subr.bf16.mxu1 %v4791_v4 }
 0xf2c   :  { %4647 = vrot.lane.b32.xlu1 %v4646_v6, %s4982_s0  ;;  %3496 = vmatpush1.bf16.msra.mxu1 %v4789_v57  ;;  %v4097_v6 = vld [vmem:[%s5878_s8 + $0x1] ss:$0 sm:$0xff] }
 0xf2d   :  { %v3180_v15 = vpop.f32.mrf.mxu1  ;;  %3497 = vmatprep.subr.bf16.mxu1 %v4794_v7 }
 0xf2f   :  { %v4569_v17 = vpop.f32.mrf.mxu1 }
 0xf30   :  { %3498 = vmatpush1.bf16.msra.mxu1 %v4792_v9 }
 0xf31   :  { %4590 = vmatprep.subr.bf16.mxu1 %v4979_v5 }
 0xf7d   :  { %v4643_v20 = vpop.permute.xlu0 %4642 }
 0xf7e   :  { %v4645_v23 = vunpack.i.h.bf16 %v4643_v20  ;;  %v4644_v60 = vunpack.i.l.bf16 %v4643_v20 }
 0xf96   :  { %v4638_v10 = vpop.permute.xlu1 %4637 }
 0xf97   :  { %v4640_v18 = vunpack.i.h.bf16 %v4638_v10  ;;  %v4639_v19 = vunpack.i.l.bf16 %v4638_v10  ;;  %v4098_v10 = vld [vmem:[%s5879_s9 + $0x1] ss:$0 sm:$0xff] }
 0xf99   :  { %v3210_v21 = vsel %vm493_vm1, %v3039_v46, %v4640_v18  ;;  %v3195_v22 = vsel %vm493_vm1, %v5703_v29, %v4639_v19 }
 0xf9a   :  { %v3196_v26 = vsel %vm1405_vm4, %v3195_v22, %v4644_v60  ;;  %v3211_v27 = vsel %vm1405_vm4, %v3210_v21, %v4645_v23  ;;  %v4795_v22 = vld [vmem:[#allocation5 + $0xf8] sm:$0xff]   ;;  %v4797_v60 = vld [vmem:[#allocation5 + $0xf0] sm:$0xff]  }
 0xf9b   :  { %v4796_v23 = vld [vmem:[#allocation5 + $0xb8] sm:$0xff]   ;;  %4287 = vmatprep.subr.bf16.mxu0 %v4795_v22 }
 0xf9e   :  { %v4648_v24 = vpop.permute.xlu1 %4647 }
 0xf9f   :  { %v4650_v63 = vunpack.i.h.bf16 %v4648_v24  ;;  %v4649_v25 = vunpack.i.l.bf16 %v4648_v24  ;;  %v4798_v24 = vld [vmem:[#allocation5 + $0xb0] sm:$0xff]  }
 0xfa1   :  { %v3212_v30 = vsel %vm1407_vm5, %v3211_v27, %v4650_v63  ;;  %v3197_v31 = vsel %vm1407_vm5, %v3196_v26, %v4649_v25  ;;  %v4799_v63 = vld [vmem:[#allocation5 + $0xe8] sm:$0xff]   ;;  %v4801_v26 = vld [vmem:[#allocation5 + $0xe0] sm:$0xff]  }
 0xfa2   :  { %v3232_v35 = vpack.c.bf16 %v3212_v30, %v3197_v31  ;;  %v4800_v25 = vld [vmem:[#allocation5 + $0xa8] sm:$0xff]   ;;  %v4802_v27 = vld [vmem:[#allocation5 + $0xa0] sm:$0xff]   ;;  %v4803_v30 = vld [vmem:[#allocation5 + $0xd8] sm:$0xff]  }
 0xfa3   :  { %v4804_v31 = vld [vmem:[#allocation5 + $0x98] sm:$0xff]  }
 0xfa4   :  { %4587 = vmatmul.mubr.bf16.vlgmr.msra.gmra.mxu0 %v3232_v35  ;;  %v4805_v35 = vld [vmem:[#allocation5 + $0xd0] sm:$0xff]  }
 0xfa5   :  { %4288 = vmatpush3.bf16.msra.mxu0 %v4796_v23 }
 0xfa6   :  { %4289 = vmatprep.subr.bf16.mxu0 %v4797_v60 }
 0xfa9   :  { %4290 = vmatpush3.bf16.msra.mxu0 %v4798_v24 }
 0xfaa   :  { %4291 = vmatprep.subr.bf16.mxu0 %v4799_v63 }
 0xfad   :  { %4292 = vmatpush3.bf16.msra.mxu0 %v4800_v25  ;;  %v4133_v25 = vld [vmem:[%s5883_s13 + $0x1] ss:$0 sm:$0xff] }
 0xfae   :  { %4293 = vmatprep.subr.bf16.mxu0 %v4801_v26 }
 0xfb1   :  { %4294 = vmatpush3.bf16.msra.mxu0 %v4802_v27 }
 0xfb2   :  { %4295 = vmatprep.subr.bf16.mxu0 %v4803_v30 }
 0xfb5   :  { %4296 = vmatpush3.bf16.msra.mxu0 %v4804_v31 }
 0xfb6   :  { %4297 = vmatprep.subr.bf16.mxu0 %v4805_v35 }
0x1064   :  { %v3321_v29 = vpop.f32.mrf.mxu0 }
0x1065   :  { %v3322_v8 = vadd.f32 %v4086_v16, %v3321_v29  ;;  %v4807_v29 = vld [vmem:[#allocation5 + $0xc8] sm:$0xff]  }
0x1066   :  { %v4588_v33 = vpop.f32.mrf.mxu0 }
0x1067   :  { %v3328_v38 = vadd.f32 %v3322_v8, %v5497_v50  ;;  %v4808_v8 = vld [vmem:[#allocation5 + $0x88] sm:$0xff]   ;;  %v4809_v33 = vld [vmem:[#allocation5 + $0xc0] sm:$0xff]  }
0x1068   :  { %v3324_v39 = vpop.f32.mrf.mxu0 }
0x1069   :  { %v3325_v40 = vadd.f32 %v4086_v16, %v3324_v39  ;;  %3334 = vadd.xlane.f32.xlu0 %v3328_v38  ;;  %v4806_v16 = vld [vmem:[#allocation5 + $0x90] sm:$0xff]   ;;  %v4115_v39 = vld [vmem:[%s5881_s11 + $0x2] sm:$0x3] }
0x106a   :  { %v4589_v12 = vpop.f32.mrf.mxu0  ;;  %4298 = vmatpush3.bf16.msra.mxu0 %v4806_v16 }
0x106b   :  { %v3329_v32 = vadd.f32 %v3325_v40, %v5499_v48  ;;  %4299 = vmatprep.subr.bf16.mxu0 %v4807_v29  ;;  %v3396_v40 = vrot.slane %v4115_v39, %v5148_v56  ;;  %v3400_v12 = vrot.slane %v4115_v39, %v5154_v58 }
0x106d   :  { %3336 = vadd.xlane.f32.xlu1 %v3329_v32 }
0x106e   :  { %4300 = vmatpush3.bf16.msra.mxu0 %v4808_v8 }
0x106f   :  { %4301 = vmatprep.subr.bf16.mxu0 %v4809_v33 }
0x10f2   :  { %v3335_v44 = vpop.xlane.xlu0 %3334 }
0x10f3   :  { %v3338_v34 = vmul.f32 0.0078125, %v3335_v44 }
0x10f5   :  { %v3340_v50 = vsub.f32 %v3328_v38, %v3338_v34  ;;  %v4810_v38 = vld [vmem:[#allocation5 + $0x80] sm:$0xff]  }
0x10f6   :  { %v3337_v46 = vpop.xlane.xlu1 %3336  ;;  %4302 = vmatpush3.bf16.msra.mxu0 %v4810_v38 }
0x10f7   :  { %v3339_v28 = vmul.f32 0.0078125, %v3337_v46  ;;  %v3342_v47 = vmul.f32 %v3340_v50, %v3340_v50 }
0x10f9   :  { %v3341_v49 = vsub.f32 %v3329_v32, %v3339_v28  ;;  %3344 = vadd.xlane.f32.xlu0 %v3342_v47 }
0x10fb   :  { %v3343_v48 = vmul.f32 %v3341_v49, %v3341_v49 }
0x10fd   :  { %3346 = vadd.xlane.f32.xlu0 %v3343_v48 }
0x1182   :  { %v3345_v52 = vpop.xlane.xlu0 %3344 }
0x1183   :  { %v3348_v51 = vmul.f32 0.0078125, %v3345_v52 }
0x1185   :  { %v3350_v36 = vadd.f32 1e-12, %v3348_v51 }
0x1186   :  { %v3347_v55 = vpop.xlane.xlu0 %3346 }
0x1187   :  { %4903 = vrsqrt.f32 %v3350_v36  ;;  %v3349_v42 = vmul.f32 0.0078125, %v3347_v55 }
0x1189   :  { %v3351_v37 = vadd.f32 1e-12, %v3349_v42 }
0x118b   :  { %4905 = vrsqrt.f32 %v3351_v37 }
0x1194   :  { %v4904_v11 = vpop.eup %4903 }
0x1195   :  { %v3354_v13 = vmul.f32 %v4904_v11, %v3340_v50 }
0x1197   :  { %v3362_v17 = vmul.f32 %v4097_v6, %v3354_v13 }
0x1198   :  { %v4906_v14 = vpop.eup %4905 }
0x1199   :  { %v3355_v15 = vmul.f32 %v4906_v14, %v3341_v49  ;;  %v5806_v19 = vadd.f32 %v4098_v10, %v3362_v17 }
0x119b   :  { %v3363_v18 = vmul.f32 %v4097_v6, %v3355_v15 }
0x119d   :  { %v5808_v20 = vadd.f32 %v4098_v10, %v3363_v18 }
0x119f   :  { %v3391_v21 = vpack.c.bf16 %v5808_v20, %v5806_v19 }
0x11a1   :  { %3516 = vmatmul.mubr.bf16.vlgmr.msra.gmra.mxu1 %v3391_v21 }
0x11a2   :  { %4606 = vmatprep.mubr.msk.bf16.mxu1 %vm4981_vm0, %v4979_v5 }
0x1261   :  { %v3517_v32 = vpop.f32.mrf.mxu1 }
0x1262   :  { %v3518_v41 = vadd.f32 %v3517_v32, %v3396_v40 }
0x1263   :  { %v3519_v43 = vpop.f32.mrf.mxu1 }
0x1264   :  { %v3530_v44 = vmul.f32 0.044715, %v3518_v41  ;;  %v3520_v34 = vadd.f32 %v3519_v43, %v3400_v12  ;;  %v3526_v10 = vmul.f32 0.5, %v3518_v41 }
0x1265   :  { %v3521_v50 = vpop.f32.mrf.mxu1 }
0x1266   :  { %v3534_v46 = vmul.f32 %v3530_v44, %v3518_v41  ;;  %v3531_v28 = vmul.f32 0.044715, %v3520_v34  ;;  %v3522_v47 = vadd.f32 %v3521_v50, %v3396_v40  ;;  %v3527_v14 = vmul.f32 0.5, %v3520_v34  ;;  %v4814_v50 = vld [vmem:[%s5886_s16 + $0x20] sm:$0xff]  }
0x1267   :  { %v3523_v49 = vpop.f32.mrf.mxu1 }
0x1268   :  { %v3538_v48 = vmul.f32 %v3534_v46, %v3518_v41  ;;  %v3535_v45 = vmul.f32 %v3531_v28, %v3520_v34  ;;  %v3532_v53 = vmul.f32 0.044715, %v3522_v47  ;;  %v3524_v54 = vadd.f32 %v3523_v49, %v3400_v12  ;;  %v4815_v46 = vld [vmem:[%s5886_s16 + $0x18] sm:$0xff]   ;;  %v4816_v28 = vld [vmem:[%s5886_s16 + $0x10] sm:$0xff]   ;;  %v4818_v49 = vld [vmem:[%s5886_s16] sm:$0xff]  }
0x1269   :  { %v3528_v13 = vmul.f32 0.5, %v3522_v47 }
0x126a   :  { %v3542_v59 = vadd.f32 %v3538_v48, %v3518_v41  ;;  %v3539_v61 = vmul.f32 %v3535_v45, %v3520_v34  ;;  %v3536_v62 = vmul.f32 %v3532_v53, %v3522_v47  ;;  %v3533_v56 = vmul.f32 0.044715, %v3524_v54 }
0x126b   :  { %v3529_v15 = vmul.f32 0.5, %v3524_v54 }
0x126c   :  { %v3540_v0 = vmul.f32 %v3536_v62, %v3522_v47  ;;  %v3537_v58 = vmul.f32 %v3533_v56, %v3524_v54  ;;  %v3543_v1 = vadd.f32 %v3539_v61, %v3520_v34  ;;  %v3546_v2 = vmul.f32 0.7978846, %v3542_v59  ;;  %v4811_v34 = vld [vmem:[%s5886_s16 + $0x38] sm:$0xff]  }
0x126d   :  { %4591 = vmatpush3.bf16.msra.mxu1 %v4811_v34 }
0x126e   :  { %v3544_v3 = vadd.f32 %v3540_v0, %v3522_v47  ;;  %v3541_v4 = vmul.f32 %v3537_v58, %v3524_v54  ;;  %v3547_v57 = vmul.f32 0.7978846, %v3543_v1  ;;  %4592 = vmatprep.subr.bf16.mxu1 %v4979_v5  ;;  %v4817_v47 = vld [vmem:[%s5886_s16 + $0x8] sm:$0xff]   ;;  %v4152_v58 = vld [vmem:[%s5884_s14 + $0x1] ss:$0 sm:$0xff] }
0x1270   :  { %v3548_v7 = vmul.f32 0.7978846, %v3544_v3  ;;  %v3545_v9 = vadd.f32 %v3541_v4, %v3524_v54  ;;  %4907 = vtanh.f32 %v3547_v57 }
0x1271   :  { %4909 = vtanh.f32 %v3546_v2 }
0x1272   :  { %4911 = vtanh.f32 %v3548_v7  ;;  %v3549_v52 = vmul.f32 0.7978846, %v3545_v9 }
0x1274   :  { %4913 = vtanh.f32 %v3549_v52 }
0x127d   :  { %v4908_v51 = vpop.eup %4907 }
0x127e   :  { %v4910_v36 = vpop.eup %4909  ;;  %v3555_v42 = vadd.f32 1.0, %v4908_v51  ;;  %v4154_v51 = vld [vmem:[%s5887_s17] ss:$0 sm:$0xff] }
0x127f   :  { %v4912_v55 = vpop.eup %4911  ;;  %v3554_v6 = vadd.f32 1.0, %v4910_v36 }
0x1280   :  { %v3556_v37 = vadd.f32 1.0, %v4912_v55  ;;  %v3559_v21 = vmul.f32 %v3555_v42, %v3527_v14 }
0x1281   :  { %v4914_v11 = vpop.eup %4913  ;;  %v3558_v23 = vmul.f32 %v3554_v6, %v3526_v10 }
0x1282   :  { %v3557_v17 = vadd.f32 1.0, %v4914_v11  ;;  %v3560_v18 = vmul.f32 %v3556_v37, %v3528_v13  ;;  %v4163_v13 = vld [vmem:[%s5888_s18] ss:$0 sm:$0xff] }
0x1284   :  { %v3561_v22 = vmul.f32 %v3557_v17, %v3529_v15  ;;  %v3597_v24 = vpack.c.bf16 %v3560_v18, %v3558_v23  ;;  %v4164_v17 = vld [vmem:[#allocation2] ss:$0 sm:$0xff] }
0x1286   :  { %v3598_v60 = vpack.c.bf16 %v3561_v22, %v3559_v21 }
0x1288   :  { %3733 = vmatprep.mubr.bf16.mxu0 %v3598_v60 }
0x1289   :  { %3734 = vmatmul.mubr.bf16.vlgmr.msra.gmra.mxu0 %v3597_v24 }
0x1349   :  { %v4303_v63 = vpop.f32.mrf.mxu0 }
0x134b   :  { %v4304_v26 = vpop.f32.mrf.mxu0 }
0x134c   :  { %v4305_v27 = vadd.f32 %v4304_v26, %v4303_v63 }
0x134d   :  { %v4306_v30 = vpop.f32.mrf.mxu0 }
0x134e   :  { %v3736_v31 = vadd.f32 %v4305_v27, %v4133_v25 }
0x134f   :  { %v4307_v35 = vpop.f32.mrf.mxu0 }
0x1350   :  { %v4308_v16 = vadd.f32 %v4307_v35, %v4306_v30  ;;  %v3742_v29 = vadd.f32 %v3736_v31, %v5806_v19  ;;  %v4812_v19 = vld [vmem:[%s5886_s16 + $0x30] sm:$0xff]  }
0x1351   :  { %4593 = vmatpush3.bf16.msra.mxu1 %v4812_v19 }
0x1352   :  { %v3739_v8 = vadd.f32 %v4308_v16, %v4133_v25  ;;  %3748 = vadd.xlane.f32.xlu1 %v3742_v29  ;;  %4594 = vmatprep.subr.bf16.mxu1 %v4979_v5 }
0x1354   :  { %v3743_v33 = vadd.f32 %v3739_v8, %v5808_v20  ;;  %v4813_v20 = vld [vmem:[%s5886_s16 + $0x28] sm:$0xff]  }
0x1355   :  { %4595 = vmatpush3.bf16.msra.mxu1 %v4813_v20 }
0x1356   :  { %3750 = vadd.xlane.f32.xlu0 %v3743_v33  ;;  %4596 = vmatprep.subr.bf16.mxu1 %v4979_v5 }
0x1359   :  { %4597 = vmatpush3.bf16.msra.mxu1 %v4814_v50 }
0x135a   :  { %4598 = vmatprep.subr.bf16.mxu1 %v4979_v5 }
0x135d   :  { %4599 = vmatpush3.bf16.msra.mxu1 %v4815_v46 }
0x135e   :  { %4600 = vmatprep.subr.bf16.mxu1 %v4979_v5 }
0x1361   :  { %4601 = vmatpush3.bf16.msra.mxu1 %v4816_v28 }
0x1362   :  { %4602 = vmatprep.subr.bf16.mxu1 %v4979_v5 }
0x1365   :  { %4603 = vmatpush3.bf16.msra.mxu1 %v4817_v47 }
0x1366   :  { %4604 = vmatprep.subr.bf16.mxu1 %v4979_v5  ;;  %v4153_v5 = vld [vmem:[%s5885_s15 + $0x1] ss:$0 sm:$0xff] }
0x1369   :  { %4605 = vmatpush3.bf16.msra.mxu1 %v4818_v49 }
0x13db   :  { %v3749_v38 = vpop.xlane.xlu1 %3748 }
0x13dc   :  { %v3752_v39 = vmul.f32 0.0078125, %v3749_v38 }
0x13de   :  { %v3754_v40 = vsub.f32 %v3742_v29, %v3752_v39 }
0x13df   :  { %v3751_v12 = vpop.xlane.xlu0 %3750 }
0x13e0   :  { %v3753_v32 = vmul.f32 0.0078125, %v3751_v12  ;;  %v3756_v41 = vmul.f32 %v3754_v40, %v3754_v40 }
0x13e2   :  { %v3755_v43 = vsub.f32 %v3743_v33, %v3753_v32  ;;  %3758 = vadd.xlane.f32.xlu1 %v3756_v41 }
0x13e4   :  { %v3757_v44 = vmul.f32 %v3755_v43, %v3755_v43 }
0x13e6   :  { %3760 = vadd.xlane.f32.xlu0 %v3757_v44 }
0x146b   :  { %v3759_v48 = vpop.xlane.xlu1 %3758 }
0x146c   :  { %v3762_v45 = vmul.f32 0.0078125, %v3759_v48 }
0x146e   :  { %v3764_v53 = vadd.f32 1e-12, %v3762_v45 }
0x146f   :  { %v3761_v54 = vpop.xlane.xlu0 %3760 }
0x1470   :  { %4915 = vrsqrt.f32 %v3764_v53  ;;  %v3763_v59 = vmul.f32 0.0078125, %v3761_v54 }
0x1472   :  { %v3765_v61 = vadd.f32 1e-12, %v3763_v59 }
0x1474   :  { %4917 = vrsqrt.f32 %v3765_v61 }
0x147d   :  { %v4916_v62 = vpop.eup %4915 }
0x147e   :  { %v3768_v56 = vmul.f32 %v4916_v62, %v3754_v40 }
0x1480   :  { %v3776_v2 = vmul.f32 %v4152_v58, %v3768_v56 }
0x1481   :  { %v4918_v0 = vpop.eup %4917 }
0x1482   :  { %v3769_v1 = vmul.f32 %v4918_v0, %v3755_v43  ;;  %v3784_v57 = vadd.f32 %v4153_v5, %v3776_v2 }
0x1484   :  { %v3777_v3 = vmul.f32 %v4152_v58, %v3769_v1 }
0x1486   :  { %v3785_v4 = vadd.f32 %v4153_v5, %v3777_v3 }
0x1488   :  { %v3787_v7 = vrot.slane %v3785_v4, 7 }
0x148a   :  { %v3790_v9 = vsel %vm3789_vm6, %v3784_v57, %v3787_v7 }
0x148b   :  { %v3808_v52 = vpack.c.bf16 %v3790_v9, %v3790_v9 }
0x148d   :  { %4607 = vmatmul.mubr.bf16.vlgmr.msra.gmra.mxu1 %v3808_v52 }
0x154d   :  { %v3897_v36 = vpop.f32.mrf.mxu1 }
0x154e   :  { %v3898_v55 = vadd.f32 %v4154_v51, %v3897_v36 }
0x154f   :  { %v4608_v42 = vpop.f32.mrf.mxu1 }
0x1550   :  { %4919 = vtanh.f32 %v3898_v55 }
0x1551   :  { %v3900_v37 = vpop.f32.mrf.mxu1 }
0x1553   :  { %v4609_v11 = vpop.f32.mrf.mxu1 }
0x155d   :  { %v4920_v6 = vpop.eup %4919 }
0x155e   :  { %v3911_v14 = vmul.f32 %v4920_v6, %v4163_v13 }
0x1560   :  { %v3913_v15 = vsel %vm3912_vm7, %v3911_v14, 0.0 }
0x1561   :  { %3914 = vadd.xlane.f32.xlu0 %v3913_v15 }
0x15ea   :  { %v3915_v10 = vpop.xlane.xlu0 %3914 }
0x15eb   :  { %v3923_v18 = vadd.f32 %v4164_v17, %v3915_v10 }
0x15ed   :  { %3925 = vst.msk [vmem:[%s5890_s20] sm:$0x3] %vm3924_vm8, %v3923_v18 }
0x15ee   :  { %3930 = vsyncpa [#allocation4], 1 }
0x15ef   :  { %3931 = vsyncpa [#allocation6], 1 }

</bundles_post_ra>
